<compile_context>
chip_gen: v7x
topology: tpu7x:2x2x1
jax: 0.10.0
libtpu: 0.0.40
codegen_flags: <defaults>
</compile_context>

<pallas_src>
import numpy as np
import jax
import jax.numpy as jnp
from jax.experimental import pallas as pl
from jax.experimental.pallas import tpu as pltpu

N_WIRES = 4
DIM = 1 << N_WIRES            # 16
IMG = 28
HALF = IMG // 2               # 14
PATCHES = HALF * HALF         # 196
P_PAD = 256                   # patches padded to a lane-tile-aligned count
FEAT = 4 * PATCHES            # 784 (logical)
FEAT_PAD = N_WIRES * P_PAD    # 1024 (padded, lane-dense)
N_CLASSES = 10
O_PAD = 128                   # classes padded to full lane width
TILE_B = 8                    # images per grid step
TILE_N = TILE_B * P_PAD       # 2048 lanes per step


# ----------------------------------------------------------------------------
# Deterministic parameter construction (host-side numpy; compile-time constants)
# ----------------------------------------------------------------------------
def _ry(t):
    c, s = np.cos(t / 2), np.sin(t / 2)
    return np.array([[c, -s], [s, c]], dtype=np.complex128)


def _rx(t):
    c, s = np.cos(t / 2), np.sin(t / 2)
    return np.array([[c, -1j * s], [-1j * s, c]], dtype=np.complex128)


def _rz(t):
    return np.diag([np.exp(-1j * t / 2), np.exp(1j * t / 2)]).astype(np.complex128)


def _embed_1q(g, wire):
    mats = [np.eye(2, dtype=np.complex128)] * N_WIRES
    mats[wire] = g
    out = mats[0]
    for m in mats[1:]:
        out = np.kron(out, m)          # wire 0 = most-significant bit
    return out


def _cnot(ctrl, tgt):
    u = np.zeros((DIM, DIM), dtype=np.complex128)
    for b in range(DIM):
        bits = [(b >> (N_WIRES - 1 - w)) & 1 for w in range(N_WIRES)]
        if bits[ctrl] == 1:
            bits[tgt] ^= 1
        b2 = sum(bit << (N_WIRES - 1 - w) for w, bit in enumerate(bits))
        u[b2, b] = 1.0
    return u


def build_random_layer_unitary(seed=0, n_ops=8):
    """Deterministic stand-in for tq.RandomLayer(n_ops=8, wires=0..3)."""
    rng = np.random.RandomState(seed)
    u = np.eye(DIM, dtype=np.complex128)
    ops = ["rx", "ry", "rz", "cnot"]
    for _ in range(n_ops):
        op = ops[rng.randint(len(ops))]
        if op == "cnot":
            w = rng.choice(N_WIRES, size=2, replace=False)
            g = _cnot(int(w[0]), int(w[1]))
        else:
            wire = int(rng.randint(N_WIRES))
            theta = float(rng.uniform(0.0, 2.0 * np.pi))
            g = _embed_1q({"rx": _rx, "ry": _ry, "rz": _rz}[op](theta), wire)
        u = g @ u
    return u


def build_z_signs():
    """z_signs[b, k] = +1 if bit of wire k in basis state b is 0 else -1."""
    z = np.zeros((DIM, N_WIRES), dtype=np.float32)
    for b in range(DIM):
        for k in range(N_WIRES):
            bit = (b >> (N_WIRES - 1 - k)) & 1
            z[b, k] = 1.0 - 2.0 * bit
    return z


def build_linear_params(seed=1):
    rng = np.random.RandomState(seed)
    bound = 1.0 / np.sqrt(FEAT)
    w = rng.uniform(-bound, bound, size=(N_CLASSES, FEAT)).astype(np.float32)
    b = rng.uniform(-bound, bound, size=(N_CLASSES,)).astype(np.float32)
    return w, b


# ----------------------------------------------------------------------------
# Fused Pallas kernel: quanv (RY encode -> fixed unitary -> <Z>) + linear head
# ----------------------------------------------------------------------------
def hybrid_kernel(ang_ref, ucat_ref, zcat_ref, w_ref, b_ref, out_ref, feat_s):
    ang = ang_ref[...]                        # (4, TILE_N) f32, lane-dense
    half = ang * 0.5
    c = jnp.cos(half)                         # EUP
    s = jnp.sin(half)

    c0, c1, c2, c3 = c[0:1, :], c[1:2, :], c[2:3, :], c[3:4, :]
    s0, s1, s2, s3 = s[0:1, :], s[1:2, :], s[2:3, :], s[3:4, :]

    # Kronecker expansion of the RY product state, psi^T : (16, TILE_N).
    # Row index j has wire 0 as MSB; factor is s_i if bit_i(j)==1 else c_i.
    t01 = [c0 * c1, c0 * s1, s0 * c1, s0 * s1]                           # 4 x (1, TILE_N)
    t23 = jnp.concatenate([c2 * c3, c2 * s3, s2 * c3, s2 * s3], axis=0)  # (4, TILE_N)
    psi = jnp.concatenate([t01[0] * t23, t01[1] * t23,
                           t01[2] * t23, t01[3] * t23], axis=0)          # (16, TILE_N)

    # Fixed circuit unitary with [Re; Im] stacked -> one MXU matmul, then |amp|^2.
    amp = jnp.dot(ucat_ref[...], psi, preferred_element_type=jnp.float32)  # (32, TILE_N)
    sq = amp * amp
    # <Z_k> per patch, transposed / lane-dense: (4, TILE_N)
    zt = jnp.dot(zcat_ref[...], sq, preferred_element_type=jnp.float32)

    # Re-layout to per-image feature rows: feat[b, k*P_PAD + p] = zt[k, b*P_PAD + p].
    # 32 small lane-tile-aligned copies (1 KiB each) into a VMEM scratch.
    for b in range(TILE_B):
        for k in range(N_WIRES):
            feat_s[b:b + 1, k * P_PAD:(k + 1) * P_PAD] = \
                zt[k:k + 1, b * P_PAD:(b + 1) * P_PAD]

    # Linear head (classes padded to 128) in bf16 with f32 accumulation + log_softmax.
    feat = feat_s[...].astype(jnp.bfloat16)
    logits = jnp.dot(feat, w_ref[...],
                     preferred_element_type=jnp.float32) + b_ref[...]      # (TILE_B, 128)
    m = jnp.max(logits, axis=-1, keepdims=True)
    sh = logits - m
    lse = jnp.log(jnp.sum(jnp.exp(sh), axis=-1, keepdims=True))
    out_ref[...] = sh - lse


def prepare_angles(x, bsz_pad):
    """x: (bsz, 1, 28, 28) NCHW -> transposed, padded angles (4, bsz_pad * 256).

    angles[i, b*256 + p] with p = c2*14 + r2 (c outer / r inner, as in the
    PyTorch loops) and wire order (c,r),(c,r+1),(c+1,r),(c+1,r+1)."""
    bsz = x.shape[0]
    xr = x.reshape(bsz, IMG, IMG)
    pat = xr.reshape(bsz, HALF, 2, HALF, 2).transpose(2, 4, 0, 1, 3)  # (2,2,b,14,14)
    ang = pat.reshape(N_WIRES, bsz, PATCHES)
    ang = jnp.pad(ang, ((0, 0), (0, bsz_pad - bsz), (0, P_PAD - PATCHES)))
    return ang.reshape(N_WIRES, bsz_pad * P_PAD)


def hybrid_forward(x, ucat, zcat, w_big, bias_pad):
    bsz = x.shape[0]
    bsz_pad = ((bsz + TILE_B - 1) // TILE_B) * TILE_B
    ang_t = prepare_angles(x, bsz_pad)                     # (4, bsz_pad*256)
    grid = (bsz_pad // TILE_B,)
    out = pl.pallas_call(
        hybrid_kernel,
        out_shape=jax.ShapeDtypeStruct((bsz_pad, O_PAD), jnp.float32),
        grid=grid,
        in_specs=[
            pl.BlockSpec((N_WIRES, TILE_N), lambda i: (0, i)),     # angles (lane tiled)
            pl.BlockSpec((2 * DIM, DIM), lambda i: (0, 0)),        # [Re;Im] unitary
            pl.BlockSpec((N_WIRES, 2 * DIM), lambda i: (0, 0)),    # doubled Z signs
            pl.BlockSpec((FEAT_PAD, O_PAD), lambda i: (0, 0)),     # head weight (bf16)
            pl.BlockSpec((1, O_PAD), lambda i: (0, 0)),            # head bias (padded)
        ],
        out_specs=pl.BlockSpec((TILE_B, O_PAD), lambda i: (i, 0)),
        scratch_shapes=[pltpu.VMEM((TILE_B, FEAT_PAD), jnp.float32)],
        compiler_params=pltpu.CompilerParams(
            dimension_semantics=("parallel",)),
    )(ang_t, ucat, zcat, w_big, bias_pad)
    return out[:bsz, :N_CLASSES]


# ----------------------------------------------------------------------------
# Pure-numpy float64 reference (for correctness check)
# ----------------------------------------------------------------------------
def reference_forward(x_np, u, zs, w, b):
    bsz = x_np.shape[0]
    xr = x_np.reshape(bsz, IMG, IMG).astype(np.float64)
    pat = xr.reshape(bsz, HALF, 2, HALF, 2).transpose(0, 1, 3, 2, 4)
    ang = pat.reshape(bsz * PATCHES, 4)
    c, s = np.cos(ang / 2), np.sin(ang / 2)
    psi = np.ones((ang.shape[0], DIM), dtype=np.float64)
    cols = np.arange(DIM)
    for i in range(N_WIRES):
        bit = (cols >> (N_WIRES - 1 - i)) & 1
        psi *= np.where(bit[None, :] == 1, s[:, i:i + 1], c[:, i:i + 1])
    amp = psi @ u.T
    probs = np.abs(amp) ** 2
    z = probs @ zs
    feats = z.reshape(bsz, FEAT)
    logits = feats @ w.T + b
    m = logits.max(axis=-1, keepdims=True)
    sh = logits - m
    return sh - np.log(np.exp(sh).sum(axis=-1, keepdims=True))


# ----------------------------------------------------------------------------
if __name__ == "__main__":
    # Deterministic parameters.
    u = build_random_layer_unitary(seed=0, n_ops=8)              # (16,16) complex
    ucat = jnp.asarray(np.concatenate([u.real, u.imag], axis=0),
                       dtype=jnp.float32)                         # (32, 16)
    zs = build_z_signs()                                          # (16, 4)
    zcat = jnp.asarray(np.concatenate([zs.T, zs.T], axis=1),
                       dtype=jnp.float32)                         # (4, 32)
    w_np, b_np = build_linear_params(seed=1)                      # (10,784), (10,)

    # Head weight re-ordered/padded to (1024, 128):
    #   w_big[k*256 + p, o] = W[o, p*4 + k]  for p < 196, o < 10, else 0.
    w_big = np.zeros((FEAT_PAD, O_PAD), dtype=np.float32)
    w_big.reshape(N_WIRES, P_PAD, O_PAD)[:, :PATCHES, :N_CLASSES] = \
        w_np.T.reshape(PATCHES, N_WIRES, N_CLASSES).transpose(1, 0, 2)
    w_big = jnp.asarray(w_big, dtype=jnp.bfloat16)
    bias_pad = np.full((1, O_PAD), -1e30, dtype=np.float32)       # mask padded classes
    bias_pad[0, :N_CLASSES] = b_np
    bias_pad = jnp.asarray(bias_pad)

    # Deterministic input (NCHW; module hard-codes 28x28 single-channel).
    key = jax.random.PRNGKey(0)
    x = jax.random.uniform(key, (2, 1, IMG, IMG), dtype=jnp.float32)

    fwd = jax.jit(hybrid_forward)
    out = fwd(x, ucat, zcat, w_big, bias_pad)
    out = jax.block_until_ready(out)

    ref = reference_forward(np.asarray(x, dtype=np.float64), u,
                            zs.astype(np.float64),
                            w_np.astype(np.float64), b_np.astype(np.float64))
    if not np.allclose(np.asarray(out), ref, atol=2e-2, rtol=2e-2):
        raise AssertionError("Pallas output does not match reference")

    print("KERNEL_OK")
</pallas_src>

<mosaic_0001>
module attributes {stable_mosaic.version = 11 : i64} {
  func.func @hybrid_kernel(%arg0: i32, %arg1: memref<4x2048xf32, #tpu.memory_space<vmem>>, %arg2: memref<32x16xf32, #tpu.memory_space<vmem>>, %arg3: memref<4x32xf32, #tpu.memory_space<vmem>>, %arg4: memref<1024x128xbf16, #tpu.memory_space<vmem>>, %arg5: memref<1x128xf32, #tpu.memory_space<vmem>>, %arg6: memref<8x128xf32, #tpu.memory_space<vmem>>, %arg7: memref<8x1024xf32, #tpu.memory_space<vmem>>) attributes {dimension_semantics = [#tpu.dimension_semantics<parallel>], iteration_bounds = array<i64: 1>, scalar_prefetch = 0 : i64, scratch_operands = 1 : i64, tpu.core_type = #tpu.core_type<tc>, window_params = [{transform_indices = @transform_0, window_bounds = array<i64: 4, 2048>}, {pipeline_mode = #tpu.pipeline_mode<synchronous>, transform_indices = @transform_1, window_bounds = array<i64: 32, 16>}, {pipeline_mode = #tpu.pipeline_mode<synchronous>, transform_indices = @transform_2, window_bounds = array<i64: 4, 32>}, {pipeline_mode = #tpu.pipeline_mode<synchronous>, transform_indices = @transform_3, window_bounds = array<i64: 1024, 128>}, {pipeline_mode = #tpu.pipeline_mode<synchronous>, transform_indices = @transform_4, window_bounds = array<i64: 1, 128>}, {transform_indices = @transform_5, window_bounds = array<i64: 8, 128>}]} {
    %c0 = arith.constant 0 : index
    %c0_0 = arith.constant 0 : index
    %0 = vector.load %arg1[%c0, %c0_0] : memref<4x2048xf32, #tpu.memory_space<vmem>>, vector<4x2048xf32>
    %cst = arith.constant 5.000000e-01 : f32
    %1 = vector.broadcast %cst : f32 to vector<4x2048xf32>
    %2 = arith.mulf %0, %1 : vector<4x2048xf32>
    %3 = math.cos %2 : vector<4x2048xf32>
    %4 = math.sin %2 : vector<4x2048xf32>
    %5 = vector.extract_strided_slice %3 {offsets = [0, 0], sizes = [1, 2048], strides = [1, 1]} : vector<4x2048xf32> to vector<1x2048xf32>
    %6 = vector.extract_strided_slice %3 {offsets = [1, 0], sizes = [1, 2048], strides = [1, 1]} : vector<4x2048xf32> to vector<1x2048xf32>
    %7 = vector.extract_strided_slice %3 {offsets = [2, 0], sizes = [1, 2048], strides = [1, 1]} : vector<4x2048xf32> to vector<1x2048xf32>
    %8 = vector.extract_strided_slice %3 {offsets = [3, 0], sizes = [1, 2048], strides = [1, 1]} : vector<4x2048xf32> to vector<1x2048xf32>
    %9 = vector.extract_strided_slice %4 {offsets = [0, 0], sizes = [1, 2048], strides = [1, 1]} : vector<4x2048xf32> to vector<1x2048xf32>
    %10 = vector.extract_strided_slice %4 {offsets = [1, 0], sizes = [1, 2048], strides = [1, 1]} : vector<4x2048xf32> to vector<1x2048xf32>
    %11 = vector.extract_strided_slice %4 {offsets = [2, 0], sizes = [1, 2048], strides = [1, 1]} : vector<4x2048xf32> to vector<1x2048xf32>
    %12 = vector.extract_strided_slice %4 {offsets = [3, 0], sizes = [1, 2048], strides = [1, 1]} : vector<4x2048xf32> to vector<1x2048xf32>
    %13 = arith.mulf %5, %6 : vector<1x2048xf32>
    %14 = arith.mulf %5, %10 : vector<1x2048xf32>
    %15 = arith.mulf %9, %6 : vector<1x2048xf32>
    %16 = arith.mulf %9, %10 : vector<1x2048xf32>
    %17 = arith.mulf %7, %8 : vector<1x2048xf32>
    %18 = arith.mulf %7, %12 : vector<1x2048xf32>
    %19 = arith.mulf %11, %8 : vector<1x2048xf32>
    %20 = arith.mulf %11, %12 : vector<1x2048xf32>
    %21 = tpu.concatenate %17, %18, %19, %20 in 0 : vector<1x2048xf32>, vector<1x2048xf32>, vector<1x2048xf32>, vector<1x2048xf32> -> vector<4x2048xf32>
    %22 = vector.broadcast %13 : vector<1x2048xf32> to vector<4x2048xf32>
    %23 = arith.mulf %22, %21 : vector<4x2048xf32>
    %24 = vector.broadcast %14 : vector<1x2048xf32> to vector<4x2048xf32>
    %25 = arith.mulf %24, %21 : vector<4x2048xf32>
    %26 = vector.broadcast %15 : vector<1x2048xf32> to vector<4x2048xf32>
    %27 = arith.mulf %26, %21 : vector<4x2048xf32>
    %28 = vector.broadcast %16 : vector<1x2048xf32> to vector<4x2048xf32>
    %29 = arith.mulf %28, %21 : vector<4x2048xf32>
    %30 = tpu.concatenate %23, %25, %27, %29 in 0 : vector<4x2048xf32>, vector<4x2048xf32>, vector<4x2048xf32>, vector<4x2048xf32> -> vector<16x2048xf32>
    %c0_1 = arith.constant 0 : index
    %c0_2 = arith.constant 0 : index
    %31 = vector.load %arg2[%c0_1, %c0_2] : memref<32x16xf32, #tpu.memory_space<vmem>>, vector<32x16xf32>
    %cst_3 = arith.constant dense<0.000000e+00> : vector<32x2048xf32>
    %32 = tpu.matmul %31, %30, %cst_3 {dimension_numbers = #tpu.dot_dimension_numbers<[1], [0], [0], [1], [0, 0, 1, 1], [], []>} : vector<32x16xf32>, vector<16x2048xf32>, vector<32x2048xf32> -> vector<32x2048xf32>
    %33 = arith.mulf %32, %32 : vector<32x2048xf32>
    %c0_4 = arith.constant 0 : index
    %c0_5 = arith.constant 0 : index
    %34 = vector.load %arg3[%c0_4, %c0_5] : memref<4x32xf32, #tpu.memory_space<vmem>>, vector<4x32xf32>
    %cst_6 = arith.constant dense<0.000000e+00> : vector<4x2048xf32>
    %35 = tpu.matmul %34, %33, %cst_6 {dimension_numbers = #tpu.dot_dimension_numbers<[1], [0], [0], [1], [0, 0, 1, 1], [], []>} : vector<4x32xf32>, vector<32x2048xf32>, vector<4x2048xf32> -> vector<4x2048xf32>
    %36 = vector.extract_strided_slice %35 {offsets = [0, 0], sizes = [1, 256], strides = [1, 1]} : vector<4x2048xf32> to vector<1x256xf32>
    %c0_7 = arith.constant 0 : index
    %c0_8 = arith.constant 0 : index
    %37 = vector.load %arg7[%c0_7, %c0_8] : memref<8x1024xf32, #tpu.memory_space<vmem>>, vector<1x256xf32>
    tpu.vector_store %arg7[%c0_7, %c0_8], %36 {strides = array<i32>} : memref<8x1024xf32, #tpu.memory_space<vmem>>, vector<1x256xf32>,
    %38 = vector.extract_strided_slice %35 {offsets = [1, 0], sizes = [1, 256], strides = [1, 1]} : vector<4x2048xf32> to vector<1x256xf32>
    %c0_9 = arith.constant 0 : index
    %c256 = arith.constant 256 : index
    %39 = vector.load %arg7[%c0_9, %c256] : memref<8x1024xf32, #tpu.memory_space<vmem>>, vector<1x256xf32>
    tpu.vector_store %arg7[%c0_9, %c256], %38 {strides = array<i32>} : memref<8x1024xf32, #tpu.memory_space<vmem>>, vector<1x256xf32>,
    %40 = vector.extract_strided_slice %35 {offsets = [2, 0], sizes = [1, 256], strides = [1, 1]} : vector<4x2048xf32> to vector<1x256xf32>
    %c0_10 = arith.constant 0 : index
    %c512 = arith.constant 512 : index
    %41 = vector.load %arg7[%c0_10, %c512] : memref<8x1024xf32, #tpu.memory_space<vmem>>, vector<1x256xf32>
    tpu.vector_store %arg7[%c0_10, %c512], %40 {strides = array<i32>} : memref<8x1024xf32, #tpu.memory_space<vmem>>, vector<1x256xf32>,
    %42 = vector.extract_strided_slice %35 {offsets = [3, 0], sizes = [1, 256], strides = [1, 1]} : vector<4x2048xf32> to vector<1x256xf32>
    %c0_11 = arith.constant 0 : index
    %c768 = arith.constant 768 : index
    %43 = vector.load %arg7[%c0_11, %c768] : memref<8x1024xf32, #tpu.memory_space<vmem>>, vector<1x256xf32>
    tpu.vector_store %arg7[%c0_11, %c768], %42 {strides = array<i32>} : memref<8x1024xf32, #tpu.memory_space<vmem>>, vector<1x256xf32>,
    %44 = vector.extract_strided_slice %35 {offsets = [0, 256], sizes = [1, 256], strides = [1, 1]} : vector<4x2048xf32> to vector<1x256xf32>
    %c1 = arith.constant 1 : index
    %c0_12 = arith.constant 0 : index
    %45 = vector.load %arg7[%c1, %c0_12] : memref<8x1024xf32, #tpu.memory_space<vmem>>, vector<1x256xf32>
    tpu.vector_store %arg7[%c1, %c0_12], %44 {strides = array<i32>} : memref<8x1024xf32, #tpu.memory_space<vmem>>, vector<1x256xf32>,
    %46 = vector.extract_strided_slice %35 {offsets = [1, 256], sizes = [1, 256], strides = [1, 1]} : vector<4x2048xf32> to vector<1x256xf32>
    %c1_13 = arith.constant 1 : index
    %c256_14 = arith.constant 256 : index
    %47 = vector.load %arg7[%c1_13, %c256_14] : memref<8x1024xf32, #tpu.memory_space<vmem>>, vector<1x256xf32>
    tpu.vector_store %arg7[%c1_13, %c256_14], %46 {strides = array<i32>} : memref<8x1024xf32, #tpu.memory_space<vmem>>, vector<1x256xf32>,
    %48 = vector.extract_strided_slice %35 {offsets = [2, 256], sizes = [1, 256], strides = [1, 1]} : vector<4x2048xf32> to vector<1x256xf32>
    %c1_15 = arith.constant 1 : index
    %c512_16 = arith.constant 512 : index
    %49 = vector.load %arg7[%c1_15, %c512_16] : memref<8x1024xf32, #tpu.memory_space<vmem>>, vector<1x256xf32>
    tpu.vector_store %arg7[%c1_15, %c512_16], %48 {strides = array<i32>} : memref<8x1024xf32, #tpu.memory_space<vmem>>, vector<1x256xf32>,
    %50 = vector.extract_strided_slice %35 {offsets = [3, 256], sizes = [1, 256], strides = [1, 1]} : vector<4x2048xf32> to vector<1x256xf32>
    %c1_17 = arith.constant 1 : index
    %c768_18 = arith.constant 768 : index
    %51 = vector.load %arg7[%c1_17, %c768_18] : memref<8x1024xf32, #tpu.memory_space<vmem>>, vector<1x256xf32>
    tpu.vector_store %arg7[%c1_17, %c768_18], %50 {strides = array<i32>} : memref<8x1024xf32, #tpu.memory_space<vmem>>, vector<1x256xf32>,
    %52 = vector.extract_strided_slice %35 {offsets = [0, 512], sizes = [1, 256], strides = [1, 1]} : vector<4x2048xf32> to vector<1x256xf32>
    %c2 = arith.constant 2 : index
    %c0_19 = arith.constant 0 : index
    %53 = vector.load %arg7[%c2, %c0_19] : memref<8x1024xf32, #tpu.memory_space<vmem>>, vector<1x256xf32>
    tpu.vector_store %arg7[%c2, %c0_19], %52 {strides = array<i32>} : memref<8x1024xf32, #tpu.memory_space<vmem>>, vector<1x256xf32>,
    %54 = vector.extract_strided_slice %35 {offsets = [1, 512], sizes = [1, 256], strides = [1, 1]} : vector<4x2048xf32> to vector<1x256xf32>
    %c2_20 = arith.constant 2 : index
    %c256_21 = arith.constant 256 : index
    %55 = vector.load %arg7[%c2_20, %c256_21] : memref<8x1024xf32, #tpu.memory_space<vmem>>, vector<1x256xf32>
    tpu.vector_store %arg7[%c2_20, %c256_21], %54 {strides = array<i32>} : memref<8x1024xf32, #tpu.memory_space<vmem>>, vector<1x256xf32>,
    %56 = vector.extract_strided_slice %35 {offsets = [2, 512], sizes = [1, 256], strides = [1, 1]} : vector<4x2048xf32> to vector<1x256xf32>
    %c2_22 = arith.constant 2 : index
    %c512_23 = arith.constant 512 : index
    %57 = vector.load %arg7[%c2_22, %c512_23] : memref<8x1024xf32, #tpu.memory_space<vmem>>, vector<1x256xf32>
    tpu.vector_store %arg7[%c2_22, %c512_23], %56 {strides = array<i32>} : memref<8x1024xf32, #tpu.memory_space<vmem>>, vector<1x256xf32>,
    %58 = vector.extract_strided_slice %35 {offsets = [3, 512], sizes = [1, 256], strides = [1, 1]} : vector<4x2048xf32> to vector<1x256xf32>
    %c2_24 = arith.constant 2 : index
    %c768_25 = arith.constant 768 : index
    %59 = vector.load %arg7[%c2_24, %c768_25] : memref<8x1024xf32, #tpu.memory_space<vmem>>, vector<1x256xf32>
    tpu.vector_store %arg7[%c2_24, %c768_25], %58 {strides = array<i32>} : memref<8x1024xf32, #tpu.memory_space<vmem>>, vector<1x256xf32>,
    %60 = vector.extract_strided_slice %35 {offsets = [0, 768], sizes = [1, 256], strides = [1, 1]} : vector<4x2048xf32> to vector<1x256xf32>
    %c3 = arith.constant 3 : index
    %c0_26 = arith.constant 0 : index
    %61 = vector.load %arg7[%c3, %c0_26] : memref<8x1024xf32, #tpu.memory_space<vmem>>, vector<1x256xf32>
    tpu.vector_store %arg7[%c3, %c0_26], %60 {strides = array<i32>} : memref<8x1024xf32, #tpu.memory_space<vmem>>, vector<1x256xf32>,
    %62 = vector.extract_strided_slice %35 {offsets = [1, 768], sizes = [1, 256], strides = [1, 1]} : vector<4x2048xf32> to vector<1x256xf32>
    %c3_27 = arith.constant 3 : index
    %c256_28 = arith.constant 256 : index
    %63 = vector.load %arg7[%c3_27, %c256_28] : memref<8x1024xf32, #tpu.memory_space<vmem>>, vector<1x256xf32>
    tpu.vector_store %arg7[%c3_27, %c256_28], %62 {strides = array<i32>} : memref<8x1024xf32, #tpu.memory_space<vmem>>, vector<1x256xf32>,
    %64 = vector.extract_strided_slice %35 {offsets = [2, 768], sizes = [1, 256], strides = [1, 1]} : vector<4x2048xf32> to vector<1x256xf32>
    %c3_29 = arith.constant 3 : index
    %c512_30 = arith.constant 512 : index
    %65 = vector.load %arg7[%c3_29, %c512_30] : memref<8x1024xf32, #tpu.memory_space<vmem>>, vector<1x256xf32>
    tpu.vector_store %arg7[%c3_29, %c512_30], %64 {strides = array<i32>} : memref<8x1024xf32, #tpu.memory_space<vmem>>, vector<1x256xf32>,
    %66 = vector.extract_strided_slice %35 {offsets = [3, 768], sizes = [1, 256], strides = [1, 1]} : vector<4x2048xf32> to vector<1x256xf32>
    %c3_31 = arith.constant 3 : index
    %c768_32 = arith.constant 768 : index
    %67 = vector.load %arg7[%c3_31, %c768_32] : memref<8x1024xf32, #tpu.memory_space<vmem>>, vector<1x256xf32>
    tpu.vector_store %arg7[%c3_31, %c768_32], %66 {strides = array<i32>} : memref<8x1024xf32, #tpu.memory_space<vmem>>, vector<1x256xf32>,
    %68 = vector.extract_strided_slice %35 {offsets = [0, 1024], sizes = [1, 256], strides = [1, 1]} : vector<4x2048xf32> to vector<1x256xf32>
    %c4 = arith.constant 4 : index
    %c0_33 = arith.constant 0 : index
    %69 = vector.load %arg7[%c4, %c0_33] : memref<8x1024xf32, #tpu.memory_space<vmem>>, vector<1x256xf32>
    tpu.vector_store %arg7[%c4, %c0_33], %68 {strides = array<i32>} : memref<8x1024xf32, #tpu.memory_space<vmem>>, vector<1x256xf32>,
    %70 = vector.extract_strided_slice %35 {offsets = [1, 1024], sizes = [1, 256], strides = [1, 1]} : vector<4x2048xf32> to vector<1x256xf32>
    %c4_34 = arith.constant 4 : index
    %c256_35 = arith.constant 256 : index
    %71 = vector.load %arg7[%c4_34, %c256_35] : memref<8x1024xf32, #tpu.memory_space<vmem>>, vector<1x256xf32>
    tpu.vector_store %arg7[%c4_34, %c256_35], %70 {strides = array<i32>} : memref<8x1024xf32, #tpu.memory_space<vmem>>, vector<1x256xf32>,
    %72 = vector.extract_strided_slice %35 {offsets = [2, 1024], sizes = [1, 256], strides = [1, 1]} : vector<4x2048xf32> to vector<1x256xf32>
    %c4_36 = arith.constant 4 : index
    %c512_37 = arith.constant 512 : index
    %73 = vector.load %arg7[%c4_36, %c512_37] : memref<8x1024xf32, #tpu.memory_space<vmem>>, vector<1x256xf32>
    tpu.vector_store %arg7[%c4_36, %c512_37], %72 {strides = array<i32>} : memref<8x1024xf32, #tpu.memory_space<vmem>>, vector<1x256xf32>,
    %74 = vector.extract_strided_slice %35 {offsets = [3, 1024], sizes = [1, 256], strides = [1, 1]} : vector<4x2048xf32> to vector<1x256xf32>
    %c4_38 = arith.constant 4 : index
    %c768_39 = arith.constant 768 : index
    %75 = vector.load %arg7[%c4_38, %c768_39] : memref<8x1024xf32, #tpu.memory_space<vmem>>, vector<1x256xf32>
    tpu.vector_store %arg7[%c4_38, %c768_39], %74 {strides = array<i32>} : memref<8x1024xf32, #tpu.memory_space<vmem>>, vector<1x256xf32>,
    %76 = vector.extract_strided_slice %35 {offsets = [0, 1280], sizes = [1, 256], strides = [1, 1]} : vector<4x2048xf32> to vector<1x256xf32>
    %c5 = arith.constant 5 : index
    %c0_40 = arith.constant 0 : index
    %77 = vector.load %arg7[%c5, %c0_40] : memref<8x1024xf32, #tpu.memory_space<vmem>>, vector<1x256xf32>
    tpu.vector_store %arg7[%c5, %c0_40], %76 {strides = array<i32>} : memref<8x1024xf32, #tpu.memory_space<vmem>>, vector<1x256xf32>,
    %78 = vector.extract_strided_slice %35 {offsets = [1, 1280], sizes = [1, 256], strides = [1, 1]} : vector<4x2048xf32> to vector<1x256xf32>
    %c5_41 = arith.constant 5 : index
    %c256_42 = arith.constant 256 : index
    %79 = vector.load %arg7[%c5_41, %c256_42] : memref<8x1024xf32, #tpu.memory_space<vmem>>, vector<1x256xf32>
    tpu.vector_store %arg7[%c5_41, %c256_42], %78 {strides = array<i32>} : memref<8x1024xf32, #tpu.memory_space<vmem>>, vector<1x256xf32>,
    %80 = vector.extract_strided_slice %35 {offsets = [2, 1280], sizes = [1, 256], strides = [1, 1]} : vector<4x2048xf32> to vector<1x256xf32>
    %c5_43 = arith.constant 5 : index
    %c512_44 = arith.constant 512 : index
    %81 = vector.load %arg7[%c5_43, %c512_44] : memref<8x1024xf32, #tpu.memory_space<vmem>>, vector<1x256xf32>
    tpu.vector_store %arg7[%c5_43, %c512_44], %80 {strides = array<i32>} : memref<8x1024xf32, #tpu.memory_space<vmem>>, vector<1x256xf32>,
    %82 = vector.extract_strided_slice %35 {offsets = [3, 1280], sizes = [1, 256], strides = [1, 1]} : vector<4x2048xf32> to vector<1x256xf32>
    %c5_45 = arith.constant 5 : index
    %c768_46 = arith.constant 768 : index
    %83 = vector.load %arg7[%c5_45, %c768_46] : memref<8x1024xf32, #tpu.memory_space<vmem>>, vector<1x256xf32>
    tpu.vector_store %arg7[%c5_45, %c768_46], %82 {strides = array<i32>} : memref<8x1024xf32, #tpu.memory_space<vmem>>, vector<1x256xf32>,
    %84 = vector.extract_strided_slice %35 {offsets = [0, 1536], sizes = [1, 256], strides = [1, 1]} : vector<4x2048xf32> to vector<1x256xf32>
    %c6 = arith.constant 6 : index
    %c0_47 = arith.constant 0 : index
    %85 = vector.load %arg7[%c6, %c0_47] : memref<8x1024xf32, #tpu.memory_space<vmem>>, vector<1x256xf32>
    tpu.vector_store %arg7[%c6, %c0_47], %84 {strides = array<i32>} : memref<8x1024xf32, #tpu.memory_space<vmem>>, vector<1x256xf32>,
    %86 = vector.extract_strided_slice %35 {offsets = [1, 1536], sizes = [1, 256], strides = [1, 1]} : vector<4x2048xf32> to vector<1x256xf32>
    %c6_48 = arith.constant 6 : index
    %c256_49 = arith.constant 256 : index
    %87 = vector.load %arg7[%c6_48, %c256_49] : memref<8x1024xf32, #tpu.memory_space<vmem>>, vector<1x256xf32>
    tpu.vector_store %arg7[%c6_48, %c256_49], %86 {strides = array<i32>} : memref<8x1024xf32, #tpu.memory_space<vmem>>, vector<1x256xf32>,
    %88 = vector.extract_strided_slice %35 {offsets = [2, 1536], sizes = [1, 256], strides = [1, 1]} : vector<4x2048xf32> to vector<1x256xf32>
    %c6_50 = arith.constant 6 : index
    %c512_51 = arith.constant 512 : index
    %89 = vector.load %arg7[%c6_50, %c512_51] : memref<8x1024xf32, #tpu.memory_space<vmem>>, vector<1x256xf32>
    tpu.vector_store %arg7[%c6_50, %c512_51], %88 {strides = array<i32>} : memref<8x1024xf32, #tpu.memory_space<vmem>>, vector<1x256xf32>,
    %90 = vector.extract_strided_slice %35 {offsets = [3, 1536], sizes = [1, 256], strides = [1, 1]} : vector<4x2048xf32> to vector<1x256xf32>
    %c6_52 = arith.constant 6 : index
    %c768_53 = arith.constant 768 : index
    %91 = vector.load %arg7[%c6_52, %c768_53] : memref<8x1024xf32, #tpu.memory_space<vmem>>, vector<1x256xf32>
    tpu.vector_store %arg7[%c6_52, %c768_53], %90 {strides = array<i32>} : memref<8x1024xf32, #tpu.memory_space<vmem>>, vector<1x256xf32>,
    %92 = vector.extract_strided_slice %35 {offsets = [0, 1792], sizes = [1, 256], strides = [1, 1]} : vector<4x2048xf32> to vector<1x256xf32>
    %c7 = arith.constant 7 : index
    %c0_54 = arith.constant 0 : index
    %93 = vector.load %arg7[%c7, %c0_54] : memref<8x1024xf32, #tpu.memory_space<vmem>>, vector<1x256xf32>
    tpu.vector_store %arg7[%c7, %c0_54], %92 {strides = array<i32>} : memref<8x1024xf32, #tpu.memory_space<vmem>>, vector<1x256xf32>,
    %94 = vector.extract_strided_slice %35 {offsets = [1, 1792], sizes = [1, 256], strides = [1, 1]} : vector<4x2048xf32> to vector<1x256xf32>
    %c7_55 = arith.constant 7 : index
    %c256_56 = arith.constant 256 : index
    %95 = vector.load %arg7[%c7_55, %c256_56] : memref<8x1024xf32, #tpu.memory_space<vmem>>, vector<1x256xf32>
    tpu.vector_store %arg7[%c7_55, %c256_56], %94 {strides = array<i32>} : memref<8x1024xf32, #tpu.memory_space<vmem>>, vector<1x256xf32>,
    %96 = vector.extract_strided_slice %35 {offsets = [2, 1792], sizes = [1, 256], strides = [1, 1]} : vector<4x2048xf32> to vector<1x256xf32>
    %c7_57 = arith.constant 7 : index
    %c512_58 = arith.constant 512 : index
    %97 = vector.load %arg7[%c7_57, %c512_58] : memref<8x1024xf32, #tpu.memory_space<vmem>>, vector<1x256xf32>
    tpu.vector_store %arg7[%c7_57, %c512_58], %96 {strides = array<i32>} : memref<8x1024xf32, #tpu.memory_space<vmem>>, vector<1x256xf32>,
    %98 = vector.extract_strided_slice %35 {offsets = [3, 1792], sizes = [1, 256], strides = [1, 1]} : vector<4x2048xf32> to vector<1x256xf32>
    %c7_59 = arith.constant 7 : index
    %c768_60 = arith.constant 768 : index
    %99 = vector.load %arg7[%c7_59, %c768_60] : memref<8x1024xf32, #tpu.memory_space<vmem>>, vector<1x256xf32>
    tpu.vector_store %arg7[%c7_59, %c768_60], %98 {strides = array<i32>} : memref<8x1024xf32, #tpu.memory_space<vmem>>, vector<1x256xf32>,
    %c0_61 = arith.constant 0 : index
    %c0_62 = arith.constant 0 : index
    %100 = vector.load %arg7[%c0_61, %c0_62] : memref<8x1024xf32, #tpu.memory_space<vmem>>, vector<8x1024xf32>
    %101 = arith.truncf %100 : vector<8x1024xf32> to vector<8x1024xbf16>
    %c0_63 = arith.constant 0 : index
    %c0_64 = arith.constant 0 : index
    %102 = vector.load %arg4[%c0_63, %c0_64] : memref<1024x128xbf16, #tpu.memory_space<vmem>>, vector<1024x128xbf16>
    %cst_65 = arith.constant dense<0.000000e+00> : vector<8x128xf32>
    %103 = tpu.matmul %101, %102, %cst_65 {dimension_numbers = #tpu.dot_dimension_numbers<[1], [0], [0], [1], [0, 0, 1, 1], [], []>} : vector<8x1024xbf16>, vector<1024x128xbf16>, vector<8x128xf32> -> vector<8x128xf32>
    %c0_66 = arith.constant 0 : index
    %c0_67 = arith.constant 0 : index
    %104 = vector.load %arg5[%c0_66, %c0_67] : memref<1x128xf32, #tpu.memory_space<vmem>>, vector<1x128xf32>
    %105 = vector.broadcast %104 : vector<1x128xf32> to vector<8x128xf32>
    %106 = arith.addf %103, %105 : vector<8x128xf32>
    %cst_68 = arith.constant dense<0xFF800000> : vector<8xf32>
    %107 = vector.multi_reduction <maximumf>, %106, %cst_68 [1] : vector<8x128xf32> to vector<8xf32>
    %108 = vector.shape_cast %107 : vector<8xf32> to vector<8x1xf32>
    %109 = vector.broadcast %108 : vector<8x1xf32> to vector<8x128xf32>
    %110 = arith.subf %106, %109 : vector<8x128xf32>
    %111 = math.exp %110 : vector<8x128xf32>
    %cst_69 = arith.constant dense<0.000000e+00> : vector<8xf32>
    %112 = vector.multi_reduction <add>, %111, %cst_69 [1] : vector<8x128xf32> to vector<8xf32>
    %113 = vector.shape_cast %112 : vector<8xf32> to vector<8x1xf32>
    %114 = math.log %113 : vector<8x1xf32>
    %115 = vector.broadcast %114 : vector<8x1xf32> to vector<8x128xf32>
    %116 = arith.subf %110, %115 : vector<8x128xf32>
    %c0_70 = arith.constant 0 : index
    %c0_71 = arith.constant 0 : index
    %117 = vector.load %arg6[%c0_70, %c0_71] : memref<8x128xf32, #tpu.memory_space<vmem>>, vector<8x128xf32>
    tpu.vector_store %arg6[%c0_70, %c0_71], %116 {strides = array<i32>} : memref<8x128xf32, #tpu.memory_space<vmem>>, vector<8x128xf32>,
    return
  }
  func.func @transform_0(%arg0: i32) -> (i32, i32) {
    %c0_i32 = arith.constant 0 : i32
    %c0_i32_0 = arith.constant 0 : i32
    return %c0_i32, %arg0 : i32, i32
  }
  func.func @transform_1(%arg0: i32) -> (i32, i32) {
    %c0_i32 = arith.constant 0 : i32
    %c0_i32_0 = arith.constant 0 : i32
    %c0_i32_1 = arith.constant 0 : i32
    return %c0_i32, %c0_i32_0 : i32, i32
  }
  func.func @transform_2(%arg0: i32) -> (i32, i32) {
    %c0_i32 = arith.constant 0 : i32
    %c0_i32_0 = arith.constant 0 : i32
    %c0_i32_1 = arith.constant 0 : i32
    return %c0_i32, %c0_i32_0 : i32, i32
  }
  func.func @transform_3(%arg0: i32) -> (i32, i32) {
    %c0_i32 = arith.constant 0 : i32
    %c0_i32_0 = arith.constant 0 : i32
    %c0_i32_1 = arith.constant 0 : i32
    return %c0_i32, %c0_i32_0 : i32, i32
  }
  func.func @transform_4(%arg0: i32) -> (i32, i32) {
    %c0_i32 = arith.constant 0 : i32
    %c0_i32_0 = arith.constant 0 : i32
    %c0_i32_1 = arith.constant 0 : i32
    return %c0_i32, %c0_i32_0 : i32, i32
  }
  func.func @transform_5(%arg0: i32) -> (i32, i32) {
    %c0_i32 = arith.constant 0 : i32
    %c0_i32_0 = arith.constant 0 : i32
    return %arg0, %c0_i32 : i32, i32
  }
}

</mosaic_0001>

<bundles_post_ra>
// kernel: hybrid_forward.1
= control target key start
LH: loop header
LB: loop body
LE: loop exit
PB: predicated region body
PF: predicated region fallthrough
CT: control target
= control target key end

     0   :  { %v5881_v6 = vmov 0.0   ;;  %v1797_v21 = vlaneseq  ;;  %v5882_v31 = vmov 683565275   ;;  %v5883_v33 = vmov 2475754826   ;;  %s7647_s0 = inlined_call_operand.vmem [shape: f32[4,2048], index: 0, kind: input, shape index: {}]   ;;  %s7648_s1 = inlined_call_operand.vmem [shape: f32[32,16], index: 1, kind: input, shape index: {}]   ;;  %s7649_s2 = inlined_call_operand.vmem [shape: f32[4,32], index: 2, kind: input, shape index: {}]   ;;  %s7650_s3 = inlined_call_operand.vmem [shape: bf16[1024,128], index: 3, kind: input, shape index: {}]   ;;  %s7651_s4 = inlined_call_operand.vmem [shape: f32[1,128], index: 4, kind: input, shape index: {}]   ;;  %s7652_s5 = inlined_call_operand.vmem [shape: f32[8,128], index: 5, kind: output, shape index: {}]  }
   0x1   :  { %v21_v0 = vld [vmem:[%s7647_s0] sm:$0xff]  ;;  %v22_v2 = vld [vmem:[%s7647_s0 + $0x8] sm:$0xff]  ;;  %3042 = vmatprep.mubr.f32.mxu0 %v5881_v6  ;;  %3131 = vmatprep.mubr.f32.mxu1 %v5881_v6  ;;  %v23_v13 = vld [vmem:[%s7647_s0 + $0x10] sm:$0xff]  ;;  %v5884_v35 = vmov 2131351028  }
   0x2   :  { %v5922_v1 = vmul.f32 0.5, %v21_v0  ;;  %v5927_v3 = vmul.f32 0.5, %v22_v2  ;;  %v5942_v19 = vmul.f32 0.5, %v23_v13  ;;  %v24_v20 = vld [vmem:[%s7647_s0 + $0x18] sm:$0xff]  ;;  %v5885_v37 = vmov 2102212464  }
   0x3   :  { %v5947_v26 = vmul.f32 0.5, %v24_v20  ;;  %v5886_v39 = vmov 920167782   ;;  %v5887_v46 = vmov 1326507024  }
   0x4   :  { %v37_v4 = vand.u32 2147483647, %v5922_v1  ;;  %v40_v5 = vand.u32 2139095040, %v5922_v1  ;;  %v140_v7 = vand.u32 2147483647, %v5927_v3  ;;  %v143_v10 = vand.u32 2139095040, %v5927_v3 }
   0x5   :  { %v246_v29 = vand.u32 2139095040, %v5942_v19  ;;  %vm39_vm13 = vcmp.lt.s32.totalorder %v5922_v1, 0 }
   0x6   :  { %v41_v8 = vshrl.u32 %v40_v5, 23  ;;  %v44_v9 = vand.u32 8388607, %v37_v4  ;;  %v147_v11 = vand.u32 8388607, %v140_v7  ;;  %v144_v14 = vshrl.u32 %v143_v10, 23 }
   0x7   :  { %vm6048_vm14 = vcmp.le.f32.partialorder %v37_v4, 0.7853982 }
   0x8   :  { %v5384_v12 = vadd.s32 4294967169, %v41_v8  ;;  %v45_v16 = vor.u32 8388608, %v44_v9  ;;  %v5388_v17 = vadd.s32 4294967169, %v144_v14  ;;  %v148_v18 = vor.u32 8388608, %v147_v11 }
   0xa   :  { %v47_v15 = vadd.s32 1, %v5384_v12  ;;  %v150_v23 = vadd.s32 1, %v5388_v17  ;;  %v5949_v27 = vshll.u32 %v45_v16, 8  ;;  %v5951_v28 = vshll.u32 %v148_v18, 8 }
   0xc   :  { %vm48_vm0 = vcmp.gt.s32.totalorder %v47_v15, 0  ;;  %vm151_vm1 = vcmp.gt.s32.totalorder %v150_v23, 0 }
   0xd   :  { %v49_v22 = vsel %vm48_vm0, %v47_v15, 0  ;;  %v152_v51 = vsel %vm151_vm1, %v150_v23, 0  ;;  %vm142_vm0 = vcmp.lt.s32.totalorder %v5927_v3, 0 }
   0xe   :  { %v50_v24 = vshrl.u32 %v49_v22, 5  ;;  %v51_v25 = vand.u32 31, %v49_v22  ;;  %v153_v54 = vshrl.u32 %v152_v51, 5  ;;  %v154_v55 = vand.u32 31, %v152_v51 }
  0x10   :  { %v52_v30 = vsub.s32 32, %v51_v25  ;;  %v54_v32 = vshll.u32 %v5882_v31, %v51_v25  ;;  %v57_v34 = vshll.u32 %v5883_v33, %v51_v25  ;;  %v60_v36 = vshll.u32 %v5884_v35, %v51_v25 }
  0x11   :  { %v63_v38 = vshll.u32 %v5885_v37, %v51_v25  ;;  %v66_v40 = vshll.u32 %v5886_v39, %v51_v25  ;;  %vm69_vm2 = vcmp.lt.s32.totalorder %v50_v24, 1  ;;  %vm70_vm3 = vcmp.lt.s32.totalorder %v50_v24, 2 }
  0x12   :  { %v53_v41 = vshrl.u32 %v5882_v31, %v52_v30  ;;  %v55_v42 = vshrl.u32 %v5883_v33, %v52_v30  ;;  %v58_v43 = vshrl.u32 %v5884_v35, %v52_v30  ;;  %v61_v44 = vshrl.u32 %v5885_v37, %v52_v30 }
  0x13   :  { %v64_v45 = vshrl.u32 %v5886_v39, %v52_v30  ;;  %v67_v47 = vshrl.u32 %v5887_v46, %v52_v30  ;;  %vm71_vm4 = vcmp.lt.s32.totalorder %v50_v24, 3  ;;  %vm72_vm5 = vcmp.lt.s32.totalorder %v50_v24, 4 }
  0x14   :  { %v56_v48 = vor.u32 %v55_v42, %v54_v32  ;;  %v59_v49 = vor.u32 %v58_v43, %v57_v34  ;;  %v62_v50 = vor.u32 %v61_v44, %v60_v36  ;;  %v155_v63 = vsub.s32 32, %v154_v55 }
  0x15   :  { %v65_v52 = vor.u32 %v64_v45, %v63_v38  ;;  %v68_v53 = vor.u32 %v67_v47, %v66_v40  ;;  %v157_v8 = vshll.u32 %v5882_v31, %v154_v55  ;;  %v160_v18 = vshll.u32 %v5883_v33, %v154_v55 }
  0x16   :  { %v73_v56 = vsel %vm69_vm2, %v53_v41, %v56_v48  ;;  %v74_v57 = vsel %vm72_vm5, %v62_v50, 2102212464  ;;  %v77_v58 = vsel %vm69_vm2, %v56_v48, %v59_v49  ;;  %v81_v59 = vsel %vm69_vm2, %v59_v49, %v62_v50 }
  0x17   :  { %v75_v60 = vsel %vm71_vm4, %v59_v49, %v74_v57  ;;  %v78_v61 = vsel %vm72_vm5, %v65_v52, 920167782  ;;  %v82_v62 = vsel %vm72_vm5, %v68_v53, 1326507024  ;;  %v156_v12 = vshrl.u32 %v5882_v31, %v155_v63 }
  0x18   :  { %v76_v0 = vsel %vm70_vm3, %v73_v56, %v75_v60  ;;  %v79_v2 = vsel %vm71_vm4, %v62_v50, %v78_v61  ;;  %v83_v5 = vsel %vm71_vm4, %v65_v52, %v82_v62  ;;  %v158_v17 = vshrl.u32 %v5883_v33, %v155_v63 }
  0x19   :  { %v80_v9 = vsel %vm70_vm3, %v77_v58, %v79_v2  ;;  %v84_v10 = vsel %vm70_vm3, %v81_v59, %v83_v5  ;;  %v92_v11 = vmul.u32 %v5949_v27, %v76_v0  ;;  %v161_v20 = vshrl.u32 %v5884_v35, %v155_v63 }
  0x1a   :  { %v5979_v13 = vmul.u32.u64.low %v5949_v27, %v84_v10  ;;  %v5980_v14 = vmul.u32.u64.high %v5949_v27, %v84_v10, %v5979_v13  ;;  %v5983_v15 = vmul.u32.u64.low %v5949_v27, %v80_v9  ;;  %v5984_v16 = vmul.u32.u64.high %v5949_v27, %v80_v9, %v5983_v15 }
  0x1b   :  { %v163_v22 = vshll.u32 %v5884_v35, %v154_v55  ;;  %v164_v23 = vshrl.u32 %v5885_v37, %v155_v63  ;;  %v166_v24 = vshll.u32 %v5885_v37, %v154_v55  ;;  %v167_v25 = vshrl.u32 %v5886_v39, %v155_v63 }
  0x1c   :  { %v169_v30 = vshll.u32 %v5886_v39, %v154_v55  ;;  %v159_v32 = vor.u32 %v158_v17, %v157_v8  ;;  %v162_v27 = vor.u32 %v161_v20, %v160_v18  ;;  %v170_v34 = vshrl.u32 %v5887_v46, %v155_v63 }
  0x1d   :  { %vm172_vm6 = vcmp.lt.s32.totalorder %v153_v54, 1  ;;  %vm94_vm7 = vc.u32 %v5980_v14, %v5983_v15  ;;  %v95_v36 = vadd.s32 1, %v5984_v16  ;;  %v165_v38 = vor.u32 %v164_v23, %v163_v22 }
  0x1e   :  { %v247_v40 = vshrl.u32 %v246_v29, 23  ;;  %v168_v41 = vor.u32 %v167_v25, %v166_v24  ;;  %v171_v42 = vor.u32 %v170_v34, %v169_v30  ;;  %vm173_vm8 = vcmp.lt.s32.totalorder %v153_v54, 2 }
  0x1f   :  { %vm174_vm9 = vcmp.lt.s32.totalorder %v153_v54, 3  ;;  %v96_v43 = vsel %vm94_vm7, %v95_v36, %v5984_v16  ;;  %vm175_vm10 = vcmp.lt.s32.totalorder %v153_v54, 4  ;;  %v176_v44 = vsel %vm172_vm6, %v156_v12, %v159_v32 }
  0x20   :  { %v180_v45 = vsel %vm172_vm6, %v159_v32, %v162_v27  ;;  %v97_v47 = vadd.s32 %v96_v43, %v92_v11  ;;  %v177_v48 = vsel %vm175_vm10, %v165_v38, 2102212464  ;;  %v181_v49 = vsel %vm175_vm10, %v168_v41, 920167782  ;;  %v25_v32 = vld [vmem:[%s7647_s0 + $0x20] sm:$0xff] }
  0x21   :  { %v184_v50 = vsel %vm172_vm6, %v162_v27, %v165_v38  ;;  %v178_v51 = vsel %vm174_vm9, %v162_v27, %v177_v48  ;;  %v182_v52 = vsel %vm174_vm9, %v165_v38, %v181_v49  ;;  %v185_v53 = vsel %vm175_vm10, %v171_v42, 1326507024 }
  0x22   :  { %v5392_v29 = vadd.s32 4294967169, %v247_v40  ;;  %v98_v55 = vadd.s32 536870912, %v97_v47  ;;  %v183_v56 = vsel %vm173_vm8, %v180_v45, %v182_v52  ;;  %v186_v57 = vsel %vm174_vm9, %v168_v41, %v185_v53 }
  0x23   :  { %v243_v58 = vand.u32 2147483647, %v5942_v19  ;;  %v179_v59 = vsel %vm173_vm8, %v176_v44, %v178_v51  ;;  %v187_v60 = vsel %vm173_vm8, %v184_v50, %v186_v57  ;;  %v6022_v54 = vshrl.u32 %v1797_v21, 7 }
  0x24   :  { %v6010_v61 = vmul.u32.u64.low %v5951_v28, %v183_v56  ;;  %v6011_v62 = vmul.u32.u64.high %v5951_v28, %v183_v56, %v6010_v61  ;;  %v99_v63 = vshrl.u32 %v98_v55, 30  ;;  %v253_v5 = vadd.s32 1, %v5392_v29 }
  0x25   :  { %v6015_v0 = vmul.u32.u64.low %v5951_v28, %v187_v60  ;;  %v6016_v2 = vmul.u32.u64.high %v5951_v28, %v187_v60, %v6015_v0  ;;  %v195_v9 = vmul.u32 %v5951_v28, %v179_v59  ;;  %v250_v10 = vand.u32 8388607, %v243_v58 }
  0x26   :  { %v100_v8 = vshll.u32 %v99_v63, 30  ;;  %vm254_vm11 = vcmp.gt.s32.totalorder %v253_v5, 0  ;;  %v198_v11 = vadd.s32 1, %v6011_v62  ;;  %v349_v13 = vand.u32 2139095040, %v5947_v26 }
  0x27   :  { %v255_v12 = vsel %vm254_vm11, %v253_v5, 0  ;;  %v123_v17 = vsub.s32 4, %v99_v63  ;;  %vm197_vm12 = vc.u32 %v6016_v2, %v6010_v61  ;;  %v251_v23 = vor.u32 8388608, %v250_v10 }
  0x28   :  { %v6026_v16 = vsub.s32 %v97_v47, %v100_v8  ;;  %v199_v28 = vsel %vm197_vm12, %v198_v11, %v6011_v62  ;;  %v257_v18 = vand.u32 31, %v255_v12  ;;  %v6034_v24 = vsub.s32 6, %v6022_v54 }
  0x29   :  { %v200_v22 = vadd.s32 %v199_v28, %v195_v9  ;;  %v346_v25 = vand.u32 2147483647, %v5947_v26  ;;  %v350_v30 = vshrl.u32 %v349_v13, 23  ;;  %v124_v34 = vsel %vm39_vm13, %v123_v17, %v99_v63 }
  0x2a   :  { %v103_v20 = vsub.s32 0, %v6026_v16  ;;  %v6044_v36 = vsub.s32 0, %v6022_v54  ;;  %v258_v38 = vsub.s32 32, %v257_v18  ;;  %v6053_v41 = vsub.s32 4, %v6022_v54 }
  0x2b   :  { %v201_v42 = vadd.s32 536870912, %v200_v22  ;;  %v6056_v43 = vsub.s32 2, %v6022_v54  ;;  %v93_v44 = vadd.s32 %v5983_v15, %v5980_v14  ;;  %v6060_v47 = vshll.u32 %v251_v23, 8 }
  0x2c   :  { %v5385_v27 = vmin.u32 %v103_v20, %v6026_v16  ;;  %v6062_v48 = vmul.f32 0.5, %v25_v32  ;;  %v6066_v4 = vsel %vm6048_vm14, 0, %v124_v34  ;;  %v6068_v50 = vadd.s32 4294967169, %v350_v30 }
  0x2d   :  { %v202_v49 = vshrl.u32 %v201_v42, 30  ;;  %v6072_v51 = vand.u32 8388607, %v346_v25  ;;  %v260_v53 = vshll.u32 %v5882_v31, %v257_v18  ;;  %v261_v14 = vshrl.u32 %v5883_v33, %v258_v38 }
  0x2e   :  { %v105_v45 = vclz %v5385_v27  ;;  %v263_v15 = vshll.u32 %v5883_v33, %v257_v18  ;;  %v264_v55 = vshrl.u32 %v5884_v35, %v258_v38  ;;  %v269_v56 = vshll.u32 %v5885_v37, %v257_v18 }
  0x2f   :  { %v203_v29 = vshll.u32 %v202_v49, 30  ;;  %v270_v57 = vshrl.u32 %v5886_v39, %v258_v38  ;;  %v256_v59 = vshrl.u32 %v255_v12, 5  ;;  %v259_v60 = vshrl.u32 %v5882_v31, %v258_v38 }
  0x30   :  { %v5386_v52 = vadd.s32 4294967294, %v105_v45  ;;  %v266_v62 = vshll.u32 %v5884_v35, %v257_v18  ;;  %v267_v5 = vshrl.u32 %v5885_v37, %v258_v38  ;;  %v272_v8 = vshll.u32 %v5886_v39, %v257_v18 }
  0x31   :  { %v6083_v0 = vsub.s32 %v200_v22, %v203_v29  ;;  %v273_v13 = vshrl.u32 %v5887_v46, %v258_v38  ;;  %v262_v17 = vor.u32 %v261_v14, %v260_v53  ;;  %v265_v28 = vor.u32 %v264_v55, %v263_v15 }
  0x32   :  { %vm5387_vm15 = vcmp.lt.s32.totalorder %v5386_v52, 0  ;;  %v271_v20 = vor.u32 %v270_v57, %v269_v56  ;;  %vm275_vm1 = vcmp.lt.s32.totalorder %v256_v59, 1  ;;  %vm278_vm2 = vcmp.lt.s32.totalorder %v256_v59, 4 }
  0x33   :  { %v108_v63 = vsel %vm5387_vm15, 0, %v5386_v52  ;;  %v206_v12 = vsub.s32 0, %v6083_v0  ;;  %v226_v32 = vsub.s32 4, %v202_v49  ;;  %v268_v27 = vor.u32 %v267_v5, %v266_v62 }
  0x34   :  { %v109_v9 = vsub.s32 32, %v108_v63  ;;  %v110_v10 = vshll.u32 %v6026_v16, %v108_v63  ;;  %v113_v11 = vsub.s32 4294967266, %v108_v63  ;;  %vm276_vm3 = vcmp.lt.s32.totalorder %v256_v59, 2 }
  0x35   :  { %v5389_v22 = vmin.u32 %v206_v12, %v6083_v0  ;;  %vm6093_vm4 = vcmp.le.f32.partialorder %v140_v7, 0.7853982  ;;  %v274_v38 = vor.u32 %v273_v13, %v272_v8  ;;  %vm277_vm5 = vcmp.lt.s32.totalorder %v256_v59, 3 }
  0x36   :  { %v111_v23 = vshrl.u32 %v93_v44, %v109_v9  ;;  %v114_v30 = vadd.s32 127, %v113_v11  ;;  %v280_v44 = vsel %vm278_vm2, %v268_v27, 2102212464  ;;  %v283_v45 = vsel %vm275_vm1, %v262_v17, %v265_v28 }
  0x37   :  { %v208_v42 = vclz %v5389_v22  ;;  %v284_v52 = vsel %vm278_vm2, %v271_v20, 920167782  ;;  %v954_v15 = vadd.s32 3, %v6066_v4  ;;  %v196_v29 = vadd.s32 %v6010_v61, %v6016_v2 }
  0x38   :  { %v112_v18 = vor.u32 %v111_v23, %v110_v10  ;;  %v115_v34 = vshll.u32 %v114_v30, 23  ;;  %v279_v55 = vsel %vm275_vm1, %v259_v60, %v262_v17  ;;  %v281_v56 = vsel %vm277_vm5, %v265_v28, %v280_v44 }
  0x39   :  { %v5390_v7 = vadd.s32 4294967294, %v208_v42  ;;  %v285_v57 = vsel %vm277_vm5, %v268_v27, %v284_v52  ;;  %v227_v63 = vsel %vm142_vm0, %v226_v32, %v202_v49  ;;  %v287_v8 = vsel %vm275_vm1, %v265_v28, %v268_v27 }
  0x3a   :  { %v116_v53 = vor.u32 4788187, %v115_v34  ;;  %v119_v14 = vcvt.s32.f32 %v112_v18  ;;  %v286_v5 = vsel %vm276_vm3, %v283_v45, %v285_v57  ;;  %v288_v9 = vsel %vm278_vm2, %v274_v38, 1326507024 }
  0x3b   :  { %vm5391_vm6 = vcmp.lt.s32.totalorder %v5390_v7, 0  ;;  %v6112_v61 = vmul.u32.u64.low %v6060_v47, %v286_v5  ;;  %v6113_v2 = vmul.u32.u64.high %v6060_v47, %v286_v5, %v6112_v61  ;;  %v282_v11 = vsel %vm276_vm3, %v279_v55, %v281_v56 }
  0x3c   :  { %v117_v62 = vand.u32 2147483647, %v116_v53  ;;  %v211_v10 = vsel %vm5391_vm6, 0, %v5390_v7  ;;  %v289_v13 = vsel %vm277_vm5, %v271_v20, %v288_v9  ;;  %v356_v32 = vadd.s32 1, %v6068_v50 }
  0x3d   :  { %v212_v12 = vsub.s32 32, %v211_v10  ;;  %v213_v49 = vshll.u32 %v6083_v0, %v211_v10  ;;  %v216_v17 = vsub.s32 4294967266, %v211_v10  ;;  %v290_v28 = vsel %vm276_vm3, %v287_v8, %v289_v13 }
  0x3e   :  { %v120_v60 = vmul.f32 %v119_v14, %v117_v62  ;;  %v6121_v30 = vmul.u32.u64.low %v6060_v47, %v290_v28  ;;  %v6122_v22 = vmul.u32.u64.high %v6060_v47, %v290_v28, %v6121_v30  ;;  %v229_v34 = vsel %vm6093_vm4, 0, %v227_v63 }
  0x3f   :  { %v214_v27 = vshrl.u32 %v196_v29, %v212_v12  ;;  %v217_v18 = vadd.s32 127, %v216_v17  ;;  %v301_v20 = vadd.s32 1, %v6113_v2  ;;  %v6131_v59 = vand.u32 3, %v6066_v4 }
  0x40   :  { %v121_v23 = vxor.u32 2147483648, %v120_v60  ;;  %v298_v38 = vmul.u32 %v6060_v47, %v282_v11  ;;  %vm357_vm7 = vcmp.gt.s32.totalorder %v356_v32, 0  ;;  %v6137_v52 = vand.u32 3, %v954_v15 }
  0x41   :  { %v215_v42 = vor.u32 %v214_v27, %v213_v49  ;;  %v218_v44 = vshll.u32 %v217_v18, 23  ;;  %v358_v45 = vsel %vm357_vm7, %v356_v32, 0  ;;  %v1058_v53 = vadd.s32 3, %v229_v34 }
  0x42   :  { %v122_v0 = vsel %vm39_vm13, %v121_v23, %v120_v60  ;;  %vm300_vm8 = vc.u32 %v6122_v22, %v6112_v61  ;;  %v6142_v7 = vshrl.u32 %v358_v45, 5  ;;  %v360_v40 = vand.u32 31, %v358_v45 }
  0x43   :  { %v125_v50 = vsel %vm6048_vm14, %v5922_v1, %v122_v0  ;;  %v219_v4 = vor.u32 4788187, %v218_v44  ;;  %v222_v14 = vcvt.s32.f32 %v215_v42  ;;  %v302_v47 = vsel %vm300_vm8, %v301_v20, %v6113_v2 }
  0x44   :  { %5841 = vcosq.f32 %v125_v50  ;;  %v303_v29 = vadd.s32 %v302_v47, %v298_v38  ;;  %v452_v55 = vand.u32 2139095040, %v6062_v48  ;;  %vm132_vm9 = vcmp.eq.s32.totalorder %v6131_v59, 0 }
  0x45   :  { %5843 = vsinq.f32 %v125_v50  ;;  %vm135_vm10 = vcmp.eq.s32.totalorder %v6131_v59, 2  ;;  %v220_v15 = vand.u32 2147483647, %v219_v4  ;;  %v354_v56 = vor.u32 8388608, %v6072_v51 }
  0x46   :  { %vm131_vm11 = vcmp.lt.s32.totalorder %v6131_v59, 2  ;;  %vm956_vm12 = vcmp.lt.s32.totalorder %v6137_v52, 2  ;;  %vm957_vm13 = vcmp.eq.s32.totalorder %v6137_v52, 0  ;;  %v304_v57 = vadd.s32 536870912, %v303_v29 }
  0x47   :  { %v361_v62 = vsub.s32 32, %v360_v40  ;;  %vm129_vm14 = vweird.f32 %v5922_v1  ;;  %vm960_vm15 = vcmp.eq.s32.totalorder %v6137_v52, 2  ;;  %v223_v63 = vmul.f32 %v222_v14, %v220_v15 }
  0x48   :  { %v6153_v5 = vand.u32 3, %v229_v34  ;;  %v6155_v8 = vand.u32 3, %v1058_v53  ;;  %v6157_v9 = vshrl.u32 %v304_v57, 30  ;;  %v369_v2 = vshll.u32 %v5884_v35, %v360_v40 }
  0x49   :  { %vm378_vm1 = vcmp.lt.s32.totalorder %v6142_v7, 1  ;;  %vm380_vm2 = vcmp.lt.s32.totalorder %v6142_v7, 3  ;;  %v224_v60 = vxor.u32 2147483648, %v223_v63  ;;  %v363_v10 = vshll.u32 %v5882_v31, %v360_v40 }
  0x4a   :  { %v370_v11 = vshrl.u32 %v5885_v37, %v361_v62  ;;  %vm381_vm3 = vcmp.lt.s32.totalorder %v6142_v7, 4  ;;  %v306_v13 = vshll.u32 %v6157_v9, 30  ;;  %v366_v12 = vshll.u32 %v5883_v33, %v360_v40 }
  0x4b   :  { %v372_v49 = vshll.u32 %v5885_v37, %v360_v40  ;;  %v375_v17 = vshll.u32 %v5886_v39, %v360_v40  ;;  %v225_v28 = vsel %vm142_vm0, %v224_v60, %v223_v63  ;;  %vm7653_vm5 = vcmp.lt.s32.totalorder %v5942_v19, 0 }
  0x4c   :  { %v362_v23 = vshrl.u32 %v5882_v31, %v361_v62  ;;  %v364_v30 = vshrl.u32 %v5883_v33, %v361_v62  ;;  %v367_v32 = vshrl.u32 %v5884_v35, %v361_v62  ;;  %v228_v18 = vsel %vm6093_vm4, %v5927_v3, %v225_v28 }
  0x4d   :  { %v6178_v34 = vsub.s32 %v303_v29, %v306_v13  ;;  %v371_v20 = vor.u32 %v370_v11, %v369_v2  ;;  %v373_v0 = vshrl.u32 %v5886_v39, %v361_v62  ;;  %5845 = vcosq.f32 %v228_v18 }
  0x4e   :  { %v5842_v27 = vpop.eup %5841  ;;  %v329_v42 = vsub.s32 4, %v6157_v9  ;;  %v376_v44 = vshrl.u32 %v5887_v46, %v361_v62  ;;  %5847 = vsinq.f32 %v228_v18  ;;  %v365_v47 = vor.u32 %v364_v30, %v363_v10 }
  0x4f   :  { %v5844_v38 = vpop.eup %5843  ;;  %v136_v50 = vxor.u32 2147483648, %v5842_v27  ;;  %v309_v53 = vsub.s32 0, %v6178_v34  ;;  %v383_v16 = vsel %vm381_vm3, %v371_v20, 2102212464  ;;  %v368_v29 = vor.u32 %v367_v32, %v366_v12 }
  0x50   :  { %v133_v45 = vxor.u32 2147483648, %v5844_v38  ;;  %vm2141_vm0 = vcmask 1040384   ;;  %vm238_vm4 = vcmp.eq.s32.totalorder %v6153_v5, 2  ;;  %vm1064_vm6 = vcmp.eq.s32.totalorder %v6155_v8, 2 }
  0x51   :  { %v137_v4 = vsel %vm135_vm10, %v136_v50, %v5844_v38  ;;  %v962_v14 = vsel %vm960_vm15, %v136_v50, %v5844_v38  ;;  %v5393_v57 = vmin.u32 %v309_v53, %v6178_v34  ;;  %v374_v62 = vor.u32 %v373_v0, %v372_v49 }
  0x52   :  { %v134_v40 = vsel %vm132_vm9, %v5842_v27, %v133_v45  ;;  %v959_v15 = vsel %vm957_vm13, %v5842_v27, %v133_v45  ;;  %vm2158_vm7 = vcmask 1041408   ;;  %v382_v60 = vsel %vm378_vm1, %v362_v23, %v365_v47 }
  0x53   :  { %v138_v63 = vsel %vm131_vm11, %v134_v40, %v137_v4  ;;  %v963_v2 = vsel %vm956_vm12, %v959_v15, %v962_v14  ;;  %v384_v10 = vsel %vm380_vm2, %v368_v29, %v383_v16  ;;  %vm2175_vm8 = vcmask 1042432  }
  0x54   :  { %v139_v11 = vsel %vm129_vm14, nan, %v138_v63  ;;  %v964_v13 = vsel %vm129_vm14, nan, %v963_v2  ;;  %vm235_vm9 = vcmp.eq.s32.totalorder %v6153_v5, 0  ;;  %vm1061_vm10 = vcmp.eq.s32.totalorder %v6155_v8, 0 }
  0x55   :  { %v311_v59 = vclz %v5393_v57  ;;  %v377_v52 = vor.u32 %v376_v44, %v375_v17  ;;  %v1701_v12 = vrot.slane %v139_v11, 5  ;;  %v1741_v49 = vrot.slane %v964_v13, 5 }
  0x56   :  { %vm234_vm11 = vcmp.lt.s32.totalorder %v6153_v5, 2  ;;  %vm379_vm12 = vcmp.lt.s32.totalorder %v6142_v7, 2  ;;  %v6215_v28 = vshll.u32 %v354_v56, 8  ;;  %vm232_vm13 = vweird.f32 %v5927_v3  ;;  %v26_v7 = vld [vmem:[%s7647_s0 + $0x28] sm:$0xff] }
  0x57   :  { %vm1060_vm14 = vcmp.lt.s32.totalorder %v6155_v8, 2  ;;  %v6221_v1 = vadd.s32 %v6112_v61, %v6122_v22  ;;  %v5394_v23 = vadd.s32 4294967294, %v311_v59  ;;  %v6226_v17 = vsel %vm7653_vm5, %v329_v42, %v6157_v9  ;;  %v5846_v18 = vpop.eup %5845 }
  0x58   :  { %v6230_v30 = vsel %vm379_vm12, %v382_v60, %v384_v10  ;;  %v1702_v51 = vrot.slane %v1701_v12, 4  ;;  %v1742_v56 = vrot.slane %v1741_v49, 4  ;;  %v386_v32 = vsel %vm378_vm1, %v365_v47, %v368_v29  ;;  %v5848_v44 = vpop.eup %5847 }
  0x59   :  { %v387_v27 = vsel %vm381_vm3, %v374_v62, 920167782  ;;  %vm5395_vm15 = vcmp.lt.s32.totalorder %v5394_v23, 0  ;;  %v6240_v22 = vsel %vm378_vm1, %v368_v29, %v371_v20  ;;  %v391_v9 = vsel %vm381_vm3, %v377_v52, 1326507024 }
  0x5a   :  { %v388_v61 = vsel %vm380_vm2, %v371_v20, %v387_v27  ;;  %v1725_v0 = vmul.f32 %v1702_v51, %v139_v11  ;;  %v1765_v38 = vmul.f32 %v1742_v56, %v139_v11  ;;  %v6244_v50 = vmul.f32 %v1702_v51, %v964_v13 }
  0x5b   :  { %v6246_v42 = vmul.f32 %v1742_v56, %v964_v13  ;;  %vm7654_vm5 = vcmask 1043456   ;;  %v239_v45 = vxor.u32 2147483648, %v5846_v18  ;;  %v6248_v53 = vsel %vm5395_vm15, 0, %v5394_v23 }
  0x5c   :  { %v6252_v16 = vsel %vm379_vm12, %v386_v32, %v388_v61  ;;  %v6256_v20 = vsel %vm380_vm2, %v374_v62, %v391_v9  ;;  %v1804_v4 = vrot.slane %v1725_v0, %v6034_v24  ;;  %v1892_v14 = vrot.slane %v1765_v38, %v6034_v24 }
  0x5d   :  { %v1980_v47 = vrot.slane %v6244_v50, %v6034_v24  ;;  %v2068_v29 = vrot.slane %v6246_v42, %v6034_v24  ;;  %v2199_v40 = vrot.slane %v1725_v0, %v6053_v41  ;;  %v2359_v15 = vrot.slane %v1765_v38, %v6053_v41 }
  0x5e   :  { %v2519_v57 = vrot.slane %v6244_v50, %v6053_v41  ;;  %v2679_v62 = vrot.slane %v6246_v42, %v6053_v41  ;;  %v2143_v63 = vsel %vm2141_vm0, %v1804_v4, %v1892_v14  ;;  %v236_v2 = vxor.u32 2147483648, %v5848_v44 }
  0x5f   :  { %v240_v60 = vsel %vm238_vm4, %v239_v45, %v5848_v44  ;;  %v1066_v10 = vsel %vm1064_vm6, %v239_v45, %v5848_v44  ;;  %v2160_v11 = vsel %vm2158_vm7, %v2143_v63, %v1980_v47  ;;  %v2279_v13 = vrot.slane %v2199_v40, %v6044_v36 }
  0x60   :  { %v2439_v59 = vrot.slane %v2359_v15, %v6044_v36  ;;  %v2599_v52 = vrot.slane %v2519_v57, %v6044_v36  ;;  %v2177_v12 = vsel %vm2175_vm8, %v2160_v11, %v2068_v29  ;;  %v2759_v49 = vrot.slane %v2679_v62, %v6044_v36 }
  0x61   :  { %v237_v23 = vsel %vm235_vm9, %v5846_v18, %v236_v2  ;;  %v1063_v51 = vsel %vm1061_vm10, %v5846_v18, %v236_v2  ;;  %v2337_v56 = vmul.f32 %v2279_v13, %v2177_v12  ;;  %v1800_v4 = vrot.slane %v1725_v0, %v6056_v43 }
  0x62   :  { %v2497_v32 = vmul.f32 %v2439_v59, %v2177_v12  ;;  %v2657_v27 = vmul.f32 %v2599_v52, %v2177_v12  ;;  %v241_v61 = vsel %vm234_vm11, %v237_v23, %v240_v60  ;;  %v2817_v9 = vmul.f32 %v2759_v49, %v2177_v12 }
  0x63   :  { %v242_v44 = vsel %vm232_vm13, nan, %v241_v61  ;;  %v1067_v45 = vsel %vm1060_vm14, %v1063_v51, %v1066_v10  ;;  %v1888_v29 = vrot.slane %v1765_v38, %v6056_v43  ;;  %v1976_v5 = vrot.slane %v6244_v50, %v6056_v43 }
  0x64   :  { %v2849_v14 = vrot.slane %v2497_v32, 4  ;;  %v1068_v47 = vsel %vm232_vm13, nan, %v1067_v45  ;;  %v1703_v18 = vrot.slane %v242_v44, 5  ;;  %v2897_v40 = vrot.slane %v2817_v9, 4 }
  0x65   :  { %v1743_v15 = vrot.slane %v1068_v47, 5  ;;  %v2064_v57 = vrot.slane %v6246_v42, %v6056_v43  ;;  %v2142_v63 = vsel %vm2141_vm0, %v1800_v4, %v1888_v29  ;;  %v2195_v2 = vrot.slane %v1725_v0, %v6044_v36 }
  0x66   :  { %v2930_v8 = vsel %vm7654_vm5, %v2337_v56, %v2849_v14  ;;  %v1704_v62 = vrot.slane %v1703_v18, 4  ;;  %v2946_v3 = vsel %vm7654_vm5, %v2657_v27, %v2897_v40  ;;  %v2159_v10 = vsel %vm2158_vm7, %v2142_v63, %v1976_v5 }
  0x67   :  { %v1744_v60 = vrot.slane %v1743_v15, 4  ;;  %v2355_v11 = vrot.slane %v1765_v38, %v6044_v36  ;;  %v5641_v13 = vpack.c.bf16 %v2946_v3, %v2930_v8  ;;  %v2176_v12 = vsel %vm2175_vm8, %v2159_v10, %v2064_v57 }
  0x68   :  { %v1726_v59 = vmul.f32 %v1704_v62, %v242_v44  ;;  %v1774_v52 = vmul.f32 %v1704_v62, %v1068_v47  ;;  %v2275_v51 = vrot.slane %v2195_v2, %v6044_v36  ;;  %v2515_v5 = vrot.slane %v6244_v50, %v6044_v36 }
  0x69   :  { %v1766_v49 = vmul.f32 %v1744_v60, %v242_v44  ;;  %v6306_v23 = vmul.f32 %v1744_v60, %v1068_v47  ;;  %v2435_v56 = vrot.slane %v2355_v11, %v6044_v36  ;;  %5642 = vmatprep.subr.bf16.mxu0 %v5641_v13  ;;  %v2675_v8 = vrot.slane %v6246_v42, %v6044_v36 }
  0x6a   :  { %v1812_v0 = vrot.slane %v1726_v59, %v6034_v24  ;;  %v1988_v32 = vrot.slane %v1774_v52, %v6034_v24  ;;  %v2207_v27 = vrot.slane %v1726_v59, %v6053_v41  ;;  %v2527_v38 = vrot.slane %v1774_v52, %v6053_v41 }
  0x6b   :  { %v1900_v61 = vrot.slane %v1766_v49, %v6034_v24  ;;  %v2076_v9 = vrot.slane %v6306_v23, %v6034_v24  ;;  %v2367_v44 = vrot.slane %v1766_v49, %v6053_v41  ;;  %v2687_v45 = vrot.slane %v6306_v23, %v6053_v41 }
  0x6c   :  { %v2287_v4 = vrot.slane %v2207_v27, %v6044_v36  ;;  %v2607_v14 = vrot.slane %v2527_v38, %v6044_v36  ;;  %v2336_v47 = vmul.f32 %v2275_v51, %v2176_v12  ;;  %v2496_v18 = vmul.f32 %v2435_v56, %v2176_v12 }
  0x6d   :  { %v2145_v29 = vsel %vm2141_vm0, %v1812_v0, %v1900_v61  ;;  %v2447_v40 = vrot.slane %v2367_v44, %v6044_v36  ;;  %v2767_v15 = vrot.slane %v2687_v45, %v6044_v36  ;;  %v1808_v63 = vrot.slane %v1726_v59, %v6056_v43 }
  0x6e   :  { %v2162_v57 = vsel %vm2158_vm7, %v2145_v29, %v1988_v32  ;;  %v2848_v62 = vrot.slane %v2496_v18, 4  ;;  %v2595_v3 = vrot.slane %v2515_v5, %v6044_v36  ;;  %v1896_v60 = vrot.slane %v1766_v49, %v6056_v43 }
  0x6f   :  { %v2179_v2 = vsel %vm2175_vm8, %v2162_v57, %v2076_v9  ;;  %v1984_v10 = vrot.slane %v1774_v52, %v6056_v43  ;;  %v2755_v0 = vrot.slane %v2675_v8, %v6044_v36  ;;  %v2072_v32 = vrot.slane %v6306_v23, %v6056_v43 }
  0x70   :  { %v2339_v11 = vmul.f32 %v2287_v4, %v2179_v2  ;;  %v2499_v13 = vmul.f32 %v2447_v40, %v2179_v2  ;;  %v2659_v51 = vmul.f32 %v2607_v14, %v2179_v2  ;;  %v2819_v50 = vmul.f32 %v2767_v15, %v2179_v2 }
  0x71   :  { %v2656_v56 = vmul.f32 %v2595_v3, %v2176_v12  ;;  %v2929_v42 = vsel %vm7654_vm5, %v2336_v47, %v2848_v62  ;;  %v2144_v61 = vsel %vm2141_vm0, %v1808_v63, %v1896_v60  ;;  %v2203_v9 = vrot.slane %v1726_v59, %v6044_v36 }
  0x72   :  { %v2851_v27 = vrot.slane %v2499_v13, 4  ;;  %v2899_v38 = vrot.slane %v2819_v50, 4  ;;  %vm7656_vm1 = vcmask 130048   ;;  %vm6343_vm2 = vcmp.le.f32.partialorder %v243_v58, 0.7853982 }
  0x73   :  { %v2816_v45 = vmul.f32 %v2755_v0, %v2176_v12  ;;  %v2161_v4 = vsel %vm2158_vm7, %v2144_v61, %v1984_v10  ;;  %v2363_v14 = vrot.slane %v1766_v49, %v6044_v36  ;;  %v2523_v47 = vrot.slane %v1774_v52, %v6044_v36 }
  0x74   :  { %v2932_v18 = vsel %vm7654_vm5, %v2339_v11, %v2851_v27  ;;  %v2948_v29 = vsel %vm7654_vm5, %v2659_v51, %v2899_v38  ;;  %v2178_v59 = vsel %vm2175_vm8, %v2161_v4, %v2072_v32  ;;  %v2283_v40 = vrot.slane %v2203_v9, %v6044_v36 }
  0x75   :  { %v5645_v15 = vpack.c.bf16 %v2948_v29, %v2932_v18  ;;  %v2896_v58 = vrot.slane %v2816_v45, 4  ;;  %v2443_v5 = vrot.slane %v2363_v14, %v6044_v36  ;;  %v2603_v12 = vrot.slane %v2523_v47, %v6044_v36 }
  0x76   :  { %v2338_v57 = vmul.f32 %v2283_v40, %v2178_v59  ;;  %v2683_v49 = vrot.slane %v6306_v23, %v6044_v36  ;;  %v315_v52 = vsub.s32 32, %v6248_v53  ;;  %v316_v8 = vshll.u32 %v6178_v34, %v6248_v53 }
  0x77   :  { %5646 = vmatprep.subr.bf16.mxu1 %v5645_v15  ;;  %v2945_v62 = vsel %vm7654_vm5, %v2656_v56, %v2896_v58  ;;  %v2498_v63 = vmul.f32 %v2443_v5, %v2178_v59  ;;  %v2658_v2 = vmul.f32 %v2603_v12, %v2178_v59  ;;  %v319_v3 = vsub.s32 4294967266, %v6248_v53  ;;  %v6376_v53 = vld [vmem:[%s7648_s1] sm:$0xff]  ;;  %v6418_v5 = vld [vmem:[%s7648_s1 + $0x10] sm:$0xff] }
  0x78   :  { %v5643_v60 = vpack.c.bf16 %v2945_v62, %v2929_v42  ;;  %v2763_v10 = vrot.slane %v2683_v49, %v6044_v36  ;;  %v317_v11 = vshrl.u32 %v6221_v1, %v315_v52  ;;  %v393_v23 = vsel %vm379_vm12, %v6240_v22, %v6256_v20 }
  0x79   :  { %v2850_v13 = vrot.slane %v2498_v63, 4  ;;  %v320_v51 = vadd.s32 127, %v319_v3  ;;  %v6370_v34 = vmul.u32.u64.low %v6215_v28, %v393_v23  ;;  %v6371_v50 = vmul.u32.u64.high %v6215_v28, %v393_v23, %v6370_v34 }
  0x7a   :  { %5644 = vmatpush1.bf16.msra.mxu0 %v5643_v60  ;;  %v2818_v56 = vmul.f32 %v2763_v10, %v2178_v59  ;;  %v318_v0 = vor.u32 %v317_v11, %v316_v8  ;;  %v6380_v1 = vmul.u32.u64.low %v6215_v28, %v6252_v16  ;;  %v6381_v42 = vmul.u32.u64.high %v6215_v28, %v6252_v16, %v6380_v1 }
  0x7b   :  { %v321_v22 = vshll.u32 %v320_v51, 23  ;;  %v332_v20 = vsel %vm6343_vm2, 0, %v6226_v17  ;;  %v453_v32 = vshrl.u32 %v452_v55, 23  ;;  %v2931_v38 = vsel %vm7654_vm5, %v2338_v57, %v2850_v13 }
  0x7c   :  { %v2898_v27 = vrot.slane %v2818_v56, 4  ;;  %v325_v61 = vcvt.s32.f32 %v318_v0  ;;  %v401_v16 = vmul.u32 %v6215_v28, %v6230_v30  ;;  %vm403_vm3 = vc.u32 %v6371_v50, %v6380_v1  ;;  %v6407_v28 = vld [vmem:[%s7648_s1 + $0x8] sm:$0xff] }
  0x7d   :  { %5448 = vmatmul.mubr.msk.f32.vlgmr.msra.gmra.mrb[0].mxu0 %vm7656_vm1, %v6376_v53  ;;  %v322_v9 = vor.u32 4788187, %v321_v22  ;;  %v5400_v45 = vadd.s32 4294967169, %v453_v32  ;;  %v6399_v4 = vmul.f32 0.5, %v26_v7  ;;  %v404_v55 = vadd.s32 1, %v6381_v42 }
  0x7e   :  { %v2947_v17 = vsel %vm7654_vm5, %v2658_v2, %v2898_v27  ;;  %3048 = vmatprep.mubr.f32.mxu0 %v5881_v6  ;;  %v1162_v18 = vadd.s32 3, %v332_v20  ;;  %v449_v59 = vand.u32 2147483647, %v6062_v48  ;;  %v6422_v8 = vand.u32 3, %v332_v20 }
  0x7f   :  { %v5647_v30 = vpack.c.bf16 %v2947_v17, %v2931_v38  ;;  %v323_v14 = vand.u32 2147483647, %v322_v9  ;;  %v459_v47 = vadd.s32 1, %v5400_v45  ;;  %v405_v29 = vsel %vm403_vm3, %v404_v55, %v6381_v42 }
  0x80   :  { %v406_v15 = vadd.s32 %v405_v29, %v401_v16  ;;  %v555_v58 = vand.u32 2139095040, %v6399_v4  ;;  %v6424_v62 = vand.u32 3, %v1162_v18  ;;  %v6428_v63 = vand.u32 8388607, %v449_v59 }
  0x81   :  { %5648 = vmatpush1.bf16.msra.mxu1 %v5647_v30  ;;  %v326_v40 = vmul.f32 %v325_v61, %v323_v14  ;;  %5449 = vmatmul.mubr.msk.f32.gmra.mrb[2].mxu0 %vm7656_vm1, %v6407_v28  ;;  %vm460_vm4 = vcmp.gt.s32.totalorder %v459_v47, 0  ;;  %vm7663_vm6 = vcmp.lt.s32.totalorder %v5942_v19, 0  ;;  %vm6434_vm9 = vcmp.le.f32.partialorder %v346_v25, 0.7853982  ;;  %v6448_v25 = vld [vmem:[%s7648_s1 + $0x18] sm:$0xff] }
  0x82   :  { %3054 = vmatprep.mubr.f32.mxu0 %v5881_v6  ;;  %v461_v12 = vsel %vm460_vm4, %v459_v47, 0  ;;  %v407_v49 = vadd.s32 536870912, %v406_v15  ;;  %v556_v11 = vshrl.u32 %v555_v58, 23  ;;  %vm7655_vm10 = vcmp.lt.s32.totalorder %v5947_v26, 0 }
  0x83   :  { %v327_v57 = vxor.u32 2147483648, %v326_v40  ;;  %v463_v52 = vand.u32 31, %v461_v12  ;;  %v6450_v13 = vshrl.u32 %v461_v12, 5  ;;  %vm338_vm11 = vcmp.eq.s32.totalorder %v6422_v8, 0 }
  0x84   :  { %5452 = vmatmul.mubr.msk.f32.vlgmr.msra.gmra.mrb[0].mxu1 %vm7656_vm1, %v6376_v53  ;;  %v408_v60 = vshrl.u32 %v407_v49, 30  ;;  %vm341_vm12 = vcmp.eq.s32.totalorder %v6422_v8, 2  ;;  %vm1165_vm13 = vcmp.eq.s32.totalorder %v6424_v62, 0  ;;  %vm1168_vm14 = vcmp.eq.s32.totalorder %v6424_v62, 2 }
  0x85   :  { %v328_v2 = vsel %vm7663_vm6, %v327_v57, %v326_v40  ;;  %3137 = vmatprep.mubr.f32.mxu1 %v5881_v6  ;;  %5450 = vmatmul.mubr.msk.f32.gmra.mrb[4].mxu0 %vm7656_vm1, %v6418_v5  ;;  %v464_v10 = vsub.s32 32, %v463_v52  ;;  %v466_v51 = vshll.u32 %v5882_v31, %v463_v52  ;;  %v469_v34 = vshll.u32 %v5883_v33, %v463_v52 }
  0x86   :  { %v331_v23 = vsel %vm6343_vm2, %v5942_v19, %v328_v2  ;;  %3060 = vmatprep.mubr.f32.mxu0 %v5881_v6  ;;  %v409_v56 = vshll.u32 %v408_v60, 30  ;;  %v432_v0 = vsub.s32 4, %v408_v60  ;;  %v475_v42 = vshll.u32 %v5885_v37, %v463_v52 }
  0x87   :  { %5849 = vcosq.f32 %v331_v23  ;;  %v467_v44 = vshrl.u32 %v5883_v33, %v464_v10  ;;  %v470_v7 = vshrl.u32 %v5884_v35, %v464_v10  ;;  %v472_v22 = vshll.u32 %v5884_v35, %v463_v52 }
  0x88   :  { %5851 = vsinq.f32 %v331_v23  ;;  %5453 = vmatmul.mubr.msk.f32.gmra.mrb[2].mxu1 %vm7656_vm1, %v6407_v28  ;;  %v6461_v20 = vsub.s32 %v406_v15, %v409_v56  ;;  %v473_v32 = vshrl.u32 %v5885_v37, %v464_v10  ;;  %v476_v27 = vshrl.u32 %v5886_v39, %v464_v10 }
  0x89   :  { %3143 = vmatprep.mubr.f32.mxu1 %v5881_v6  ;;  %5451 = vmatmul.mubr.msk.f32.gmra.mrb[6].mxu0 %vm7656_vm1, %v6448_v25  ;;  %v457_v38 = vor.u32 8388608, %v6428_v63  ;;  %vm337_vm15 = vcmp.lt.s32.totalorder %v6422_v8, 2  ;;  %vm1164_vm2 = vcmp.lt.s32.totalorder %v6424_v62, 2  ;;  %v433_v16 = vsel %vm7655_vm10, %v432_v0, %v408_v60 }
  0x8a   :  { %3220 = vmatprep.mubr.f32.mxu0 %v5881_v6  ;;  %v412_v61 = vsub.s32 0, %v6461_v20  ;;  %v465_v9 = vshrl.u32 %v5882_v31, %v464_v10  ;;  %v477_v45 = vor.u32 %v476_v27, %v475_v42  ;;  %vm335_vm3 = vweird.f32 %v5942_v19 }
  0x8b   :  { %v478_v17 = vshll.u32 %v5886_v39, %v463_v52  ;;  %v479_v55 = vshrl.u32 %v5887_v46, %v464_v10  ;;  %vm481_vm4 = vcmp.lt.s32.totalorder %v6450_v13, 1  ;;  %v5404_v30 = vadd.s32 4294967169, %v556_v11 }
  0x8c   :  { %5454 = vmatmul.mubr.msk.f32.gmra.mrb[4].mxu1 %vm7656_vm1, %v6418_v5  ;;  %v5397_v14 = vmin.u32 %v412_v61, %v6461_v20  ;;  %v468_v47 = vor.u32 %v467_v44, %v466_v51  ;;  %v471_v18 = vor.u32 %v470_v7, %v469_v34  ;;  %v474_v29 = vor.u32 %v473_v32, %v472_v22 }
  0x8d   :  { %3149 = vmatprep.mubr.f32.mxu1 %v5881_v6  ;;  %v435_v40 = vsel %vm6434_vm9, 0, %v433_v16  ;;  %v480_v15 = vor.u32 %v479_v55, %v478_v17  ;;  %vm483_vm6 = vcmp.lt.s32.totalorder %v6450_v13, 3  ;;  %vm484_vm5 = vcmp.lt.s32.totalorder %v6450_v13, 4 }
  0x8e   :  { %v414_v58 = vclz %v5397_v14  ;;  %v485_v12 = vsel %vm481_vm4, %v465_v9, %v468_v47  ;;  %v486_v57 = vsel %vm484_vm5, %v474_v29, 2102212464  ;;  %v490_v49 = vsel %vm484_vm5, %v477_v45, 920167782 }
  0x8f   :  { %v402_v52 = vadd.s32 %v6380_v1, %v6371_v50  ;;  %v487_v63 = vsel %vm483_vm6, %v471_v18, %v486_v57  ;;  %v6504_v2 = vshll.u32 %v457_v38, 8  ;;  %v552_v60 = vand.u32 2147483647, %v6399_v4 }
  0x90   :  { %5455 = vmatmul.mubr.msk.f32.gmra.mrb[6].mxu1 %vm7656_vm1, %v6448_v25  ;;  %v5398_v11 = vadd.s32 4294967294, %v414_v58  ;;  %v1266_v23 = vadd.s32 3, %v435_v40  ;;  %vm482_vm10 = vcmp.lt.s32.totalorder %v6450_v13, 2  ;;  %v489_v50 = vsel %vm481_vm4, %v468_v47, %v471_v18 }
  0x91   :  { %v5850_v10 = vpop.eup %5849  ;;  %3309 = vmatprep.mubr.f32.mxu1 %v5881_v6  ;;  %v6513_v34 = vsel %vm482_vm10, %v485_v12, %v487_v63  ;;  %v491_v56 = vsel %vm483_vm6, %v474_v29, %v490_v49  ;;  %v494_v0 = vsel %vm484_vm5, %v480_v15, 1326507024  ;;  %v493_v44 = vsel %vm481_vm4, %v471_v18, %v474_v29 }
  0x92   :  { %v5852_v1 = vpop.eup %5851  ;;  %v342_v51 = vxor.u32 2147483648, %v5850_v10  ;;  %vm5399_vm1 = vcmp.lt.s32.totalorder %v5398_v11, 0  ;;  %v562_v7 = vadd.s32 1, %v5404_v30  ;;  %v495_v38 = vsel %vm483_vm6, %v477_v45, %v494_v0 }
  0x93   :  { %v339_v42 = vxor.u32 2147483648, %v5852_v1  ;;  %v417_v27 = vsel %vm5399_vm1, 0, %v5398_v11  ;;  %v496_v29 = vsel %vm482_vm10, %v493_v44, %v495_v38  ;;  %v6544_v62 = vand.u32 3, %v435_v40 }
  0x94   :  { %v343_v22 = vsel %vm341_vm12, %v342_v51, %v5852_v1  ;;  %v1170_v32 = vsel %vm1168_vm14, %v342_v51, %v5852_v1  ;;  %v418_v9 = vsub.s32 32, %v417_v27  ;;  %v419_v17 = vshll.u32 %v6461_v20, %v417_v27 }
  0x95   :  { %v340_v61 = vsel %vm338_vm11, %v5850_v10, %v339_v42  ;;  %v1167_v16 = vsel %vm1165_vm13, %v5850_v10, %v339_v42  ;;  %v422_v14 = vsub.s32 4294967266, %v417_v27  ;;  %vm563_vm5 = vcmp.gt.s32.totalorder %v562_v7, 0 }
  0x96   :  { %v344_v55 = vsel %vm337_vm15, %v340_v61, %v343_v22  ;;  %v1171_v30 = vsel %vm1164_vm2, %v1167_v16, %v1170_v32  ;;  %v420_v18 = vshrl.u32 %v402_v52, %v418_v9  ;;  %v6542_v8 = vsel %vm563_vm5, %v562_v7, 0 }
  0x97   :  { %v345_v45 = vsel %vm335_vm3, nan, %v344_v55  ;;  %v1172_v47 = vsel %vm335_vm3, nan, %v1171_v30  ;;  %v423_v58 = vadd.s32 127, %v422_v14  ;;  %v6546_v57 = vand.u32 3, %v1266_v23 }
  0x98   :  { %v1705_v15 = vrot.slane %v345_v45, 5  ;;  %v1745_v20 = vrot.slane %v1172_v47, 5  ;;  %v421_v12 = vor.u32 %v420_v18, %v419_v17  ;;  %v6550_v49 = vand.u32 8388607, %v552_v60 }
  0x99   :  { %v424_v52 = vshll.u32 %v423_v58, 23  ;;  %v492_v10 = vsel %vm482_vm10, %v489_v50, %v491_v56  ;;  %v6555_v11 = vmul.u32.u64.low %v6504_v2, %v496_v29  ;;  %v6556_v1 = vmul.u32.u64.high %v6504_v2, %v496_v29, %v6555_v11 }
  0x9a   :  { %v1706_v19 = vrot.slane %v1705_v15, 4  ;;  %v1746_v63 = vrot.slane %v1745_v20, 4  ;;  %v504_v40 = vmul.u32 %v6504_v2, %v6513_v34  ;;  %v6561_v23 = vand.u32 31, %v6542_v8 }
  0x9b   :  { %v425_v7 = vor.u32 4788187, %v424_v52  ;;  %v428_v22 = vcvt.s32.f32 %v421_v12  ;;  %v6564_v32 = vmul.u32.u64.low %v6504_v2, %v492_v10  ;;  %v6565_v13 = vmul.u32.u64.high %v6504_v2, %v492_v10, %v6564_v32 }
  0x9c   :  { %v1727_v51 = vmul.f32 %v1706_v19, %v345_v45  ;;  %v1767_v0 = vmul.f32 %v1746_v63, %v345_v45  ;;  %v1775_v42 = vmul.f32 %v1706_v19, %v1172_v47  ;;  %v1783_v44 = vmul.f32 %v1746_v63, %v1172_v47 }
  0x9d   :  { %v426_v30 = vand.u32 2147483647, %v425_v7  ;;  %vm7666_vm1 = vcmp.lt.s32.totalorder %v5947_v26, 0  ;;  %vm7667_vm10 = vcmask 1043456   ;;  %vm441_vm12 = vcmp.eq.s32.totalorder %v6544_v62, 0 }
  0x9e   :  { %v1820_v50 = vrot.slane %v1727_v51, %v6034_v24  ;;  %v1908_v56 = vrot.slane %v1767_v0, %v6034_v24  ;;  %v1996_v27 = vrot.slane %v1775_v42, %v6034_v24  ;;  %v2084_v38 = vrot.slane %v1783_v44, %v6034_v24  ;;  %vm7668_vm11 = vmmov %vm7667_vm10 }
  0x9f   :  { %v2215_v61 = vrot.slane %v1727_v51, %v6053_v41  ;;  %v2375_v16 = vrot.slane %v1767_v0, %v6053_v41  ;;  %v2535_v9 = vrot.slane %v1775_v42, %v6053_v41  ;;  %v2695_v17 = vrot.slane %v1783_v44, %v6053_v41  ;;  %vm7669_vm3 = vmmov %vm7667_vm10 }
  0xa0   :  { %v2147_v55 = vsel %vm2141_vm0, %v1820_v50, %v1908_v56  ;;  %v1816_v14 = vrot.slane %v1727_v51, %v6056_v43  ;;  %v1904_v45 = vrot.slane %v1767_v0, %v6056_v43  ;;  %v429_v12 = vmul.f32 %v428_v22, %v426_v30  ;;  %vm7670_vm6 = vmmov %vm7669_vm3 }
  0xa1   :  { %v2164_v47 = vsel %vm2158_vm7, %v2147_v55, %v1996_v27  ;;  %v2295_v18 = vrot.slane %v2215_v61, %v6044_v36  ;;  %v2455_v29 = vrot.slane %v2375_v16, %v6044_v36  ;;  %v2615_v15 = vrot.slane %v2535_v9, %v6044_v36 }
  0xa2   :  { %v2181_v20 = vsel %vm2175_vm8, %v2164_v47, %v2084_v38  ;;  %v2775_v58 = vrot.slane %v2695_v17, %v6044_v36  ;;  %v1992_v19 = vrot.slane %v1775_v42, %v6056_v43  ;;  %v2080_v11 = vrot.slane %v1783_v44, %v6056_v43 }
  0xa3   :  { %v2341_v63 = vmul.f32 %v2295_v18, %v2181_v20  ;;  %v2501_v52 = vmul.f32 %v2455_v29, %v2181_v20  ;;  %v2661_v10 = vmul.f32 %v2615_v15, %v2181_v20  ;;  %v430_v50 = vxor.u32 2147483648, %v429_v12 }
  0xa4   :  { %v2821_v7 = vmul.f32 %v2775_v58, %v2181_v20  ;;  %v2146_v56 = vsel %vm2141_vm0, %v1816_v14, %v1904_v45  ;;  %v2211_v27 = vrot.slane %v1727_v51, %v6044_v36  ;;  %v2371_v38 = vrot.slane %v1767_v0, %v6044_v36 }
  0xa5   :  { %v2853_v61 = vrot.slane %v2501_v52, 4  ;;  %v2163_v16 = vsel %vm2158_vm7, %v2146_v56, %v1992_v19  ;;  %v2531_v22 = vrot.slane %v1775_v42, %v6044_v36  ;;  %v431_v17 = vsel %vm7666_vm1, %v430_v50, %v429_v12  ;;  %v27_v42 = vld [vmem:[%s7647_s0 + $0x30] sm:$0xff] }
  0xa6   :  { %v2901_v9 = vrot.slane %v2821_v7, 4  ;;  %v2180_v55 = vsel %vm2175_vm8, %v2163_v16, %v2080_v11  ;;  %v2291_v30 = vrot.slane %v2211_v27, %v6044_v36  ;;  %v434_v51 = vsel %vm6434_vm9, %v5947_v26, %v431_v17 }
  0xa7   :  { %v2934_v47 = vsel %vm7667_vm10, %v2341_v63, %v2853_v61  ;;  %v2451_v14 = vrot.slane %v2371_v38, %v6044_v36  ;;  %v567_v0 = vsub.s32 32, %v6561_v23  ;;  %5853 = vcosq.f32 %v434_v51 }
  0xa8   :  { %v2950_v45 = vsel %vm7668_vm11, %v2661_v10, %v2901_v9  ;;  %v2611_v18 = vrot.slane %v2531_v22, %v6044_v36  ;;  %v2691_v29 = vrot.slane %v1783_v44, %v6044_v36  ;;  %5855 = vsinq.f32 %v434_v51 }
  0xa9   :  { %v5649_v15 = vpack.c.bf16 %v2950_v45, %v2934_v47  ;;  %v2500_v20 = vmul.f32 %v2451_v14, %v2180_v55  ;;  %vm506_vm9 = vc.u32 %v6556_v1, %v6564_v32  ;;  %v2340_v3 = vmul.f32 %v2291_v30, %v2180_v55 }
  0xaa   :  { %v2771_v58 = vrot.slane %v2691_v29, %v6044_v36  ;;  %v507_v12 = vadd.s32 1, %v6565_v13  ;;  %v6612_v19 = vmul.f32 0.5, %v27_v42  ;;  %vm444_vm13 = vcmp.eq.s32.totalorder %v6544_v62, 2 }
  0xab   :  { %5650 = vmatprep.subr.bf16.mxu0 %v5649_v15  ;;  %v2852_v63 = vrot.slane %v2500_v20, 4  ;;  %v560_v44 = vor.u32 8388608, %v6550_v49  ;;  %vm440_vm14 = vcmp.lt.s32.totalorder %v6544_v62, 2  ;;  %vm1268_vm15 = vcmp.lt.s32.totalorder %v6546_v57, 2 }
  0xac   :  { %v2660_v52 = vmul.f32 %v2611_v18, %v2180_v55  ;;  %v2820_v10 = vmul.f32 %v2771_v58, %v2180_v55  ;;  %v508_v11 = vsel %vm506_vm9, %v507_v12, %v6565_v13  ;;  %v6621_v7 = vshrl.u32 %v6542_v8, 5 }
  0xad   :  { %vm438_vm2 = vweird.f32 %v5947_v26  ;;  %v509_v50 = vadd.s32 %v508_v11, %v504_v40  ;;  %v569_v56 = vshll.u32 %v5882_v31, %v6561_v23  ;;  %v570_v27 = vshrl.u32 %v5883_v33, %v567_v0 }
  0xae   :  { %v572_v61 = vshll.u32 %v5883_v33, %v6561_v23  ;;  %v2900_v16 = vrot.slane %v2820_v10, 4  ;;  %v2933_v13 = vsel %vm7669_vm3, %v2340_v3, %v2852_v63  ;;  %v573_v8 = vshrl.u32 %v5884_v35, %v567_v0 }
  0xaf   :  { %v581_v38 = vshll.u32 %v5886_v39, %v6561_v23  ;;  %v510_v22 = vadd.s32 536870912, %v509_v50  ;;  %v578_v2 = vshll.u32 %v5885_v37, %v6561_v23  ;;  %v579_v34 = vshrl.u32 %v5886_v39, %v567_v0 }
  0xb0   :  { %v582_v40 = vshrl.u32 %v5887_v46, %v567_v0  ;;  %vm1269_vm4 = vcmp.eq.s32.totalorder %v6546_v57, 0  ;;  %v2949_v9 = vsel %vm7670_vm6, %v2660_v52, %v2900_v16  ;;  %v575_v17 = vshll.u32 %v5884_v35, %v6561_v23 }
  0xb1   :  { %v576_v55 = vshrl.u32 %v5885_v37, %v567_v0  ;;  %vm1272_vm5 = vcmp.eq.s32.totalorder %v6546_v57, 2  ;;  %v5651_v30 = vpack.c.bf16 %v2949_v9, %v2933_v13  ;;  %v6646_v47 = vshrl.u32 %v510_v22, 30  ;;  %v5854_v14 = vpop.eup %5853 }
  0xb2   :  { %v583_v51 = vor.u32 %v582_v40, %v581_v38  ;;  %v568_v42 = vshrl.u32 %v5882_v31, %v567_v0  ;;  %v571_v45 = vor.u32 %v570_v27, %v569_v56  ;;  %vm584_vm1 = vcmp.lt.s32.totalorder %v6621_v7, 1  ;;  %v5856_v18 = vpop.eup %5855 }
  0xb3   :  { %vm587_vm10 = vcmp.lt.s32.totalorder %v6621_v7, 4  ;;  %v445_v29 = vxor.u32 2147483648, %v5854_v14  ;;  %5652 = vmatpush1.bf16.msra.mxu0 %v5651_v30  ;;  %v512_v23 = vshll.u32 %v6646_v47, 30  ;;  %v574_v15 = vor.u32 %v573_v8, %v572_v61 }
  0xb4   :  { %v580_v20 = vor.u32 %v579_v34, %v578_v2  ;;  %v442_v3 = vxor.u32 2147483648, %v5856_v18  ;;  %v577_v58 = vor.u32 %v576_v55, %v575_v17  ;;  %vm585_vm11 = vcmp.lt.s32.totalorder %v6621_v7, 2 }
  0xb5   :  { %vm586_vm9 = vcmp.lt.s32.totalorder %v6621_v7, 3  ;;  %v446_v0 = vsel %vm444_vm13, %v445_v29, %v5856_v18  ;;  %v1274_v12 = vsel %vm1272_vm5, %v445_v29, %v5856_v18  ;;  %v6658_v63 = vsub.s32 %v509_v50, %v512_v23 }
  0xb6   :  { %v597_v52 = vsel %vm587_vm10, %v583_v51, 1326507024  ;;  %v443_v10 = vsel %vm441_vm12, %v5854_v14, %v442_v3  ;;  %v1271_v11 = vsel %vm1269_vm4, %v5854_v14, %v442_v3  ;;  %vm7671_vm3 = vcmask 130048   ;;  %vm7675_vm4 = vmmov %vm7670_vm6 }
  0xb7   :  { %5456 = vmatmul.mubr.msk.f32.vlgmr.msra.gmra.mrb[8].mxu0 %vm7671_vm3, %v6376_v53  ;;  %v588_v56 = vsel %vm584_vm1, %v568_v42, %v571_v45  ;;  %v589_v27 = vsel %vm587_vm10, %v577_v58, 2102212464  ;;  %v447_v50 = vsel %vm440_vm14, %v443_v10, %v446_v0  ;;  %v1275_v61 = vsel %vm1268_vm15, %v1271_v11, %v1274_v12  ;;  %vm7672_vm12 = vmmov %vm7671_vm3 }
  0xb8   :  { %v515_v16 = vsub.s32 0, %v6658_v63  ;;  %v593_v13 = vsel %vm587_vm10, %v580_v20, 920167782  ;;  %3226 = vmatprep.mubr.f32.mxu0 %v5881_v6  ;;  %v448_v8 = vsel %vm438_vm2, nan, %v447_v50  ;;  %v1276_v38 = vsel %vm438_vm2, nan, %v1275_v61  ;;  %vm7673_vm13 = vmmov %vm7671_vm3 }
  0xb9   :  { %v596_v62 = vsel %vm584_vm1, %v574_v15, %v577_v58  ;;  %v598_v57 = vsel %vm586_vm9, %v580_v20, %v597_v52  ;;  %v1707_v22 = vrot.slane %v448_v8, 5  ;;  %v1747_v2 = vrot.slane %v1276_v38, 5  ;;  %vm7674_vm14 = vmmov %vm7671_vm3 }
  0xba   :  { %v5401_v34 = vmin.u32 %v515_v16, %v6658_v63  ;;  %v590_v40 = vsel %vm586_vm9, %v574_v15, %v589_v27  ;;  %v592_v9 = vsel %vm584_vm1, %v571_v45, %v574_v15  ;;  %v594_v26 = vsel %vm586_vm9, %v577_v58, %v593_v13  ;;  %vm7676_vm6 = vmmov %vm7675_vm4 }
  0xbb   :  { %v6697_v17 = vshll.u32 %v560_v44, 8  ;;  %5457 = vmatmul.mubr.msk.f32.gmra.mrb[10].mxu0 %vm7672_vm12, %v6407_v28  ;;  %v1708_v55 = vrot.slane %v1707_v22, 4  ;;  %v1748_v30 = vrot.slane %v1747_v2, 4  ;;  %v6703_v14 = vsel %vm585_vm11, %v596_v62, %v598_v57  ;;  %vm7677_vm5 = vmmov %vm7675_vm4 }
  0xbc   :  { %v517_v51 = vclz %v5401_v34  ;;  %3232 = vmatprep.mubr.f32.mxu0 %v5881_v6  ;;  %v6708_v42 = vadd.s32 %v6564_v32, %v6556_v1  ;;  %v535_v49 = vsub.s32 4, %v6646_v47  ;;  %v6713_v44 = vsel %vm585_vm11, %v588_v56, %v590_v40  ;;  %vm7680_vm10 = vmmov %vm7675_vm4 }
  0xbd   :  { %v658_v45 = vand.u32 2139095040, %v6612_v19  ;;  %v1728_v18 = vmul.f32 %v1708_v55, %v448_v8  ;;  %v1768_v29 = vmul.f32 %v1748_v30, %v448_v8  ;;  %v1776_v23 = vmul.f32 %v1708_v55, %v1276_v38  ;;  %vm7681_vm12 = vmmov %vm7671_vm3 }
  0xbe   :  { %v1784_v15 = vmul.f32 %v1748_v30, %v1276_v38  ;;  %v5402_v20 = vadd.s32 4294967294, %v517_v51  ;;  %v6718_v3 = vsel %vm585_vm11, %v592_v9, %v594_v26  ;;  %vm451_vm15 = vcmp.lt.s32.totalorder %v6062_v48, 0 }
  0xbf   :  { %v6722_v1 = vmul.u32.u64.low %v6697_v17, %v6703_v14  ;;  %v6723_v32 = vmul.u32.u64.high %v6697_v17, %v6703_v14, %v6722_v1  ;;  %5458 = vmatmul.mubr.msk.f32.gmra.mrb[12].mxu0 %vm7673_vm13, %v6418_v5  ;;  %v1828_v58 = vrot.slane %v1728_v18, %v6034_v24  ;;  %v1916_v0 = vrot.slane %v1768_v29, %v6034_v24 }
  0xc0   :  { %v2004_v12 = vrot.slane %v1776_v23, %v6034_v24  ;;  %v2092_v52 = vrot.slane %v1784_v15, %v6034_v24  ;;  %3238 = vmatprep.mubr.f32.mxu0 %v5881_v6  ;;  %v2223_v7 = vrot.slane %v1728_v18, %v6053_v41  ;;  %v2383_v10 = vrot.slane %v1768_v29, %v6053_v41 }
  0xc1   :  { %v2543_v11 = vrot.slane %v1776_v23, %v6053_v41  ;;  %v2703_v56 = vrot.slane %v1784_v15, %v6053_v41  ;;  %v2149_v27 = vsel %vm2141_vm0, %v1828_v58, %v1916_v0  ;;  %v1824_v50 = vrot.slane %v1728_v18, %v6056_v43 }
  0xc2   :  { %v1912_v61 = vrot.slane %v1768_v29, %v6056_v43  ;;  %v2000_v16 = vrot.slane %v1776_v23, %v6056_v43  ;;  %v2166_v13 = vsel %vm2158_vm7, %v2149_v27, %v2004_v12  ;;  %v2303_v8 = vrot.slane %v2223_v7, %v6044_v36 }
  0xc3   :  { %v2463_v38 = vrot.slane %v2383_v10, %v6044_v36  ;;  %v2623_v62 = vrot.slane %v2543_v11, %v6044_v36  ;;  %5459 = vmatmul.mubr.msk.f32.gmra.mrb[14].mxu0 %vm7674_vm14, %v6448_v25  ;;  %v2183_v57 = vsel %vm2175_vm8, %v2166_v13, %v2092_v52  ;;  %v2783_v22 = vrot.slane %v2703_v56, %v6044_v36  ;;  %vm7682_vm14 = vmmov %vm7671_vm3 }
  0xc4   :  { %v2088_v2 = vrot.slane %v1784_v15, %v6056_v43  ;;  %v2148_v34 = vsel %vm2141_vm0, %v1824_v50, %v1912_v61  ;;  %3398 = vmatprep.mubr.f32.mxu0 %v5881_v6  ;;  %v2343_v40 = vmul.f32 %v2303_v8, %v2183_v57  ;;  %v2219_v14 = vrot.slane %v1728_v18, %v6044_v36 }
  0xc5   :  { %v2503_v9 = vmul.f32 %v2463_v38, %v2183_v57  ;;  %v2663_v26 = vmul.f32 %v2623_v62, %v2183_v57  ;;  %v2165_v55 = vsel %vm2158_vm7, %v2148_v34, %v2000_v16  ;;  %v2823_v30 = vmul.f32 %v2783_v22, %v2183_v57 }
  0xc6   :  { %v2182_v51 = vsel %vm2175_vm8, %v2165_v55, %v2088_v2  ;;  %v2379_v1 = vrot.slane %v1768_v29, %v6044_v36  ;;  %v2539_v0 = vrot.slane %v1776_v23, %v6044_v36  ;;  %v2699_v12 = vrot.slane %v1784_v15, %v6044_v36 }
  0xc7   :  { %v2855_v58 = vrot.slane %v2503_v9, 4  ;;  %vm5403_vm2 = vcmp.lt.s32.totalorder %v5402_v20, 0  ;;  %v2903_v52 = vrot.slane %v2823_v30, 4  ;;  %v2299_v7 = vrot.slane %v2219_v14, %v6044_v36 }
  0xc8   :  { %v2459_v10 = vrot.slane %v2379_v1, %v6044_v36  ;;  %v520_v11 = vsel %vm5403_vm2, 0, %v5402_v20  ;;  %v2619_v27 = vrot.slane %v2539_v0, %v6044_v36  ;;  %v2779_v18 = vrot.slane %v2699_v12, %v6044_v36 }
  0xc9   :  { %v2936_v56 = vsel %vm7675_vm4, %v2343_v40, %v2855_v58  ;;  %v521_v50 = vsub.s32 32, %v520_v11  ;;  %v2952_v29 = vsel %vm7676_vm6, %v2663_v26, %v2903_v52  ;;  %v2342_v61 = vmul.f32 %v2299_v7, %v2182_v51 }
  0xca   :  { %v2502_v23 = vmul.f32 %v2459_v10, %v2182_v51  ;;  %v522_v15 = vshll.u32 %v6658_v63, %v520_v11  ;;  %v5653_v16 = vpack.c.bf16 %v2952_v29, %v2936_v56  ;;  %v2662_v13 = vmul.f32 %v2619_v27, %v2182_v51 }
  0xcb   :  { %v2822_v8 = vmul.f32 %v2779_v18, %v2182_v51  ;;  %v523_v38 = vshrl.u32 %v6708_v42, %v521_v50  ;;  %v525_v20 = vsub.s32 4294967266, %v520_v11  ;;  %v536_v63 = vsel %vm451_vm15, %v535_v49, %v6646_v47  ;;  %v28_v11 = vld [vmem:[%s7647_s0 + $0x38] sm:$0xff] }
  0xcc   :  { %v2854_v62 = vrot.slane %v2502_v23, 4  ;;  %v6768_v57 = vmul.u32.u64.low %v6697_v17, %v6718_v3  ;;  %v6769_v22 = vmul.u32.u64.high %v6697_v17, %v6718_v3, %v6768_v57  ;;  %5654 = vmatprep.subr.bf16.mxu1 %v5653_v16  ;;  %v659_v34 = vshrl.u32 %v658_v45, 23 }
  0xcd   :  { %v2902_v2 = vrot.slane %v2822_v8, 4  ;;  %vm6782_vm1 = vcmp.le.f32.partialorder %v449_v59, 0.7853982  ;;  %v524_v3 = vor.u32 %v523_v38, %v522_v15  ;;  %v526_v9 = vadd.s32 127, %v525_v20 }
  0xce   :  { %v2935_v42 = vsel %vm7677_vm5, %v2342_v61, %v2854_v62  ;;  %v607_v55 = vmul.u32 %v6697_v17, %v6713_v44  ;;  %vm609_vm11 = vc.u32 %v6723_v32, %v6768_v57  ;;  %v5408_v47 = vadd.s32 4294967169, %v659_v34 }
  0xcf   :  { %v2951_v26 = vsel %vm7680_vm10, %v2662_v13, %v2902_v2  ;;  %v527_v45 = vshll.u32 %v526_v9, 23  ;;  %v538_v30 = vsel %vm6782_vm1, 0, %v536_v63  ;;  %v610_v59 = vadd.s32 1, %v6769_v22 }
  0xd0   :  { %v5655_v49 = vpack.c.bf16 %v2951_v26, %v2935_v42  ;;  %v665_v51 = vadd.s32 1, %v5408_v47  ;;  %v531_v1 = vcvt.s32.f32 %v524_v3  ;;  %v1370_v0 = vadd.s32 3, %v538_v30 }
  0xd1   :  { %v528_v14 = vor.u32 4788187, %v527_v45  ;;  %v611_v58 = vsel %vm609_vm11, %v610_v59, %v6769_v22  ;;  %v655_v44 = vand.u32 2147483647, %v6612_v19  ;;  %v6802_v27 = vand.u32 3, %v538_v30 }
  0xd2   :  { %5656 = vmatpush1.bf16.msra.mxu1 %v5655_v49  ;;  %v612_v12 = vadd.s32 %v611_v58, %v607_v55  ;;  %vm666_vm9 = vcmp.gt.s32.totalorder %v665_v51, 0  ;;  %v6804_v18 = vand.u32 3, %v1370_v0  ;;  %v6812_v15 = vmul.f32 0.5, %v28_v11 }
  0xd3   :  { %v529_v17 = vand.u32 2147483647, %v528_v14  ;;  %v667_v52 = vsel %vm666_vm9, %v665_v51, 0  ;;  %vm554_vm13 = vcmp.lt.s32.totalorder %v6399_v4, 0  ;;  %vm544_vm4 = vcmp.eq.s32.totalorder %v6802_v27, 0 }
  0xd4   :  { %v613_v7 = vadd.s32 536870912, %v612_v12  ;;  %v669_v10 = vand.u32 31, %v667_v52  ;;  %v6810_v23 = vshrl.u32 %v667_v52, 5  ;;  %v761_v9 = vand.u32 2139095040, %v6812_v15 }
  0xd5   :  { %5460 = vmatmul.mubr.msk.f32.vlgmr.msra.gmra.mrb[8].mxu1 %vm7671_vm3, %v6376_v53  ;;  %v532_v56 = vmul.f32 %v531_v1, %v529_v17  ;;  %v662_v53 = vand.u32 8388607, %v655_v44  ;;  %vm1376_vm2 = vcmp.eq.s32.totalorder %v6804_v18, 2  ;;  %vm1373_vm6 = vcmp.eq.s32.totalorder %v6804_v18, 0 }
  0xd6   :  { %3315 = vmatprep.mubr.f32.mxu1 %v5881_v6  ;;  %v6806_v50 = vshrl.u32 %v613_v7, 30  ;;  %v670_v29 = vsub.s32 32, %v669_v10  ;;  %v672_v13 = vshll.u32 %v5882_v31, %v669_v10  ;;  %v675_v8 = vshll.u32 %v5883_v33, %v669_v10 }
  0xd7   :  { %v533_v61 = vxor.u32 2147483648, %v532_v56  ;;  %v678_v38 = vshll.u32 %v5884_v35, %v669_v10  ;;  %v681_v2 = vshll.u32 %v5885_v37, %v669_v10  ;;  %v684_v3 = vshll.u32 %v5886_v39, %v669_v10 }
  0xd8   :  { %v615_v16 = vshll.u32 %v6806_v50, 30  ;;  %v673_v20 = vshrl.u32 %v5883_v33, %v670_v29  ;;  %v676_v22 = vshrl.u32 %v5884_v35, %v670_v29  ;;  %v679_v34 = vshrl.u32 %v5885_v37, %v670_v29 }
  0xd9   :  { %5461 = vmatmul.mubr.msk.f32.gmra.mrb[10].mxu1 %vm7681_vm12, %v6407_v28  ;;  %v534_v62 = vsel %vm451_vm15, %v533_v61, %v532_v56  ;;  %v682_v42 = vshrl.u32 %v5886_v39, %v670_v29  ;;  %v671_v40 = vshrl.u32 %v5882_v31, %v670_v29  ;;  %vm547_vm15 = vcmp.eq.s32.totalorder %v6802_v27, 2 }
  0xda   :  { %3321 = vmatprep.mubr.f32.mxu1 %v5881_v6  ;;  %v537_v28 = vsel %vm6782_vm1, %v6062_v48, %v534_v62  ;;  %v6829_v63 = vsub.s32 %v612_v12, %v615_v16  ;;  %v663_v55 = vor.u32 8388608, %v662_v53  ;;  %v674_v47 = vor.u32 %v673_v20, %v672_v13 }
  0xdb   :  { %5857 = vcosq.f32 %v537_v28  ;;  %v677_v49 = vor.u32 %v676_v22, %v675_v8  ;;  %v685_v45 = vshrl.u32 %v5887_v46, %v670_v29  ;;  %v683_v59 = vor.u32 %v682_v42, %v681_v2 }
  0xdc   :  { %5859 = vsinq.f32 %v537_v28  ;;  %v618_v26 = vsub.s32 0, %v6829_v63  ;;  %vm687_vm5 = vcmp.lt.s32.totalorder %v6810_v23, 1  ;;  %vm543_vm1 = vcmp.lt.s32.totalorder %v6802_v27, 2 }
  0xdd   :  { %5462 = vmatmul.mubr.msk.f32.gmra.mrb[12].mxu1 %vm7682_vm14, %v6418_v5  ;;  %v680_v5 = vor.u32 %v679_v34, %v678_v38  ;;  %vm1372_vm10 = vcmp.lt.s32.totalorder %v6804_v18, 2  ;;  %v638_v51 = vsub.s32 4, %v6806_v50  ;;  %v686_v14 = vor.u32 %v685_v45, %v684_v3 }
  0xde   :  { %3327 = vmatprep.mubr.f32.mxu1 %v5881_v6  ;;  %v5405_v30 = vmin.u32 %v618_v26, %v6829_v63  ;;  %vm690_vm11 = vcmp.lt.s32.totalorder %v6810_v23, 4  ;;  %v762_v1 = vshrl.u32 %v761_v9, 23  ;;  %vm541_vm9 = vweird.f32 %v6062_v48 }
  0xdf   :  { %vm689_vm12 = vcmp.lt.s32.totalorder %v6810_v23, 3  ;;  %v691_v0 = vsel %vm687_vm5, %v671_v40, %v674_v47  ;;  %v692_v12 = vsel %vm690_vm11, %v680_v5, 2102212464  ;;  %vm688_vm14 = vcmp.lt.s32.totalorder %v6810_v23, 2 }
  0xe0   :  { %v620_v58 = vclz %v5405_v30  ;;  %v693_v17 = vsel %vm689_vm12, %v677_v49, %v692_v12  ;;  %v695_v52 = vsel %vm687_vm5, %v674_v47, %v677_v49  ;;  %v703_v7 = vshll.u32 %v663_v55, 8 }
  0xe1   :  { %5463 = vmatmul.mubr.msk.f32.gmra.mrb[14].mxu1 %vm7671_vm3, %v6448_v25  ;;  %v608_v25 = vadd.s32 %v6768_v57, %v6723_v32  ;;  %v696_v11 = vsel %vm690_vm11, %v683_v59, 920167782  ;;  %v699_v56 = vsel %vm687_vm5, %v677_v49, %v680_v5  ;;  %v639_v29 = vsel %vm554_vm13, %v638_v51, %v6806_v50 }
  0xe2   :  { %3487 = vmatprep.mubr.f32.mxu1 %v5881_v6  ;;  %v5406_v10 = vadd.s32 4294967294, %v620_v58  ;;  %v694_v61 = vsel %vm688_vm14, %v691_v0, %v693_v17  ;;  %v697_v53 = vsel %vm689_vm12, %v680_v5, %v696_v11  ;;  %v700_v32 = vsel %vm690_vm11, %v686_v14, 1326507024 }
  0xe3   :  { %v698_v57 = vsel %vm688_vm14, %v695_v52, %v697_v53  ;;  %v701_v16 = vsel %vm689_vm12, %v683_v59, %v700_v32  ;;  %v5412_v13 = vadd.s32 4294967169, %v762_v1  ;;  %v710_v40 = vmul.u32 %v703_v7, %v694_v61 }
  0xe4   :  { %vm5407_vm3 = vcmp.lt.s32.totalorder %v5406_v10, 0  ;;  %v702_v50 = vsel %vm688_vm14, %v699_v56, %v701_v16  ;;  %v6887_v62 = vmul.u32.u64.low %v703_v7, %v698_v57  ;;  %v6888_v20 = vmul.u32.u64.high %v703_v7, %v698_v57, %v6887_v62 }
  0xe5   :  { %v5858_v8 = vpop.eup %5857  ;;  %v623_v38 = vsel %vm5407_vm3, 0, %v5406_v10  ;;  %v6892_v9 = vmul.u32.u64.low %v703_v7, %v702_v50  ;;  %v6893_v26 = vmul.u32.u64.high %v703_v7, %v702_v50, %v6892_v9  ;;  %v768_v5 = vadd.s32 1, %v5412_v13 }
  0xe6   :  { %v5860_v22 = vpop.eup %5859  ;;  %v548_v2 = vxor.u32 2147483648, %v5858_v8  ;;  %v624_v28 = vsub.s32 32, %v623_v38  ;;  %v625_v34 = vshll.u32 %v6829_v63, %v623_v38  ;;  %v628_v42 = vsub.s32 4294967266, %v623_v38 }
  0xe7   :  { %v545_v3 = vxor.u32 2147483648, %v5860_v22  ;;  %v713_v30 = vadd.s32 1, %v6888_v20  ;;  %v758_v12 = vand.u32 2147483647, %v6812_v15  ;;  %vm644_vm5 = vweird.f32 %v6399_v4 }
  0xe8   :  { %v549_v55 = vsel %vm547_vm15, %v548_v2, %v5860_v22  ;;  %v1378_v23 = vsel %vm1376_vm2, %v548_v2, %v5860_v22  ;;  %v626_v47 = vshrl.u32 %v608_v25, %v624_v28  ;;  %v629_v49 = vadd.s32 127, %v628_v42 }
  0xe9   :  { %v546_v45 = vsel %vm544_vm4, %v5858_v8, %v545_v3  ;;  %v1375_v63 = vsel %vm1373_vm6, %v5858_v8, %v545_v3  ;;  %vm712_vm15 = vc.u32 %v6893_v26, %v6887_v62  ;;  %vm6917_vm2 = vcmp.le.f32.partialorder %v552_v60, 0.7853982 }
  0xea   :  { %v550_v59 = vsel %vm543_vm1, %v546_v45, %v549_v55  ;;  %v1379_v51 = vsel %vm1372_vm10, %v1375_v63, %v1378_v23  ;;  %v627_v14 = vor.u32 %v626_v47, %v625_v34  ;;  %v630_v1 = vshll.u32 %v629_v49, 23 }
  0xeb   :  { %v551_v58 = vsel %vm541_vm9, nan, %v550_v59  ;;  %v1380_v0 = vsel %vm541_vm9, nan, %v1379_v51  ;;  %v641_v25 = vsel %vm6917_vm2, 0, %v639_v29  ;;  %v714_v48 = vsel %vm712_vm15, %v713_v30, %v6888_v20 }
  0xec   :  { %v1709_v17 = vrot.slane %v551_v58, 5  ;;  %v1749_v52 = vrot.slane %v1380_v0, 5  ;;  %v631_v18 = vor.u32 4788187, %v630_v1  ;;  %v634_v7 = vcvt.s32.f32 %v627_v14 }
  0xed   :  { %vm769_vm4 = vcmp.gt.s32.totalorder %v768_v5, 0  ;;  %v6924_v61 = vadd.s32 %v714_v48, %v710_v40  ;;  %v6926_v53 = vand.u32 3, %v641_v25  ;;  %v6930_v60 = vand.u32 8388607, %v758_v12 }
  0xee   :  { %v1710_v10 = vrot.slane %v1709_v17, 4  ;;  %v1750_v11 = vrot.slane %v1749_v52, 4  ;;  %v632_v56 = vand.u32 2147483647, %v631_v18  ;;  %v1474_v29 = vadd.s32 3, %v641_v25 }
  0xef   :  { %v716_v38 = vadd.s32 536870912, %v6924_v61  ;;  %v6933_v50 = vsel %vm769_vm4, %v768_v5, 0  ;;  %vm646_vm1 = vcmp.lt.s32.totalorder %v6926_v53, 2  ;;  %vm647_vm10 = vcmp.eq.s32.totalorder %v6926_v53, 0 }
  0xf0   :  { %v1729_v32 = vmul.f32 %v1710_v10, %v551_v58  ;;  %v1769_v57 = vmul.f32 %v1750_v11, %v551_v58  ;;  %v1777_v16 = vmul.f32 %v1710_v10, %v1380_v0  ;;  %v1785_v13 = vmul.f32 %v1750_v11, %v1380_v0 }
  0xf1   :  { %v635_v8 = vmul.f32 %v634_v7, %v632_v56  ;;  %vm650_vm11 = vcmp.eq.s32.totalorder %v6926_v53, 2  ;;  %v7018_v53 = vld [vmem:[%s7648_s1] sm:$0xff] }
  0xf2   :  { %v1836_v20 = vrot.slane %v1729_v32, %v6034_v24  ;;  %v1924_v22 = vrot.slane %v1769_v57, %v6034_v24  ;;  %v2012_v2 = vrot.slane %v1777_v16, %v6034_v24  ;;  %v2100_v28 = vrot.slane %v1785_v13, %v6034_v24 }
  0xf3   :  { %v2231_v34 = vrot.slane %v1729_v32, %v6053_v41  ;;  %v2391_v42 = vrot.slane %v1769_v57, %v6053_v41  ;;  %v2551_v3 = vrot.slane %v1777_v16, %v6053_v41  ;;  %v2711_v9 = vrot.slane %v1785_v13, %v6053_v41 }
  0xf4   :  { %v2151_v40 = vsel %vm2141_vm0, %v1836_v20, %v1924_v22  ;;  %v636_v55 = vxor.u32 2147483648, %v635_v8  ;;  %v1832_v23 = vrot.slane %v1729_v32, %v6056_v43  ;;  %v1920_v47 = vrot.slane %v1769_v57, %v6056_v43 }
  0xf5   :  { %v2168_v49 = vsel %vm2158_vm7, %v2151_v40, %v2012_v2  ;;  %v2311_v45 = vrot.slane %v2231_v34, %v6044_v36  ;;  %v2471_v63 = vrot.slane %v2391_v42, %v6044_v36  ;;  %v2631_v30 = vrot.slane %v2551_v3, %v6044_v36 }
  0xf6   :  { %v2185_v5 = vsel %vm2175_vm8, %v2168_v49, %v2100_v28  ;;  %v2791_v59 = vrot.slane %v2711_v9, %v6044_v36  ;;  %v637_v51 = vsel %vm554_vm13, %v636_v55, %v635_v8  ;;  %v2008_v14 = vrot.slane %v1777_v16, %v6056_v43 }
  0xf7   :  { %v2345_v1 = vmul.f32 %v2311_v45, %v2185_v5  ;;  %v2505_v58 = vmul.f32 %v2471_v63, %v2185_v5  ;;  %v2665_v0 = vmul.f32 %v2631_v30, %v2185_v5  ;;  %v640_v17 = vsel %vm6917_vm2, %v6399_v4, %v637_v51 }
  0xf8   :  { %v2825_v52 = vmul.f32 %v2791_v59, %v2185_v5  ;;  %5861 = vcosq.f32 %v640_v17  ;;  %v2096_v18 = vrot.slane %v1785_v13, %v6056_v43  ;;  %v2150_v7 = vsel %vm2141_vm0, %v1832_v23, %v1920_v47 }
  0xf9   :  { %v2857_v25 = vrot.slane %v2505_v58, 4  ;;  %5863 = vsinq.f32 %v640_v17  ;;  %v2167_v48 = vsel %vm2158_vm7, %v2150_v7, %v2008_v14  ;;  %v2227_v10 = vrot.slane %v1729_v32, %v6044_v36 }
  0xfa   :  { %v2905_v11 = vrot.slane %v2825_v52, 4  ;;  %v2184_v56 = vsel %vm2175_vm8, %v2167_v48, %v2096_v18  ;;  %v2387_v8 = vrot.slane %v1769_v57, %v6044_v36  ;;  %v2547_v27 = vrot.slane %v1777_v16, %v6044_v36 }
  0xfb   :  { %vm7685_vm13 = vcmask 1043456   ;;  %v2307_v22 = vrot.slane %v2227_v10, %v6044_v36  ;;  %v2707_v2 = vrot.slane %v1785_v13, %v6044_v36  ;;  %v6968_v28 = vshrl.u32 %v716_v38, 30 }
  0xfc   :  { %v2938_v20 = vsel %vm7685_vm13, %v2345_v1, %v2857_v25  ;;  %vm7686_vm6 = vmmov %vm7685_vm13  ;;  %v2467_v42 = vrot.slane %v2387_v8, %v6044_v36  ;;  %v2627_v32 = vrot.slane %v2547_v27, %v6044_v36  ;;  %v772_v3 = vand.u32 31, %v6933_v50 }
  0xfd   :  { %v2954_v34 = vsel %vm7686_vm6, %v2665_v0, %v2905_v11  ;;  %v1475_v57 = vand.u32 3, %v1474_v29  ;;  %v2787_v16 = vrot.slane %v2707_v2, %v6044_v36  ;;  %v718_v40 = vshll.u32 %v6968_v28, 30  ;;  %vm7687_vm3 = vmmov %vm7686_vm6 }
  0xfe   :  { %v5657_v9 = vpack.c.bf16 %v2954_v34, %v2938_v20  ;;  %v2344_v55 = vmul.f32 %v2307_v22, %v2184_v56  ;;  %v2504_v13 = vmul.f32 %v2467_v42, %v2184_v56  ;;  %v766_v38 = vor.u32 8388608, %v6930_v60  ;;  %vm7688_vm15 = vmmov %vm7687_vm3 }
  0xff   :  { %v2664_v23 = vmul.f32 %v2627_v32, %v2184_v56  ;;  %v2824_v47 = vmul.f32 %v2787_v16, %v2184_v56  ;;  %v6980_v49 = vsub.s32 %v6924_v61, %v718_v40  ;;  %v773_v45 = vsub.s32 32, %v772_v3 }
 0x100   :  { %5658 = vmatprep.subr.bf16.mxu0 %v5657_v9  ;;  %v2856_v29 = vrot.slane %v2504_v13, 4  ;;  %vm1476_vm9 = vcmp.lt.s32.totalorder %v1475_v57, 2  ;;  %vm1477_vm12 = vcmp.eq.s32.totalorder %v1475_v57, 0  ;;  %vm1480_vm14 = vcmp.eq.s32.totalorder %v1475_v57, 2 }
 0x101   :  { %v2904_v63 = vrot.slane %v2824_v47, 4  ;;  %v721_v30 = vsub.s32 0, %v6980_v49  ;;  %v711_v59 = vadd.s32 %v6887_v62, %v6893_v26  ;;  %v6988_v61 = vshll.u32 %v766_v38, 8 }
 0x102   :  { %v5862_v60 = vpop.eup %5861  ;;  %v2937_v5 = vsel %vm7687_vm3, %v2344_v55, %v2856_v29  ;;  %v6993_v0 = vshrl.u32 %v6933_v50, 5  ;;  %v775_v18 = vshll.u32 %v5882_v31, %v772_v3  ;;  %v776_v7 = vshrl.u32 %v5883_v33, %v773_v45 }
 0x103   :  { %v5864_v51 = vpop.eup %5863  ;;  %v651_v14 = vxor.u32 2147483648, %v5862_v60  ;;  %v2953_v1 = vsel %vm7688_vm15, %v2664_v23, %v2904_v63  ;;  %v5409_v58 = vmin.u32 %v721_v30, %v6980_v49  ;;  %v778_v48 = vshll.u32 %v5883_v33, %v772_v3  ;;  %v7048_v63 = vld [vmem:[%s7648_s1 + $0x8] sm:$0xff] }
 0x104   :  { %v648_v17 = vxor.u32 2147483648, %v5864_v51  ;;  %v5659_v52 = vpack.c.bf16 %v2953_v1, %v2937_v5  ;;  %v779_v50 = vshrl.u32 %v5884_v35, %v773_v45  ;;  %v781_v56 = vshll.u32 %v5884_v35, %v772_v3 }
 0x105   :  { %v652_v62 = vsel %vm650_vm11, %v651_v14, %v5864_v51  ;;  %v1482_v26 = vsel %vm1480_vm14, %v651_v14, %v5864_v51  ;;  %v723_v25 = vclz %v5409_v58  ;;  %v782_v22 = vshrl.u32 %v5885_v37, %v773_v45  ;;  %vm7696_vm14 = vmmov %vm7687_vm3 }
 0x106   :  { %v649_v10 = vsel %vm647_vm10, %v5862_v60, %v648_v17  ;;  %v1479_v11 = vsel %vm1477_vm12, %v5862_v60, %v648_v17  ;;  %5660 = vmatpush1.bf16.msra.mxu0 %v5659_v52  ;;  %v784_v34 = vshll.u32 %v5885_v37, %v772_v3  ;;  %v785_v42 = vshrl.u32 %v5886_v39, %v773_v45  ;;  %vm7695_vm12 = vmmov %vm7687_vm3 }
 0x107   :  { %v653_v8 = vsel %vm646_vm1, %v649_v10, %v652_v62  ;;  %v1483_v27 = vsel %vm1476_vm9, %v1479_v11, %v1482_v26  ;;  %v5410_v20 = vadd.s32 4294967294, %v723_v25  ;;  %vm7689_vm2 = vcmask 130048   ;;  %vm7697_vm15 = vmmov %vm7695_vm12 }
 0x108   :  { %v654_v33 = vsel %vm644_vm5, nan, %v653_v8  ;;  %v1484_v2 = vsel %vm644_vm5, nan, %v1483_v27  ;;  %v7023_v9 = vshrl.u32 %v5882_v31, %v773_v45  ;;  %v741_v37 = vsub.s32 4, %v6968_v28  ;;  %vm7690_vm13 = vmmov %vm7689_vm2 }
 0x109   :  { %v1711_v32 = vrot.slane %v654_v33, 5  ;;  %v1751_v35 = vrot.slane %v1484_v2, 5  ;;  %5464 = vmatmul.mubr.msk.f32.vlgmr.msra.gmra.mrb[16].mxu0 %vm7689_vm2, %v7018_v53  ;;  %vm5411_vm4 = vcmp.lt.s32.totalorder %v5410_v20, 0  ;;  %v7029_v57 = vshll.u32 %v5886_v39, %v772_v3  ;;  %vm7691_vm1 = vmmov %vm7689_vm2 }
 0x10a   :  { %v7025_v4 = vsel %vm5411_vm4, 0, %v5410_v20  ;;  %v7032_v16 = vshrl.u32 %v5887_v46, %v773_v45  ;;  %3404 = vmatprep.mubr.f32.mxu0 %v5881_v6  ;;  %v7036_v38 = vor.u32 %v776_v7, %v775_v18  ;;  %v7039_v23 = vor.u32 %v779_v50, %v778_v48  ;;  %v7074_v48 = vld [vmem:[%s7648_s1 + $0x10] sm:$0xff]  ;;  %vm7692_vm11 = vmmov %vm7691_vm1 }
 0x10b   :  { %v1712_v40 = vrot.slane %v1711_v32, 4  ;;  %v1752_v55 = vrot.slane %v1751_v35, 4  ;;  %v727_v13 = vsub.s32 32, %v7025_v4  ;;  %v731_v31 = vsub.s32 4294967266, %v7025_v4  ;;  %vm7698_vm2 = vmmov %vm7695_vm12 }
 0x10c   :  { %v7041_v47 = vor.u32 %v782_v22, %v781_v56  ;;  %v7043_v29 = vor.u32 %v785_v42, %v784_v34  ;;  %v728_v30 = vshll.u32 %v6980_v49, %v7025_v4  ;;  %v789_v51 = vor.u32 %v7032_v16, %v7029_v57 }
 0x10d   :  { %v1730_v39 = vmul.f32 %v1712_v40, %v654_v33  ;;  %v1770_v3 = vmul.f32 %v1752_v55, %v654_v33  ;;  %v1778_v46 = vmul.f32 %v1712_v40, %v1484_v2  ;;  %v1786_v45 = vmul.f32 %v1752_v55, %v1484_v2  ;;  %5465 = vmatmul.mubr.msk.f32.gmra.mrb[18].mxu0 %vm7690_vm13, %v7048_v63  ;;  %v7095_v55 = vld [vmem:[%s7648_s1 + $0x18] sm:$0xff]  ;;  %vm7699_vm13 = vmmov %vm7691_vm1 }
 0x10e   :  { %v729_v60 = vshrl.u32 %v711_v59, %v727_v13  ;;  %v732_v5 = vadd.s32 127, %v731_v31  ;;  %3410 = vmatprep.mubr.f32.mxu0 %v5881_v6  ;;  %vm790_vm6 = vcmp.lt.s32.totalorder %v6993_v0, 1  ;;  %vm793_vm5 = vcmp.lt.s32.totalorder %v6993_v0, 4 }
 0x10f   :  { %v1844_v14 = vrot.slane %v1730_v39, %v6034_v24  ;;  %v1932_v1 = vrot.slane %v1770_v3, %v6034_v24  ;;  %v2020_v58 = vrot.slane %v1778_v46, %v6034_v24  ;;  %v2108_v17 = vrot.slane %v1786_v45, %v6034_v24 }
 0x110   :  { %v2239_v52 = vrot.slane %v1730_v39, %v6053_v41  ;;  %v2399_v18 = vrot.slane %v1770_v3, %v6053_v41  ;;  %v2559_v49 = vrot.slane %v1778_v46, %v6053_v41  ;;  %v2719_v59 = vrot.slane %v1786_v45, %v6053_v41 }
 0x111   :  { %v2153_v7 = vsel %vm2141_vm0, %v1844_v14, %v1932_v1  ;;  %v1840_v62 = vrot.slane %v1730_v39, %v6056_v43  ;;  %v1928_v26 = vrot.slane %v1770_v3, %v6056_v43  ;;  %v2016_v25 = vrot.slane %v1778_v46, %v6056_v43  ;;  %5466 = vmatmul.mubr.msk.f32.gmra.mrb[20].mxu0 %vm7691_vm1, %v7074_v48 }
 0x112   :  { %v2170_v10 = vsel %vm2158_vm7, %v2153_v7, %v2020_v58  ;;  %v2319_v11 = vrot.slane %v2239_v52, %v6044_v36  ;;  %v2479_v50 = vrot.slane %v2399_v18, %v6044_v36  ;;  %v2639_v56 = vrot.slane %v2559_v49, %v6044_v36  ;;  %3416 = vmatprep.mubr.f32.mxu0 %v5881_v6 }
 0x113   :  { %v2187_v8 = vsel %vm2175_vm8, %v2170_v10, %v2108_v17  ;;  %v2799_v27 = vrot.slane %v2719_v59, %v6044_v36  ;;  %v2104_v20 = vrot.slane %v1786_v45, %v6056_v43  ;;  %v2152_v22 = vsel %vm2141_vm0, %v1840_v62, %v1928_v26 }
 0x114   :  { %vm791_vm10 = vcmp.lt.s32.totalorder %v6993_v0, 2  ;;  %v2347_v33 = vmul.f32 %v2319_v11, %v2187_v8  ;;  %v2507_v2 = vmul.f32 %v2479_v50, %v2187_v8  ;;  %v2667_v34 = vmul.f32 %v2639_v56, %v2187_v8 }
 0x115   :  { %v2169_v42 = vsel %vm2158_vm7, %v2152_v22, %v2016_v25  ;;  %v2827_v32 = vmul.f32 %v2799_v27, %v2187_v8  ;;  %v2235_v4 = vrot.slane %v1730_v39, %v6044_v36  ;;  %v2395_v40 = vrot.slane %v1770_v3, %v6044_v36  ;;  %5467 = vmatmul.mubr.msk.f32.gmra.mrb[22].mxu0 %vm7692_vm11, %v7095_v55 }
 0x116   :  { %v2186_v35 = vsel %vm2175_vm8, %v2169_v42, %v2104_v20  ;;  %v2859_v13 = vrot.slane %v2507_v2, 4  ;;  %v2555_v31 = vrot.slane %v1778_v46, %v6044_v36  ;;  %v2715_v14 = vrot.slane %v1786_v45, %v6044_v36  ;;  %3576 = vmatprep.mubr.f32.mxu0 %v5881_v6 }
 0x117   :  { %v730_v1 = vor.u32 %v729_v60, %v728_v30  ;;  %v2907_v58 = vrot.slane %v2827_v32, 4  ;;  %v2315_v39 = vrot.slane %v2235_v4, %v6044_v36  ;;  %v2475_v3 = vrot.slane %v2395_v40, %v6044_v36 }
 0x118   :  { %vm7106_vm9 = vcmp.le.f32.partialorder %v655_v44, 0.7853982  ;;  %v733_v52 = vshll.u32 %v732_v5, 23  ;;  %v2940_v18 = vsel %vm7695_vm12, %v2347_v33, %v2859_v13  ;;  %v2635_v46 = vrot.slane %v2555_v31, %v6044_v36 }
 0x119   :  { %v2795_v45 = vrot.slane %v2715_v14, %v6044_v36  ;;  %v737_v30 = vcvt.s32.f32 %v730_v1  ;;  %v2956_v60 = vsel %vm7696_vm14, %v2667_v34, %v2907_v58  ;;  %v2346_v49 = vmul.f32 %v2315_v39, %v2186_v35 }
 0x11a   :  { %v2506_v59 = vmul.f32 %v2475_v3, %v2186_v35  ;;  %v734_v7 = vor.u32 4788187, %v733_v52  ;;  %v5661_v62 = vpack.c.bf16 %v2956_v60, %v2940_v18  ;;  %v2666_v26 = vmul.f32 %v2635_v46, %v2186_v35 }
 0x11b   :  { %v2826_v25 = vmul.f32 %v2795_v45, %v2186_v35  ;;  %vm792_vm3 = vcmp.lt.s32.totalorder %v6993_v0, 3  ;;  %v795_v5 = vsel %vm793_vm5, %v7041_v47, 2102212464  ;;  %v798_v11 = vsel %vm790_vm6, %v7036_v38, %v7039_v23 }
 0x11c   :  { %v2858_v44 = vrot.slane %v2506_v59, 4  ;;  %v735_v10 = vand.u32 2147483647, %v734_v7  ;;  %5662 = vmatprep.subr.bf16.mxu1 %v5661_v62  ;;  %v794_v56 = vsel %vm790_vm6, %v7023_v9, %v7036_v38  ;;  %v796_v8 = vsel %vm792_vm3, %v7039_v23, %v795_v5 }
 0x11d   :  { %v2906_v50 = vrot.slane %v2826_v25, 4  ;;  %v799_v27 = vsel %vm793_vm5, %v7043_v29, 920167782  ;;  %v802_v9 = vsel %vm790_vm6, %v7039_v23, %v7041_v47  ;;  %vm657_vm4 = vcmp.lt.s32.totalorder %v6612_v19, 0 }
 0x11e   :  { %v2939_v20 = vsel %vm7697_vm15, %v2346_v49, %v2858_v44  ;;  %v738_v22 = vmul.f32 %v737_v30, %v735_v10  ;;  %v800_v33 = vsel %vm792_vm3, %v7041_v47, %v799_v27  ;;  %v803_v34 = vsel %vm793_vm5, %v789_v51, 1326507024  ;;  %vm7700_vm5 = vmmov %vm7691_vm1 }
 0x11f   :  { %v2955_v38 = vsel %vm7698_vm2, %v2666_v26, %v2906_v50  ;;  %v801_v2 = vsel %vm791_vm10, %v798_v11, %v800_v33  ;;  %v742_v35 = vsel %vm657_vm4, %v741_v37, %v6968_v28  ;;  %v804_v23 = vsel %vm792_vm3, %v7043_v29, %v803_v34  ;;  %vm7701_vm2 = vmmov %vm7691_vm1 }
 0x120   :  { %v5663_v42 = vpack.c.bf16 %v2955_v38, %v2939_v20  ;;  %v739_v32 = vxor.u32 2147483648, %v738_v22  ;;  %v797_v47 = vsel %vm791_vm10, %v794_v56, %v796_v8  ;;  %v805_v4 = vsel %vm791_vm10, %v802_v9, %v804_v23 }
 0x121   :  { %v7160_v57 = vmul.u32.u64.low %v6988_v61, %v801_v2  ;;  %v7161_v16 = vmul.u32.u64.high %v6988_v61, %v801_v2, %v7160_v57  ;;  %v7164_v40 = vmul.u32.u64.low %v6988_v61, %v805_v4  ;;  %v7165_v13 = vmul.u32.u64.high %v6988_v61, %v805_v4, %v7164_v40 }
 0x122   :  { %5664 = vmatpush1.bf16.msra.mxu1 %v5663_v42  ;;  %v740_v51 = vsel %vm657_vm4, %v739_v32, %v738_v22  ;;  %v744_v37 = vsel %vm7106_vm9, 0, %v742_v35  ;;  %v813_v0 = vmul.u32 %v6988_v61, %v797_v47  ;;  %vm747_vm15 = vweird.f32 %v6612_v19 }
 0x123   :  { %v743_v28 = vsel %vm7106_vm9, %v6612_v19, %v740_v51  ;;  %v816_v29 = vadd.s32 1, %v7161_v16  ;;  %v1578_v31 = vadd.s32 3, %v744_v37  ;;  %vm815_vm6 = vc.u32 %v7165_v13, %v7160_v57 }
 0x124   :  { %5865 = vcosq.f32 %v743_v28  ;;  %v748_v58 = vand.u32 3, %v744_v37  ;;  %v814_v38 = vadd.s32 %v7160_v57, %v7165_v13 }
 0x125   :  { %5468 = vmatmul.mubr.msk.f32.vlgmr.msra.gmra.mrb[16].mxu1 %vm7699_vm13, %v7018_v53  ;;  %5867 = vsinq.f32 %v743_v28  ;;  %v817_v14 = vsel %vm815_vm6, %v816_v29, %v7161_v16  ;;  %v1579_v39 = vand.u32 3, %v1578_v31  ;;  %vm7702_vm13 = vcmask 1043456  }
 0x126   :  { %3493 = vmatprep.mubr.f32.mxu1 %v5881_v6  ;;  %v818_v1 = vadd.s32 %v817_v14, %v813_v0  ;;  %vm753_vm10 = vcmp.eq.s32.totalorder %v748_v58, 2  ;;  %vm750_vm9 = vcmp.eq.s32.totalorder %v748_v58, 0  ;;  %vm749_vm14 = vcmp.lt.s32.totalorder %v748_v58, 2  ;;  %vm7703_vm6 = vmmov %vm7702_vm13 }
 0x127   :  { %vm1584_vm11 = vcmp.eq.s32.totalorder %v1579_v39, 2  ;;  %vm1581_vm12 = vcmp.eq.s32.totalorder %v1579_v39, 0  ;;  %vm1580_vm3 = vcmp.lt.s32.totalorder %v1579_v39, 2 }
 0x128   :  { %v819_v61 = vadd.s32 536870912, %v818_v1 }
 0x129   :  { %5469 = vmatmul.mubr.msk.f32.gmra.mrb[18].mxu1 %vm7700_vm5, %v7048_v63  ;;  %vm759_vm5 = vcmp.le.f32.partialorder %v758_v12, 0.7853982 }
 0x12a   :  { %3499 = vmatprep.mubr.f32.mxu1 %v5881_v6  ;;  %v7182_v3 = vshrl.u32 %v819_v61, 30 }
 0x12c   :  { %v821_v52 = vshll.u32 %v7182_v3, 30 }
 0x12d   :  { %5470 = vmatmul.mubr.msk.f32.gmra.mrb[20].mxu1 %vm7691_vm1, %v7074_v48  ;;  %vm760_vm1 = vcmp.lt.s32.totalorder %v6812_v15, 0 }
 0x12e   :  { %v5866_v17 = vpop.eup %5865  ;;  %3505 = vmatprep.mubr.f32.mxu1 %v5881_v6  ;;  %v822_v30 = vsub.s32 %v818_v1, %v821_v52 }
 0x12f   :  { %v5868_v18 = vpop.eup %5867  ;;  %v754_v46 = vxor.u32 2147483648, %v5866_v17 }
 0x130   :  { %v751_v45 = vxor.u32 2147483648, %v5868_v18  ;;  %v824_v62 = vsub.s32 0, %v822_v30 }
 0x131   :  { %v755_v60 = vsel %vm753_vm10, %v754_v46, %v5868_v18  ;;  %v1586_v49 = vsel %vm1584_vm11, %v754_v46, %v5868_v18  ;;  %5471 = vmatmul.mubr.msk.f32.gmra.mrb[22].mxu1 %vm7701_vm2, %v7095_v55  ;;  %vm7704_vm10 = vmmov %vm7703_vm6 }
 0x132   :  { %v752_v59 = vsel %vm750_vm9, %v5866_v17, %v751_v45  ;;  %v1583_v7 = vsel %vm1581_vm12, %v5866_v17, %v751_v45  ;;  %3665 = vmatprep.mubr.f32.mxu1 %v5881_v6  ;;  %v5413_v5 = vmin.u32 %v824_v62, %v822_v30  ;;  %vm7705_vm11 = vmmov %vm7703_vm6 }
 0x133   :  { %v756_v26 = vsel %vm749_vm14, %v752_v59, %v755_v60  ;;  %v1587_v25 = vsel %vm1580_vm3, %v1583_v7, %v1586_v49  ;;  %vm7706_vm9 = vmmov %vm7701_vm2 }
 0x134   :  { %v757_v44 = vsel %vm747_vm15, nan, %v756_v26  ;;  %v1588_v10 = vsel %vm747_vm15, nan, %v1587_v25  ;;  %v826_v56 = vclz %v5413_v5  ;;  %vm7707_vm12 = vmmov %vm7701_vm2 }
 0x135   :  { %v1713_v11 = vrot.slane %v757_v44, 5  ;;  %v1753_v50 = vrot.slane %v1588_v10, 5 }
 0x136   :  { %v5414_v27 = vadd.s32 4294967294, %v826_v56 }
 0x137   :  { %v1714_v8 = vrot.slane %v1713_v11, 4  ;;  %v1754_v19 = vrot.slane %v1753_v50, 4 }
 0x138   :  { %vm5415_vm4 = vcmp.lt.s32.totalorder %v5414_v27, 0 }
 0x139   :  { %v1731_v20 = vmul.f32 %v1714_v8, %v757_v44  ;;  %v1771_v22 = vmul.f32 %v1754_v19, %v757_v44  ;;  %v1779_v33 = vmul.f32 %v1714_v8, %v1588_v10  ;;  %v1787_v9 = vmul.f32 %v1754_v19, %v1588_v10 }
 0x13a   :  { %v829_v57 = vsel %vm5415_vm4, 0, %v5414_v27 }
 0x13b   :  { %v1852_v2 = vrot.slane %v1731_v20, %v6034_v24  ;;  %v1940_v34 = vrot.slane %v1771_v22, %v6034_v24  ;;  %v2028_v42 = vrot.slane %v1779_v33, %v6034_v24  ;;  %v2116_v32 = vrot.slane %v1787_v9, %v6034_v24 }
 0x13c   :  { %v2247_v35 = vrot.slane %v1731_v20, %v6053_v41  ;;  %v2407_v23 = vrot.slane %v1771_v22, %v6053_v41  ;;  %v2567_v47 = vrot.slane %v1779_v33, %v6053_v41  ;;  %v2727_v4 = vrot.slane %v1787_v9, %v6053_v41 }
 0x13d   :  { %v2155_v16 = vsel %vm2141_vm0, %v1852_v2, %v1940_v34  ;;  %v1848_v51 = vrot.slane %v1731_v20, %v6056_v43  ;;  %v1936_v40 = vrot.slane %v1771_v22, %v6056_v43  ;;  %v830_v14 = vsub.s32 32, %v829_v57 }
 0x13e   :  { %v2172_v13 = vsel %vm2158_vm7, %v2155_v16, %v2028_v42  ;;  %v2327_v28 = vrot.slane %v2247_v35, %v6044_v36  ;;  %v2487_v37 = vrot.slane %v2407_v23, %v6044_v36  ;;  %v2647_v0 = vrot.slane %v2567_v47, %v6044_v36 }
 0x13f   :  { %v2189_v29 = vsel %vm2175_vm8, %v2172_v13, %v2116_v32  ;;  %v2807_v31 = vrot.slane %v2727_v4, %v6044_v36  ;;  %v831_v1 = vshll.u32 %v822_v30, %v829_v57  ;;  %v834_v17 = vsub.s32 4294967266, %v829_v57 }
 0x140   :  { %v2349_v58 = vmul.f32 %v2327_v28, %v2189_v29  ;;  %v2509_v39 = vmul.f32 %v2487_v37, %v2189_v29  ;;  %v2669_v61 = vmul.f32 %v2647_v0, %v2189_v29  ;;  %v832_v18 = vshrl.u32 %v814_v38, %v830_v14 }
 0x141   :  { %v2829_v52 = vmul.f32 %v2807_v31, %v2189_v29  ;;  %v2024_v46 = vrot.slane %v1779_v33, %v6056_v43  ;;  %v2112_v45 = vrot.slane %v1787_v9, %v6056_v43  ;;  %v835_v49 = vadd.s32 127, %v834_v17 }
 0x142   :  { %v2861_v60 = vrot.slane %v2509_v39, 4  ;;  %v2154_v59 = vsel %vm2141_vm0, %v1848_v51, %v1936_v40  ;;  %v2243_v7 = vrot.slane %v1731_v20, %v6044_v36  ;;  %v833_v26 = vor.u32 %v832_v18, %v831_v1 }
 0x143   :  { %v2909_v62 = vrot.slane %v2829_v52, 4  ;;  %v2171_v30 = vsel %vm2158_vm7, %v2154_v59, %v2024_v46  ;;  %v2403_v25 = vrot.slane %v1771_v22, %v6044_v36  ;;  %v836_v10 = vshll.u32 %v835_v49, 23 }
 0x144   :  { %v2942_v44 = vsel %vm7702_vm13, %v2349_v58, %v2861_v60  ;;  %v2188_v5 = vsel %vm2175_vm8, %v2171_v30, %v2112_v45  ;;  %v2323_v11 = vrot.slane %v2243_v7, %v6044_v36  ;;  %v2563_v8 = vrot.slane %v1779_v33, %v6044_v36 }
 0x145   :  { %v2958_v50 = vsel %vm7703_vm6, %v2669_v61, %v2909_v62  ;;  %v2483_v56 = vrot.slane %v2403_v25, %v6044_v36  ;;  %v837_v27 = vor.u32 4788187, %v836_v10  ;;  %v840_v20 = vcvt.s32.f32 %v833_v26  ;;  %vm7708_vm6 = vmmov %vm7706_vm9 }
 0x146   :  { %v5665_v19 = vpack.c.bf16 %v2958_v50, %v2942_v44  ;;  %v2723_v38 = vrot.slane %v1787_v9, %v6044_v36  ;;  %v2643_v22 = vrot.slane %v2563_v8, %v6044_v36  ;;  %v844_v42 = vsub.s32 4, %v7182_v3 }
 0x147   :  { %v2508_v2 = vmul.f32 %v2483_v56, %v2188_v5  ;;  %v838_v34 = vand.u32 2147483647, %v837_v27  ;;  %v2348_v32 = vmul.f32 %v2323_v11, %v2188_v5 }
 0x148   :  { %5666 = vmatprep.subr.bf16.mxu0 %v5665_v19  ;;  %v2803_v35 = vrot.slane %v2723_v38, %v6044_v36  ;;  %v2668_v4 = vmul.f32 %v2643_v22, %v2188_v5  ;;  %v845_v9 = vsel %vm760_vm1, %v844_v42, %v7182_v3 }
 0x149   :  { %v2860_v23 = vrot.slane %v2508_v2, 4  ;;  %v841_v47 = vmul.f32 %v840_v20, %v838_v34  ;;  %v847_v37 = vsel %vm759_vm5, 0, %v845_v9 }
 0x14a   :  { %v2828_v16 = vmul.f32 %v2803_v35, %v2188_v5  ;;  %v1682_v12 = vadd.s32 3, %v847_v37  ;;  %v851_v14 = vand.u32 3, %v847_v37 }
 0x14b   :  { %v842_v33 = vxor.u32 2147483648, %v841_v47  ;;  %v2941_v51 = vsel %vm7704_vm10, %v2348_v32, %v2860_v23  ;;  %vm3755_vm10 = vcmask 261120  }
 0x14c   :  { %v2908_v57 = vrot.slane %v2828_v16, 4  ;;  %v1683_v1 = vand.u32 3, %v1682_v12  ;;  %vm852_vm14 = vcmp.lt.s32.totalorder %v851_v14, 2  ;;  %vm853_vm3 = vcmp.eq.s32.totalorder %v851_v14, 0 }
 0x14d   :  { %v843_v40 = vsel %vm760_vm1, %v842_v33, %v841_v47  ;;  %vm856_vm15 = vcmp.eq.s32.totalorder %v851_v14, 2  ;;  %vm7709_vm1 = vmmov %vm7708_vm6 }
 0x14e   :  { %v2957_v13 = vsel %vm7705_vm11, %v2668_v4, %v2908_v57  ;;  %v846_v28 = vsel %vm759_vm5, %v6812_v15, %v843_v40  ;;  %vm1688_vm2 = vcmp.eq.s32.totalorder %v1683_v1, 2  ;;  %vm1684_vm4 = vcmp.lt.s32.totalorder %v1683_v1, 2 }
 0x14f   :  { %v5667_v0 = vpack.c.bf16 %v2957_v13, %v2941_v51  ;;  %5869 = vcosq.f32 %v846_v28  ;;  %vm1685_vm13 = vcmp.eq.s32.totalorder %v1683_v1, 0  ;;  %vm850_vm5 = vweird.f32 %v6812_v15  ;;  %v7271_v15 = vld [vmem:[%s7649_s2] sm:$0xf] }
 0x150   :  { %5871 = vsinq.f32 %v846_v28  ;;  %v3044_v29 = vpop.f32.mrb[0].mxu0 }
 0x151   :  { %5668 = vmatpush1.bf16.msra.mxu0 %v5667_v0  ;;  %v3046_v31 = vpop.f32.mrb[1].mxu0  ;;  %v3690_v58 = vmul.f32 %v3044_v29, %v3044_v29 }
 0x152   :  { %v3691_v17 = vmul.f32 %v3046_v31, %v3046_v31 }
 0x154   :  { %5472 = vmatmul.mubr.msk.f32.vlgmr.msra.gmra.mrb[24].mxu0 %vm7706_vm9, %v7018_v53  ;;  %v3050_v3 = vpop.f32.mrb[2].mxu0  ;;  %vm7714_vm9 = vmmov %vm7709_vm1 }
 0x155   :  { %3582 = vmatprep.mubr.f32.mxu0 %v5881_v6  ;;  %v3706_v39 = vmul.f32 %v3050_v3, %v3050_v3  ;;  %v3052_v61 = vpop.f32.mrb[3].mxu0 }
 0x156   :  { %v3707_v52 = vmul.f32 %v3052_v61, %v3052_v61 }
 0x157   :  { %v3133_v18 = vpop.f32.mrb[0].mxu1  ;;  %v5675_v46 = vpack.c.bf16 %v3706_v39, %v3690_v58 }
 0x158   :  { %5473 = vmatmul.mubr.msk.f32.gmra.mrb[26].mxu0 %vm7707_vm12, %v7048_v63  ;;  %v3135_v45 = vpop.f32.mrb[1].mxu1  ;;  %v5673_v60 = vpack.c.bf16 %v3707_v52, %v3691_v17  ;;  %v3056_v49 = vpop.f32.mrb[4].mxu0  ;;  %v7239_v30 = vmul.f32 %v3133_v18, %v3133_v18  ;;  %vm7715_vm12 = vmmov %vm7709_vm1 }
 0x159   :  { %3588 = vmatprep.mubr.f32.mxu0 %v5881_v6  ;;  %v5870_v59 = vpop.eup %5869  ;;  %v3058_v7 = vpop.f32.mrb[5].mxu0  ;;  %v7243_v44 = vmul.f32 %v3135_v45, %v3135_v45  ;;  %v3722_v5 = vmul.f32 %v3056_v49, %v3056_v49 }
 0x15a   :  { %v5872_v62 = vpop.eup %5871  ;;  %v857_v26 = vxor.u32 2147483648, %v5870_v59  ;;  %5674 = vmatprep.subr.bf16.mxu0 %v5673_v60  ;;  %v3723_v11 = vmul.f32 %v3058_v7, %v3058_v7 }
 0x15b   :  { %v854_v25 = vxor.u32 2147483648, %v5872_v62  ;;  %v3139_v10 = vpop.f32.mrb[2].mxu1  ;;  %5676 = vmatpush1.bf16.msra.mxu0 %v5675_v46 }
 0x15c   :  { %5474 = vmatmul.mubr.msk.f32.gmra.mrb[28].mxu0 %vm7708_vm6, %v7074_v48  ;;  %v858_v50 = vsel %vm856_vm15, %v857_v26, %v5872_v62  ;;  %v1690_v56 = vsel %vm1688_vm2, %v857_v26, %v5872_v62  ;;  %v7249_v8 = vmul.f32 %v3139_v10, %v3139_v10  ;;  %v3141_v19 = vpop.f32.mrb[3].mxu1  ;;  %v3062_v27 = vpop.f32.mrb[6].mxu0  ;;  %vm7353_vm15 = vcmp.lt.s32.totalorder %v1797_v21, 256 }
 0x15d   :  { %3594 = vmatprep.mubr.f32.mxu0 %v5881_v6  ;;  %v855_v20 = vsel %vm853_vm3, %v5870_v59, %v854_v25  ;;  %v1687_v38 = vsel %vm1685_vm13, %v5870_v59, %v854_v25  ;;  %v7253_v2 = vmul.f32 %v3141_v19, %v3141_v19  ;;  %v3738_v22 = vmul.f32 %v3062_v27, %v3062_v27  ;;  %v3064_v34 = vpop.f32.mrb[7].mxu0  ;;  %vm7717_vm3 = vmmov %vm7709_vm1 }
 0x15e   :  { %v859_v42 = vsel %vm852_vm14, %v855_v20, %v858_v50  ;;  %v1691_v32 = vsel %vm1684_vm4, %v1687_v38, %v1690_v56  ;;  %v5683_v35 = vpack.c.bf16 %v7249_v8, %v7239_v30  ;;  %v3739_v23 = vmul.f32 %v3064_v34, %v3064_v34  ;;  %vm7716_vm14 = vmmov %vm7709_vm1 }
 0x15f   :  { %v860_v47 = vsel %vm850_vm5, nan, %v859_v42  ;;  %v1692_v4 = vsel %vm850_vm5, nan, %v1691_v32  ;;  %v5681_v16 = vpack.c.bf16 %v7253_v2, %v7243_v44  ;;  %v3145_v33 = vpop.f32.mrb[4].mxu1  ;;  %v5679_v9 = vpack.c.bf16 %v3738_v22, %v3722_v5 }
 0x160   :  { %5475 = vmatmul.mubr.msk.f32.gmra.mrb[30].mxu0 %vm7709_vm1, %v7095_v55  ;;  %v1715_v57 = vrot.slane %v860_v47, 5  ;;  %v1755_v51 = vrot.slane %v1692_v4, 5  ;;  %v3147_v40 = vpop.f32.mrb[5].mxu1  ;;  %v5677_v13 = vpack.c.bf16 %v3739_v23, %v3723_v11  ;;  %v7273_v1 = vmul.f32 %v3145_v33, %v3145_v33 }
 0x161   :  { %3823 = vmatprep.mubr.f32.mxu0 %v5881_v6  ;;  %v3725_v58 = vmul.f32 %v3147_v40, %v3147_v40 }
 0x162   :  { %v1716_v28 = vrot.slane %v1715_v57, 4  ;;  %v1756_v37 = vrot.slane %v1755_v51, 4  ;;  %5678 = vmatprep.subr.bf16.mxu0 %v5677_v13 }
 0x163   :  { %v3151_v0 = vpop.f32.mrb[6].mxu1  ;;  %5680 = vmatpush1.bf16.msra.mxu0 %v5679_v9 }
 0x164   :  { %v1732_v29 = vmul.f32 %v1716_v28, %v860_v47  ;;  %v1772_v12 = vmul.f32 %v1756_v37, %v860_v47  ;;  %v1780_v31 = vmul.f32 %v1716_v28, %v1692_v4  ;;  %v1788_v3 = vmul.f32 %v1756_v37, %v1692_v4  ;;  %v3153_v14 = vpop.f32.mrb[7].mxu1 }
 0x165   :  { %v7275_v39 = vmul.f32 %v3151_v0, %v3151_v0  ;;  %v3741_v61 = vmul.f32 %v3153_v14, %v3153_v14 }
 0x166   :  { %v1860_v17 = vrot.slane %v1732_v29, %v6034_v24  ;;  %v1948_v52 = vrot.slane %v1772_v12, %v6034_v24  ;;  %v2036_v18 = vrot.slane %v1780_v31, %v6034_v24  ;;  %v2124_v46 = vrot.slane %v1788_v3, %v6034_v24  ;;  %5480 = vmatmul.mubr.msk.f32.vlgmr.msra.gmra.mrb[32].mxu0 %vm3755_vm10, %v7271_v15 }
 0x167   :  { %v2255_v45 = vrot.slane %v1732_v29, %v6053_v41  ;;  %v2415_v60 = vrot.slane %v1772_v12, %v6053_v41  ;;  %v2575_v49 = vrot.slane %v1780_v31, %v6053_v41  ;;  %v2735_v59 = vrot.slane %v1788_v3, %v6053_v41  ;;  %3965 = vmatprep.mubr.f32.mxu0 %v5881_v6 }
 0x168   :  { %v2157_v7 = vsel %vm2141_vm0, %v1860_v17, %v1948_v52  ;;  %v1856_v62 = vrot.slane %v1732_v29, %v6056_v43  ;;  %v1944_v26 = vrot.slane %v1772_v12, %v6056_v43  ;;  %v2032_v24 = vrot.slane %v1780_v31, %v6056_v43 }
 0x169   :  { %v2174_v25 = vsel %vm2158_vm7, %v2157_v7, %v2036_v18  ;;  %v2335_v10 = vrot.slane %v2255_v45, %v6044_v36  ;;  %v2495_v5 = vrot.slane %v2415_v60, %v6044_v36  ;;  %v2655_v11 = vrot.slane %v2575_v49, %v6044_v36 }
 0x16a   :  { %v2191_v41 = vsel %vm2175_vm8, %v2174_v25, %v2124_v46  ;;  %v2815_v50 = vrot.slane %v2735_v59, %v6044_v36  ;;  %v2120_v56 = vrot.slane %v1788_v3, %v6056_v43  ;;  %v2156_v19 = vsel %vm2141_vm0, %v1856_v62, %v1944_v26  ;;  %vm7710_vm0 = vmmov %vm7705_vm11 }
 0x16b   :  { %v2351_v27 = vmul.f32 %v2335_v10, %v2191_v41  ;;  %v2511_v20 = vmul.f32 %v2495_v5, %v2191_v41  ;;  %v2671_v38 = vmul.f32 %v2655_v11, %v2191_v41  ;;  %v2173_v22 = vsel %vm2158_vm7, %v2156_v19, %v2032_v24  ;;  %vm7711_vm7 = vmmov %vm7710_vm0 }
 0x16c   :  { %v2831_v34 = vmul.f32 %v2815_v50, %v2191_v41  ;;  %v2190_v42 = vsel %vm2175_vm8, %v2173_v22, %v2120_v56  ;;  %v2251_v32 = vrot.slane %v1732_v29, %v6044_v36  ;;  %v2411_v23 = vrot.slane %v1772_v12, %v6044_v36  ;;  %vm7712_vm8 = vmmov %vm7710_vm0 }
 0x16d   :  { %v2863_v47 = vrot.slane %v2511_v20, 4  ;;  %v2571_v4 = vrot.slane %v1780_v31, %v6044_v36  ;;  %v2731_v33 = vrot.slane %v1788_v3, %v6044_v36  ;;  %v5687_v43 = vpack.c.bf16 %v7275_v39, %v7273_v1  ;;  %vm7713_vm11 = vmmov %vm7710_vm0 }
 0x16e   :  { %v2911_v9 = vrot.slane %v2831_v34, 4  ;;  %v2331_v57 = vrot.slane %v2251_v32, %v6044_v36  ;;  %v2491_v51 = vrot.slane %v2411_v23, %v6044_v36  ;;  %v5685_v40 = vpack.c.bf16 %v3741_v61, %v3725_v58 }
 0x16f   :  { %v2944_v13 = vsel %vm7710_vm0, %v2351_v27, %v2863_v47  ;;  %v2651_v28 = vrot.slane %v2571_v4, %v6044_v36  ;;  %v2811_v37 = vrot.slane %v2731_v33, %v6044_v36 }
 0x170   :  { %v2960_v0 = vsel %vm7711_vm7, %v2671_v38, %v2911_v9  ;;  %v2350_v29 = vmul.f32 %v2331_v57, %v2190_v42  ;;  %v2510_v12 = vmul.f32 %v2491_v51, %v2190_v42 }
 0x171   :  { %v5669_v31 = vpack.c.bf16 %v2960_v0, %v2944_v13  ;;  %v2670_v3 = vmul.f32 %v2651_v28, %v2190_v42  ;;  %v2830_v14 = vmul.f32 %v2811_v37, %v2190_v42 }
 0x172   :  { %v2862_v1 = vrot.slane %v2510_v12, 4 }
 0x173   :  { %5670 = vmatprep.subr.bf16.mxu1 %v5669_v31  ;;  %v2910_v39 = vrot.slane %v2830_v14, 4 }
 0x174   :  { %v2943_v17 = vsel %vm7712_vm8, %v2350_v29, %v2862_v1 }
 0x175   :  { %v2959_v58 = vsel %vm7713_vm11, %v2670_v3, %v2910_v39 }
 0x176   :  { %v5671_v61 = vpack.c.bf16 %v2959_v58, %v2943_v17 }
 0x178   :  { %5672 = vmatpush1.bf16.msra.mxu1 %v5671_v61 }
 0x179   :  { %5682 = vmatprep.subr.bf16.mxu1 %v5681_v16 }
 0x17b   :  { %5476 = vmatmul.mubr.msk.f32.vlgmr.msra.gmra.mrb[24].mxu1 %vm7714_vm9, %v7018_v53 }
 0x17c   :  { %3671 = vmatprep.mubr.f32.mxu1 %v5881_v6  ;;  %5684 = vmatpush1.bf16.msra.mxu1 %v5683_v35 }
 0x17d   :  { %5686 = vmatprep.subr.bf16.mxu1 %v5685_v40 }
 0x17f   :  { %5477 = vmatmul.mubr.msk.f32.gmra.mrb[26].mxu1 %vm7715_vm12, %v7048_v63 }
 0x180   :  { %3677 = vmatprep.mubr.f32.mxu1 %v5881_v6  ;;  %5688 = vmatpush1.bf16.msra.mxu1 %v5687_v43 }
 0x183   :  { %5478 = vmatmul.mubr.msk.f32.gmra.mrb[28].mxu1 %vm7716_vm14, %v7074_v48 }
 0x184   :  { %3683 = vmatprep.mubr.f32.mxu1 %v5881_v6 }
 0x187   :  { %5479 = vmatmul.mubr.msk.f32.gmra.mrb[30].mxu1 %vm7717_vm3, %v7095_v55 }
 0x188   :  { %3894 = vmatprep.mubr.f32.mxu1 %v5881_v6 }
 0x18a   :  { %v3222_v36 = vpop.f32.mrb[8].mxu0 }
 0x18b   :  { %v3224_v53 = vpop.f32.mrb[9].mxu0  ;;  %5481 = vmatmul.mubr.msk.f32.vlgmr.msra.gmra.mrb[32].mxu1 %vm3755_vm10, %v7271_v15  ;;  %v3694_v30 = vmul.f32 %v3222_v36, %v3222_v36 }
 0x18c   :  { %4036 = vmatprep.mubr.f32.mxu1 %v5881_v6  ;;  %v3695_v2 = vmul.f32 %v3224_v53, %v3224_v53 }
 0x18e   :  { %v3228_v63 = vpop.f32.mrb[10].mxu0 }
 0x18f   :  { %v3710_v44 = vmul.f32 %v3228_v63, %v3228_v63  ;;  %v3230_v8 = vpop.f32.mrb[11].mxu0 }
 0x190   :  { %v3711_v48 = vmul.f32 %v3230_v8, %v3230_v8 }
 0x191   :  { %v5691_v35 = vpack.c.bf16 %v3710_v44, %v3694_v30 }
 0x192   :  { %v5689_v16 = vpack.c.bf16 %v3711_v48, %v3695_v2  ;;  %v3234_v52 = vpop.f32.mrb[12].mxu0 }
 0x193   :  { %v3236_v18 = vpop.f32.mrb[13].mxu0  ;;  %v3726_v46 = vmul.f32 %v3234_v52, %v3234_v52 }
 0x194   :  { %5690 = vmatprep.subr.bf16.mxu0 %v5689_v16  ;;  %v3727_v49 = vmul.f32 %v3236_v18, %v3236_v18 }
 0x195   :  { %5692 = vmatpush1.bf16.msra.mxu0 %v5691_v35 }
 0x196   :  { %v3240_v55 = vpop.f32.mrb[14].mxu0 }
 0x197   :  { %v3742_v45 = vmul.f32 %v3240_v55, %v3240_v55  ;;  %v3242_v60 = vpop.f32.mrb[15].mxu0 }
 0x198   :  { %v3743_v59 = vmul.f32 %v3242_v60, %v3242_v60 }
 0x199   :  { %v5695_v7 = vpack.c.bf16 %v3742_v45, %v3726_v46 }
 0x19a   :  { %v5693_v62 = vpack.c.bf16 %v3743_v59, %v3727_v49 }
 0x19c   :  { %5694 = vmatprep.subr.bf16.mxu0 %v5693_v62 }
 0x19d   :  { %5696 = vmatpush1.bf16.msra.mxu0 %v5695_v7 }
 0x1a0   :  { %5482 = vmatmul.mubr.msk.f32.vlgmr.msra.gmra.mrb[34].mxu0 %vm3755_vm10, %v7271_v15 }
 0x1a1   :  { %4107 = vmatprep.mubr.f32.mxu0 %v5881_v6 }
 0x1a8   :  { %v3311_v26 = vpop.f32.mrb[8].mxu1 }
 0x1a9   :  { %v3313_v24 = vpop.f32.mrb[9].mxu1  ;;  %v3696_v10 = vmul.f32 %v3311_v26, %v3311_v26 }
 0x1aa   :  { %v3697_v41 = vmul.f32 %v3313_v24, %v3313_v24 }
 0x1ac   :  { %v3317_v25 = vpop.f32.mrb[10].mxu1 }
 0x1ad   :  { %v3712_v5 = vmul.f32 %v3317_v25, %v3317_v25  ;;  %v3319_v11 = vpop.f32.mrb[11].mxu1 }
 0x1ae   :  { %v3713_v50 = vmul.f32 %v3319_v11, %v3319_v11 }
 0x1af   :  { %v5699_v56 = vpack.c.bf16 %v3712_v5, %v3696_v10 }
 0x1b0   :  { %v5697_v19 = vpack.c.bf16 %v3713_v50, %v3697_v41  ;;  %v3323_v27 = vpop.f32.mrb[12].mxu1 }
 0x1b1   :  { %v3325_v20 = vpop.f32.mrb[13].mxu1  ;;  %v3728_v22 = vmul.f32 %v3323_v27, %v3323_v27 }
 0x1b2   :  { %5698 = vmatprep.subr.bf16.mxu1 %v5697_v19  ;;  %v3729_v32 = vmul.f32 %v3325_v20, %v3325_v20 }
 0x1b3   :  { %5700 = vmatpush1.bf16.msra.mxu1 %v5699_v56 }
 0x1b4   :  { %v3329_v38 = vpop.f32.mrb[14].mxu1 }
 0x1b5   :  { %v3744_v34 = vmul.f32 %v3329_v38, %v3329_v38  ;;  %v3331_v42 = vpop.f32.mrb[15].mxu1  ;;  %v5888_v38 = vmov 1966171168  }
 0x1b6   :  { %v3745_v23 = vmul.f32 %v3331_v42, %v3331_v42 }
 0x1b7   :  { %v5703_v47 = vpack.c.bf16 %v3744_v34, %v3728_v22  ;;  %v4331_v22 = vunpack.c.l.s4 %v5888_v38  ;;  %v5790_v38 = vld [vmem:[%s7650_s3 + $0x18] sm:$0xff]  }
 0x1b8   :  { %v5701_v4 = vpack.c.bf16 %v3745_v23, %v3729_v32 }
 0x1ba   :  { %5702 = vmatprep.subr.bf16.mxu1 %v5701_v4  ;;  %v5777_v4 = vld [vmem:[%s7650_s3 + $0x40] sm:$0xff]  }
 0x1bb   :  { %5704 = vmatpush1.bf16.msra.mxu1 %v5703_v47 }
 0x1be   :  { %5483 = vmatmul.mubr.msk.f32.vlgmr.msra.gmra.mrb[34].mxu1 %vm3755_vm10, %v7271_v15 }
 0x1bf   :  { %4178 = vmatprep.mubr.f32.mxu1 %v5881_v6 }
 0x1dc   :  { %v3400_v33 = vpop.f32.mrb[16].mxu0 }
 0x1dd   :  { %v3402_v43 = vpop.f32.mrb[17].mxu0  ;;  %v3698_v57 = vmul.f32 %v3400_v33, %v3400_v33 }
 0x1de   :  { %v3699_v13 = vmul.f32 %v3402_v43, %v3402_v43  ;;  %v4332_v43 = vunpack.c.0.s8 %v4331_v22 }
 0x1e0   :  { %v3406_v9 = vpop.f32.mrb[18].mxu0 }
 0x1e1   :  { %v3714_v51 = vmul.f32 %v3406_v9, %v3406_v9  ;;  %v3408_v40 = vpop.f32.mrb[19].mxu0 }
 0x1e2   :  { %v3715_v28 = vmul.f32 %v3408_v40, %v3408_v40  ;;  %v7358_v40 = vsub.s32 %v4332_v43, %v6022_v54 }
 0x1e3   :  { %v5707_v37 = vpack.c.bf16 %v3714_v51, %v3698_v57  ;;  %v5812_v57 = vld [vmem:[%s7650_s3 + $0x180] sm:$0xff]  }
 0x1e4   :  { %v5705_v0 = vpack.c.bf16 %v3715_v28, %v3699_v13  ;;  %v3412_v29 = vpop.f32.mrb[20].mxu0  ;;  %v5778_v13 = vld [vmem:[%s7650_s3] sm:$0xff]  }
 0x1e5   :  { %v3414_v12 = vpop.f32.mrb[21].mxu0  ;;  %v3730_v3 = vmul.f32 %v3412_v29, %v3412_v29 }
 0x1e6   :  { %5706 = vmatprep.subr.bf16.mxu0 %v5705_v0  ;;  %v3731_v39 = vmul.f32 %v3414_v12, %v3414_v12  ;;  %v5782_v0 = vld [vmem:[%s7650_s3 + $0x8] sm:$0xff]  }
 0x1e7   :  { %5708 = vmatpush1.bf16.msra.mxu0 %v5707_v37  ;;  %v5781_v37 = vld [vmem:[%s7650_s3 + $0x48] sm:$0xff]  }
 0x1e8   :  { %v3418_v31 = vpop.f32.mrb[22].mxu0 }
 0x1e9   :  { %v3746_v14 = vmul.f32 %v3418_v31, %v3418_v31  ;;  %v3420_v1 = vpop.f32.mrb[23].mxu0 }
 0x1ea   :  { %v3747_v17 = vmul.f32 %v3420_v1, %v3420_v1 }
 0x1eb   :  { %v5711_v58 = vpack.c.bf16 %v3746_v14, %v3730_v3 }
 0x1ec   :  { %v5709_v61 = vpack.c.bf16 %v3747_v17, %v3731_v39 }
 0x1ee   :  { %5710 = vmatprep.subr.bf16.mxu0 %v5709_v61 }
 0x1ef   :  { %5712 = vmatpush1.bf16.msra.mxu0 %v5711_v58 }
 0x1f2   :  { %5484 = vmatmul.mubr.msk.f32.vlgmr.msra.gmra.mrb[36].mxu0 %vm3755_vm10, %v7271_v15 }
 0x1f3   :  { %4249 = vmatprep.mubr.f32.mxu0 %v5881_v6 }
 0x1f8   :  { %v3489_v36 = vpop.f32.mrb[16].mxu1 }
 0x1f9   :  { %v3491_v53 = vpop.f32.mrb[17].mxu1  ;;  %v3700_v30 = vmul.f32 %v3489_v36, %v3489_v36 }
 0x1fa   :  { %v3701_v2 = vmul.f32 %v3491_v53, %v3491_v53 }
 0x1fc   :  { %v3495_v63 = vpop.f32.mrb[18].mxu1 }
 0x1fd   :  { %v3716_v44 = vmul.f32 %v3495_v63, %v3495_v63  ;;  %v3497_v8 = vpop.f32.mrb[19].mxu1 }
 0x1fe   :  { %v3717_v48 = vmul.f32 %v3497_v8, %v3497_v8 }
 0x1ff   :  { %v5715_v35 = vpack.c.bf16 %v3716_v44, %v3700_v30 }
 0x200   :  { %v5713_v16 = vpack.c.bf16 %v3717_v48, %v3701_v2  ;;  %v3501_v52 = vpop.f32.mrb[20].mxu1 }
 0x201   :  { %v3503_v18 = vpop.f32.mrb[21].mxu1  ;;  %v3732_v46 = vmul.f32 %v3501_v52, %v3501_v52 }
 0x202   :  { %5714 = vmatprep.subr.bf16.mxu1 %v5713_v16  ;;  %v3733_v49 = vmul.f32 %v3503_v18, %v3503_v18 }
 0x203   :  { %5716 = vmatpush1.bf16.msra.mxu1 %v5715_v35 }
 0x204   :  { %v3507_v55 = vpop.f32.mrb[22].mxu1 }
 0x205   :  { %v3748_v45 = vmul.f32 %v3507_v55, %v3507_v55  ;;  %v3509_v60 = vpop.f32.mrb[23].mxu1 }
 0x206   :  { %v3749_v59 = vmul.f32 %v3509_v60, %v3509_v60 }
 0x207   :  { %v5719_v7 = vpack.c.bf16 %v3748_v45, %v3732_v46 }
 0x208   :  { %v5717_v62 = vpack.c.bf16 %v3749_v59, %v3733_v49  ;;  %v5779_v49 = vld [vmem:[%s7650_s3 + $0xc0] sm:$0xff]  }
 0x20a   :  { %5718 = vmatprep.subr.bf16.mxu1 %v5717_v62  ;;  %v5780_v62 = vld [vmem:[%s7650_s3 + $0x80] sm:$0xff]  }
 0x20b   :  { %5720 = vmatpush1.bf16.msra.mxu1 %v5719_v7 }
 0x20e   :  { %5485 = vmatmul.mubr.msk.f32.vlgmr.msra.gmra.mrb[36].mxu1 %vm3755_vm10, %v7271_v15 }
 0x20f   :  { %4320 = vmatprep.mubr.f32.mxu1 %v5881_v6 }
 0x227   :  { %v3578_v26 = vpop.f32.mrb[24].mxu0 }
 0x228   :  { %v3580_v24 = vpop.f32.mrb[25].mxu0  ;;  %v3702_v10 = vmul.f32 %v3578_v26, %v3578_v26 }
 0x229   :  { %v3703_v41 = vmul.f32 %v3580_v24, %v3580_v24  ;;  %v5783_v24 = vld [vmem:[%s7650_s3 + $0xc8] sm:$0xff]  }
 0x22b   :  { %v3584_v25 = vpop.f32.mrb[26].mxu0 }
 0x22c   :  { %v3718_v5 = vmul.f32 %v3584_v25, %v3584_v25  ;;  %v3586_v11 = vpop.f32.mrb[27].mxu0 }
 0x22d   :  { %v3719_v50 = vmul.f32 %v3586_v11, %v3586_v11 }
 0x22e   :  { %v5723_v56 = vpack.c.bf16 %v3718_v5, %v3702_v10  ;;  %v5784_v5 = vld [vmem:[%s7650_s3 + $0x88] sm:$0xff]  }
 0x22f   :  { %v5721_v19 = vpack.c.bf16 %v3719_v50, %v3703_v41  ;;  %v3590_v27 = vpop.f32.mrb[28].mxu0  ;;  %v5785_v50 = vld [vmem:[%s7650_s3 + $0x50] sm:$0xff]  }
 0x230   :  { %v3592_v20 = vpop.f32.mrb[29].mxu0  ;;  %v3734_v42 = vmul.f32 %v3590_v27, %v3590_v27  ;;  %v5788_v27 = vld [vmem:[%s7650_s3 + $0x90] sm:$0xff]  }
 0x231   :  { %5722 = vmatprep.subr.bf16.mxu0 %v5721_v19  ;;  %v3735_v23 = vmul.f32 %v3592_v20, %v3592_v20  ;;  %v5787_v19 = vld [vmem:[%s7650_s3 + $0xd0] sm:$0xff]   ;;  %v5789_v20 = vld [vmem:[%s7650_s3 + $0x58] sm:$0xff]  }
 0x232   :  { %5724 = vmatpush1.bf16.msra.mxu0 %v5723_v56  ;;  %v5786_v56 = vld [vmem:[%s7650_s3 + $0x10] sm:$0xff]  }
 0x233   :  { %v3596_v34 = vpop.f32.mrb[30].mxu0 }
 0x234   :  { %v3750_v32 = vmul.f32 %v3596_v34, %v3596_v34  ;;  %v3598_v6 = vpop.f32.mrb[31].mxu0 }
 0x235   :  { %v3751_v47 = vmul.f32 %v3598_v6, %v3598_v6 }
 0x236   :  { %v5727_v33 = vpack.c.bf16 %v3750_v32, %v3734_v42 }
 0x237   :  { %v5725_v9 = vpack.c.bf16 %v3751_v47, %v3735_v23 }
 0x239   :  { %5726 = vmatprep.subr.bf16.mxu0 %v5725_v9  ;;  %v3825_v51 = vpop.f32.mrb[32].mxu0 }
 0x23a   :  { %5728 = vmatpush1.bf16.msra.mxu0 %v5727_v33  ;;  %v3827_v28 = vpop.f32.mrb[33].mxu0 }
 0x23b   :  { %5553 = vmatprep.subr.bf16.mxu0 %v5777_v4  ;;  %v4329_v21 = vcombine.low %v3825_v51, %v3827_v28 }
 0x23d   :  { %5486 = vmatmul.mubr.msk.f32.vlgmr.msra.gmra.mrb[38].mxu0 %vm3755_vm10, %v7271_v15  ;;  %v4336_v54 = vrot.slane %v4329_v21, %v7358_v40 }
 0x23e   :  { %5554 = vmatpush3.bf16.msra.mxu0 %v5778_v13 }
 0x23f   :  { %5555 = vmatprep.subr.bf16.mxu0 %v5781_v37  ;;  %v4343_v29 = vrot.slane %v4336_v54, %v7358_v40  ;;  %v4351_v12 = vcombine.high %v4336_v54, %v4336_v54 }
 0x241   :  { %4349 = vst.msk [vmem:[#allocation2] ss:$8 sm:$0x3] %vm7353_vm15, %v4343_v29  ;;  %v4358_v31 = vrot.slane %v4351_v12, %v7358_v40  ;;  %v4363_v3 = vcombine.high %v4343_v29, %v4343_v29  ;;  %v5791_v29 = vld [vmem:[%s7650_s3 + $0xd8] sm:$0xff]  }
 0x242   :  { %5556 = vmatpush3.bf16.msra.mxu0 %v5782_v0  ;;  %v5792_v12 = vld [vmem:[%s7650_s3 + $0x98] sm:$0xff]  }
 0x243   :  { %4361 = vst.msk [vmem:[#allocation2 + $0x10] ss:$8 sm:$0x3] %vm7353_vm15, %v4358_v31  ;;  %4366 = vst.msk [vmem:[#allocation2 + $0x20] ss:$8 sm:$0x3] %vm7353_vm15, %v4363_v3  ;;  %v4368_v14 = vcombine.high %v4358_v31, %v4358_v31  ;;  %5557 = vmatprep.subr.bf16.mxu0 %v5785_v50 }
 0x244   :  { %v5793_v31 = vld [vmem:[%s7650_s3 + $0x60] sm:$0xff]  }
 0x245   :  { %4371 = vst.msk [vmem:[#allocation2 + $0x30] ss:$8 sm:$0x3] %vm7353_vm15, %v4368_v14  ;;  %v5794_v3 = vld [vmem:[%s7650_s3 + $0x20] sm:$0xff]  }
 0x246   :  { %5558 = vmatpush3.bf16.msra.mxu0 %v5786_v56  ;;  %v5795_v14 = vld [vmem:[%s7650_s3 + $0xe0] sm:$0xff]  }
 0x247   :  { %5559 = vmatprep.subr.bf16.mxu0 %v5789_v20 }
 0x24a   :  { %5560 = vmatpush3.bf16.msra.mxu0 %v5790_v38 }
 0x24b   :  { %5561 = vmatprep.subr.bf16.mxu0 %v5793_v31 }
 0x24e   :  { %v3667_v1 = vpop.f32.mrb[24].mxu1  ;;  %5562 = vmatpush3.bf16.msra.mxu0 %v5794_v3 }
 0x24f   :  { %v3669_v39 = vpop.f32.mrb[25].mxu1  ;;  %v3704_v58 = vmul.f32 %v3667_v1, %v3667_v1  ;;  %v5796_v1 = vld [vmem:[%s7650_s3 + $0xa0] sm:$0xff]  }
 0x250   :  { %v3705_v53 = vmul.f32 %v3669_v39, %v3669_v39  ;;  %v5797_v39 = vld [vmem:[%s7650_s3 + $0x68] sm:$0xff]  }
 0x251   :  { %5563 = vmatprep.subr.bf16.mxu0 %v5797_v39  ;;  %v5815_v39 = vld [vmem:[%s7650_s3 + $0x1c8] sm:$0xff]  }
 0x252   :  { %v3673_v17 = vpop.f32.mrb[26].mxu1 }
 0x253   :  { %v3720_v61 = vmul.f32 %v3673_v17, %v3673_v17  ;;  %v3675_v36 = vpop.f32.mrb[27].mxu1  ;;  %v5798_v17 = vld [vmem:[%s7650_s3 + $0x28] sm:$0xff]  }
 0x254   :  { %v3721_v63 = vmul.f32 %v3675_v36, %v3675_v36  ;;  %5564 = vmatpush3.bf16.msra.mxu0 %v5798_v17  ;;  %v5801_v36 = vld [vmem:[%s7650_s3 + $0x70] sm:$0xff]  }
 0x255   :  { %v5731_v30 = vpack.c.bf16 %v3720_v61, %v3704_v58  ;;  %v5799_v58 = vld [vmem:[%s7650_s3 + $0xe8] sm:$0xff]   ;;  %5565 = vmatprep.subr.bf16.mxu0 %v5801_v36 }
 0x256   :  { %v5729_v44 = vpack.c.bf16 %v3721_v63, %v3705_v53  ;;  %v3679_v8 = vpop.f32.mrb[28].mxu1  ;;  %v5800_v61 = vld [vmem:[%s7650_s3 + $0xa8] sm:$0xff]   ;;  %v5802_v53 = vld [vmem:[%s7650_s3 + $0x30] sm:$0xff]  }
 0x257   :  { %v3681_v2 = vpop.f32.mrb[29].mxu1  ;;  %v3736_v35 = vmul.f32 %v3679_v8, %v3679_v8  ;;  %v5803_v63 = vld [vmem:[%s7650_s3 + $0xf0] sm:$0xff]   ;;  %v5806_v8 = vld [vmem:[%s7650_s3 + $0x38] sm:$0xff]   ;;  %v5816_v36 = vld [vmem:[%s7650_s3 + $0x188] sm:$0xff]  }
 0x258   :  { %5730 = vmatprep.subr.bf16.mxu1 %v5729_v44  ;;  %v3737_v18 = vmul.f32 %v3681_v2, %v3681_v2  ;;  %5566 = vmatpush3.bf16.msra.mxu0 %v5802_v53  ;;  %v5805_v44 = vld [vmem:[%s7650_s3 + $0x78] sm:$0xff]   ;;  %v5819_v53 = vld [vmem:[%s7650_s3 + $0x1d0] sm:$0xff]  }
 0x259   :  { %5732 = vmatpush1.bf16.msra.mxu1 %v5731_v30  ;;  %v5804_v30 = vld [vmem:[%s7650_s3 + $0xb0] sm:$0xff]   ;;  %v5807_v2 = vld [vmem:[%s7650_s3 + $0xf8] sm:$0xff]   ;;  %5567 = vmatprep.subr.bf16.mxu0 %v5805_v44 }
 0x25a   :  { %v3685_v48 = vpop.f32.mrb[30].mxu1  ;;  %v5820_v44 = vld [vmem:[%s7650_s3 + $0x190] sm:$0xff]  }
 0x25b   :  { %v3752_v16 = vmul.f32 %v3685_v48, %v3685_v48  ;;  %v3687_v52 = vpop.f32.mrb[31].mxu1  ;;  %v5808_v48 = vld [vmem:[%s7650_s3 + $0xb8] sm:$0xff]  }
 0x25c   :  { %v3753_v55 = vmul.f32 %v3687_v52, %v3687_v52  ;;  %5568 = vmatpush3.bf16.msra.mxu0 %v5806_v8  ;;  %v5823_v8 = vld [vmem:[%s7650_s3 + $0x1d8] sm:$0xff]  }
 0x25d   :  { %v5735_v46 = vpack.c.bf16 %v3752_v16, %v3736_v35 }
 0x25e   :  { %v5733_v45 = vpack.c.bf16 %v3753_v55, %v3737_v18  ;;  %v3896_v60 = vpop.f32.mrb[32].mxu1  ;;  %v5809_v18 = vld [vmem:[%s7650_s3 + $0x140] sm:$0xff]  }
 0x25f   :  { %v3898_v59 = vpop.f32.mrb[33].mxu1  ;;  %5597 = vmatprep.subr.bf16.mxu0 %v5809_v18  ;;  %v5829_v18 = vld [vmem:[%s7650_s3 + $0x168] sm:$0xff]  }
 0x260   :  { %5734 = vmatprep.subr.bf16.mxu1 %v5733_v45  ;;  %v4375_v7 = vcombine.low %v3896_v60, %v3898_v59 }
 0x261   :  { %5736 = vmatpush1.bf16.msra.mxu1 %v5735_v46  ;;  %v5811_v46 = vld [vmem:[%s7650_s3 + $0x1c0] sm:$0xff]  }
 0x262   :  { %v4382_v26 = vrot.slane %v4375_v7, %v7358_v40  ;;  %5575 = vmatprep.subr.bf16.mxu1 %v5779_v49 }
 0x264   :  { %5487 = vmatmul.mubr.msk.f32.vlgmr.msra.gmra.mrb[38].mxu1 %vm3755_vm10, %v7271_v15  ;;  %v4389_v25 = vrot.slane %v4382_v26, %v7358_v40  ;;  %v4394_v10 = vcombine.high %v4382_v26, %v4382_v26 }
 0x265   :  { %5576 = vmatpush3.bf16.msra.mxu1 %v5780_v62 }
 0x266   :  { %4392 = vst.msk [vmem:[#allocation2 + $0x1] ss:$8 sm:$0x3] %vm7353_vm15, %v4389_v25  ;;  %v4401_v11 = vrot.slane %v4394_v10, %v7358_v40  ;;  %v4406_v41 = vcombine.high %v4389_v25, %v4389_v25  ;;  %5577 = vmatprep.subr.bf16.mxu1 %v5783_v24 }
 0x268   :  { %4404 = vst.msk [vmem:[#allocation2 + $0x11] ss:$8 sm:$0x3] %vm7353_vm15, %v4401_v11  ;;  %4409 = vst.msk [vmem:[#allocation2 + $0x21] ss:$8 sm:$0x3] %vm7353_vm15, %v4406_v41  ;;  %v4411_v15 = vcombine.high %v4401_v11, %v4401_v11 }
 0x269   :  { %5578 = vmatpush3.bf16.msra.mxu1 %v5784_v5 }
 0x26a   :  { %4414 = vst.msk [vmem:[#allocation2 + $0x31] ss:$8 sm:$0x3] %vm7353_vm15, %v4411_v15  ;;  %5579 = vmatprep.subr.bf16.mxu1 %v5787_v19 }
 0x26d   :  { %5580 = vmatpush3.bf16.msra.mxu1 %v5788_v27 }
 0x26e   :  { %5581 = vmatprep.subr.bf16.mxu1 %v5791_v29 }
 0x271   :  { %5582 = vmatpush3.bf16.msra.mxu1 %v5792_v12 }
 0x272   :  { %5583 = vmatprep.subr.bf16.mxu1 %v5795_v14  ;;  %v5813_v14 = vld [vmem:[%s7650_s3 + $0x148] sm:$0xff]  }
 0x273   :  { %v3967_v22 = vpop.f32.mrb[34].mxu0 }
 0x274   :  { %v3969_v34 = vpop.f32.mrb[35].mxu0 }
 0x275   :  { %v4418_v42 = vcombine.low %v3967_v22, %v3969_v34  ;;  %5584 = vmatpush3.bf16.msra.mxu1 %v5796_v1 }
 0x276   :  { %5585 = vmatprep.subr.bf16.mxu1 %v5799_v58  ;;  %v5814_v58 = vld [vmem:[%s7650_s3 + $0x108] sm:$0xff]  }
 0x277   :  { %v4425_v32 = vrot.slane %v4418_v42, %v7358_v40 }
 0x279   :  { %v4432_v6 = vrot.slane %v4425_v32, %v7358_v40  ;;  %v4437_v23 = vcombine.high %v4425_v32, %v4425_v32  ;;  %5586 = vmatpush3.bf16.msra.mxu1 %v5800_v61  ;;  %v5817_v61 = vld [vmem:[%s7650_s3 + $0x150] sm:$0xff]  }
 0x27a   :  { %5587 = vmatprep.subr.bf16.mxu1 %v5803_v63  ;;  %v5818_v63 = vld [vmem:[%s7650_s3 + $0x110] sm:$0xff]  }
 0x27b   :  { %4435 = vst.msk [vmem:[#allocation2 + $0x2] ss:$8 sm:$0x3] %vm7353_vm15, %v4432_v6  ;;  %v4444_v47 = vrot.slane %v4437_v23, %v7358_v40  ;;  %v4449_v4 = vcombine.high %v4432_v6, %v4432_v6 }
 0x27d   :  { %4447 = vst.msk [vmem:[#allocation2 + $0x12] ss:$8 sm:$0x3] %vm7353_vm15, %v4444_v47  ;;  %4452 = vst.msk [vmem:[#allocation2 + $0x22] ss:$8 sm:$0x3] %vm7353_vm15, %v4449_v4  ;;  %v4454_v33 = vcombine.high %v4444_v47, %v4444_v47  ;;  %5588 = vmatpush3.bf16.msra.mxu1 %v5804_v30 }
 0x27e   :  { %5589 = vmatprep.subr.bf16.mxu1 %v5807_v2  ;;  %v5821_v30 = vld [vmem:[%s7650_s3 + $0x158] sm:$0xff]  }
 0x27f   :  { %4457 = vst.msk [vmem:[#allocation2 + $0x32] ss:$8 sm:$0x3] %vm7353_vm15, %v4454_v33  ;;  %v5822_v2 = vld [vmem:[%s7650_s3 + $0x118] sm:$0xff]  }
 0x281   :  { %5590 = vmatpush3.bf16.msra.mxu1 %v5808_v48  ;;  %v5825_v48 = vld [vmem:[%s7650_s3 + $0x160] sm:$0xff]  }
 0x282   :  { %5619 = vmatprep.subr.bf16.mxu1 %v5811_v46  ;;  %v5831_v46 = vld [vmem:[%s7650_s3 + $0x1e8] sm:$0xff]  }
 0x291   :  { %v4038_v43 = vpop.f32.mrb[34].mxu1 }
 0x292   :  { %v4040_v9 = vpop.f32.mrb[35].mxu1 }
 0x293   :  { %v4461_v51 = vcombine.low %v4038_v43, %v4040_v9 }
 0x295   :  { %v4468_v13 = vrot.slane %v4461_v51, %v7358_v40 }
 0x297   :  { %v4475_v28 = vrot.slane %v4468_v13, %v7358_v40  ;;  %v4480_v37 = vcombine.high %v4468_v13, %v4468_v13 }
 0x299   :  { %4478 = vst.msk [vmem:[#allocation2 + $0x3] ss:$8 sm:$0x3] %vm7353_vm15, %v4475_v28  ;;  %v4487_v21 = vrot.slane %v4480_v37, %v7358_v40  ;;  %v4492_v0 = vcombine.high %v4475_v28, %v4475_v28 }
 0x29b   :  { %4490 = vst.msk [vmem:[#allocation2 + $0x13] ss:$8 sm:$0x3] %vm7353_vm15, %v4487_v21  ;;  %4495 = vst.msk [vmem:[#allocation2 + $0x23] ss:$8 sm:$0x3] %vm7353_vm15, %v4492_v0  ;;  %v4497_v54 = vcombine.high %v4487_v21, %v4487_v21 }
 0x29c   :  { %v5810_v0 = vld [vmem:[%s7650_s3 + $0x100] sm:$0xff]  }
 0x29d   :  { %4500 = vst.msk [vmem:[#allocation2 + $0x33] ss:$8 sm:$0x3] %vm7353_vm15, %v4497_v54 }
 0x2c5   :  { %v4109_v35 = vpop.f32.mrb[36].mxu0 }
 0x2c6   :  { %v4111_v16 = vpop.f32.mrb[37].mxu0 }
 0x2c7   :  { %v4504_v52 = vcombine.low %v4109_v35, %v4111_v16  ;;  %v5824_v35 = vld [vmem:[%s7650_s3 + $0x198] sm:$0xff]   ;;  %v5827_v16 = vld [vmem:[%s7650_s3 + $0x1e0] sm:$0xff]  }
 0x2c9   :  { %v4511_v55 = vrot.slane %v4504_v52, %v7358_v40  ;;  %v5826_v52 = vld [vmem:[%s7650_s3 + $0x120] sm:$0xff]  }
 0x2cb   :  { %v4518_v45 = vrot.slane %v4511_v55, %v7358_v40  ;;  %v4523_v60 = vcombine.high %v4511_v55, %v4511_v55  ;;  %v5828_v55 = vld [vmem:[%s7650_s3 + $0x1a0] sm:$0xff]  }
 0x2cd   :  { %4521 = vst.msk [vmem:[#allocation2 + $0x4] ss:$8 sm:$0x3] %vm7353_vm15, %v4518_v45  ;;  %v4530_v49 = vrot.slane %v4523_v60, %v7358_v40  ;;  %v4535_v59 = vcombine.high %v4518_v45, %v4518_v45  ;;  %v5830_v45 = vld [vmem:[%s7650_s3 + $0x128] sm:$0xff]   ;;  %v5833_v60 = vld [vmem:[%s7650_s3 + $0x170] sm:$0xff]  }
 0x2cf   :  { %4533 = vst.msk [vmem:[#allocation2 + $0x14] ss:$8 sm:$0x3] %vm7353_vm15, %v4530_v49  ;;  %4538 = vst.msk [vmem:[#allocation2 + $0x24] ss:$8 sm:$0x3] %vm7353_vm15, %v4535_v59  ;;  %v4540_v7 = vcombine.high %v4530_v49, %v4530_v49 }
 0x2d0   :  { %v5832_v49 = vld [vmem:[%s7650_s3 + $0x1a8] sm:$0xff]   ;;  %v5835_v59 = vld [vmem:[%s7650_s3 + $0x1f0] sm:$0xff]  }
 0x2d1   :  { %4543 = vst.msk [vmem:[#allocation2 + $0x34] ss:$8 sm:$0x3] %vm7353_vm15, %v4540_v7  ;;  %v5834_v7 = vld [vmem:[%s7650_s3 + $0x130] sm:$0xff]  }
 0x2e1   :  { %v4180_v62 = vpop.f32.mrb[36].mxu1 }
 0x2e2   :  { %v4182_v26 = vpop.f32.mrb[37].mxu1 }
 0x2e3   :  { %v4547_v24 = vcombine.low %v4180_v62, %v4182_v26  ;;  %v5837_v62 = vld [vmem:[%s7650_s3 + $0x178] sm:$0xff]   ;;  %v5836_v26 = vld [vmem:[%s7650_s3 + $0x1b0] sm:$0xff]  }
 0x2e5   :  { %v4554_v25 = vrot.slane %v4547_v24, %v7358_v40  ;;  %v5839_v24 = vld [vmem:[%s7650_s3 + $0x1f8] sm:$0xff]  }
 0x2e7   :  { %v4561_v10 = vrot.slane %v4554_v25, %v7358_v40  ;;  %v4566_v5 = vcombine.high %v4554_v25, %v4554_v25  ;;  %v5838_v25 = vld [vmem:[%s7650_s3 + $0x138] sm:$0xff]  }
 0x2e9   :  { %4564 = vst.msk [vmem:[#allocation2 + $0x5] ss:$8 sm:$0x3] %vm7353_vm15, %v4561_v10  ;;  %v4573_v11 = vrot.slane %v4566_v5, %v7358_v40  ;;  %v4578_v41 = vcombine.high %v4561_v10, %v4561_v10  ;;  %v5840_v10 = vld [vmem:[%s7650_s3 + $0x1b8] sm:$0xff]  }
 0x2eb   :  { %4576 = vst.msk [vmem:[#allocation2 + $0x15] ss:$8 sm:$0x3] %vm7353_vm15, %v4573_v11  ;;  %4581 = vst.msk [vmem:[#allocation2 + $0x25] ss:$8 sm:$0x3] %vm7353_vm15, %v4578_v41  ;;  %v4583_v15 = vcombine.high %v4573_v11, %v4573_v11 }
 0x2ed   :  { %4586 = vst.msk [vmem:[#allocation2 + $0x35] ss:$8 sm:$0x3] %vm7353_vm15, %v4583_v15 }
 0x310   :  { %v4251_v50 = vpop.f32.mrb[38].mxu0 }
 0x311   :  { %v4253_v56 = vpop.f32.mrb[39].mxu0 }
 0x312   :  { %v4590_v19 = vcombine.low %v4251_v50, %v4253_v56  ;;  %v5488_v56 = vld [vmem:[%s7651_s4] ss:$0 sm:$0xff] }
 0x314   :  { %v4597_v27 = vrot.slane %v4590_v19, %v7358_v40 }
 0x316   :  { %v4604_v20 = vrot.slane %v4597_v27, %v7358_v40  ;;  %v4609_v38 = vcombine.high %v4597_v27, %v4597_v27 }
 0x318   :  { %4607 = vst.msk [vmem:[#allocation2 + $0x6] ss:$8 sm:$0x3] %vm7353_vm15, %v4604_v20  ;;  %v4616_v22 = vrot.slane %v4609_v38, %v7358_v40  ;;  %v4621_v34 = vcombine.high %v4604_v20, %v4604_v20 }
 0x31a   :  { %4619 = vst.msk [vmem:[#allocation2 + $0x16] ss:$8 sm:$0x3] %vm7353_vm15, %v4616_v22  ;;  %4624 = vst.msk [vmem:[#allocation2 + $0x26] ss:$8 sm:$0x3] %vm7353_vm15, %v4621_v34  ;;  %v4626_v42 = vcombine.high %v4616_v22, %v4616_v22 }
 0x31c   :  { %4629 = vst.msk [vmem:[#allocation2 + $0x36] ss:$8 sm:$0x3] %vm7353_vm15, %v4626_v42 }
 0x337   :  { %v4322_v32 = vpop.f32.mrb[38].mxu1 }
 0x338   :  { %v4324_v6 = vpop.f32.mrb[39].mxu1 }
 0x339   :  { %v4633_v23 = vcombine.low %v4322_v32, %v4324_v6 }
 0x33b   :  { %v4640_v47 = vrot.slane %v4633_v23, %v7358_v40 }
 0x33d   :  { %v4647_v4 = vrot.slane %v4640_v47, %v7358_v40  ;;  %v4652_v33 = vcombine.high %v4640_v47, %v4640_v47 }
 0x33f   :  { %4650 = vst.msk [vmem:[#allocation2 + $0x7] ss:$8 sm:$0x3] %vm7353_vm15, %v4647_v4  ;;  %v4659_v43 = vrot.slane %v4652_v33, %v7358_v40  ;;  %v4664_v9 = vcombine.high %v4647_v4, %v4647_v4 }
 0x341   :  { %4662 = vst.msk [vmem:[#allocation2 + $0x17] ss:$8 sm:$0x3] %vm7353_vm15, %v4659_v43  ;;  %4667 = vst.msk [vmem:[#allocation2 + $0x27] ss:$8 sm:$0x3] %vm7353_vm15, %v4664_v9  ;;  %v4669_v51 = vcombine.high %v4659_v43, %v4659_v43 }
 0x343   :  { %4672 = vst.msk [vmem:[#allocation2 + $0x37] ss:$8 sm:$0x3] %vm7353_vm15, %v4669_v51 }
 0x346   :  { %v4675_v13 = vld [vmem:[#allocation2 + $0x8] sm:$0xff]  ;;  %v4674_v28 = vld [vmem:[#allocation2] sm:$0xff] }
 0x347   :  { %v4683_v37 = vpack.c.bf16 %v4675_v13, %v4675_v13  ;;  %v4682_v21 = vpack.c.bf16 %v4674_v28, %v4674_v28 }
 0x348   :  { %v4677_v40 = vld [vmem:[#allocation2 + $0x18] sm:$0xff]  ;;  %v4679_v54 = vld [vmem:[#allocation2 + $0x28] sm:$0xff]  ;;  %v4676_v29 = vld [vmem:[#allocation2 + $0x10] sm:$0xff] }
 0x349   :  { %5241 = vmatprep.mubr.bf16.mxu0 %v4683_v37  ;;  %v4685_v12 = vpack.c.bf16 %v4677_v40, %v4677_v40  ;;  %v4687_v31 = vpack.c.bf16 %v4679_v54, %v4679_v54  ;;  %v4684_v3 = vpack.c.bf16 %v4676_v29, %v4676_v29  ;;  %v4678_v5 = vld [vmem:[#allocation2 + $0x20] sm:$0xff] }
 0x34a   :  { %5242 = vmatmul.mubr.bf16.vlgmr.msra.gmra.mrb[40].mxu0 %v4682_v21  ;;  %v4681_v1 = vld [vmem:[#allocation2 + $0x38] sm:$0xff]  ;;  %v4680_v11 = vld [vmem:[#allocation2 + $0x30] sm:$0xff]  ;;  %v4686_v41 = vpack.c.bf16 %v4678_v5, %v4678_v5 }
 0x34b   :  { %5598 = vmatpush3.bf16.msra.mxu0 %v5810_v0  ;;  %5281 = vmatprep.mubr.bf16.mxu1 %v4685_v12  ;;  %v4689_v17 = vpack.c.bf16 %v4681_v1, %v4681_v1  ;;  %v4688_v15 = vpack.c.bf16 %v4680_v11, %v4680_v11 }
 0x34c   :  { %5321 = vmatprep.mubr.bf16.mxu0 %v4687_v31  ;;  %5282 = vmatmul.mubr.bf16.vlgmr.msra.gmra.mrb[40].mxu1 %v4684_v3 }
 0x34d   :  { %5620 = vmatpush3.bf16.msra.mxu1 %v5812_v57  ;;  %5599 = vmatprep.subr.bf16.mxu0 %v5813_v14 }
 0x34e   :  { %5361 = vmatprep.mubr.bf16.mxu1 %v4689_v17  ;;  %5621 = vmatprep.subr.bf16.mxu1 %v5815_v39 }
 0x34f   :  { %5600 = vmatpush3.bf16.msra.mxu0 %v5814_v58 }
 0x350   :  { %5601 = vmatprep.subr.bf16.mxu0 %v5817_v61 }
 0x351   :  { %5622 = vmatpush3.bf16.msra.mxu1 %v5816_v36 }
 0x352   :  { %5623 = vmatprep.subr.bf16.mxu1 %v5819_v53 }
 0x353   :  { %5602 = vmatpush3.bf16.msra.mxu0 %v5818_v63 }
 0x354   :  { %5603 = vmatprep.subr.bf16.mxu0 %v5821_v30 }
 0x355   :  { %5624 = vmatpush3.bf16.msra.mxu1 %v5820_v44 }
 0x356   :  { %5625 = vmatprep.subr.bf16.mxu1 %v5823_v8 }
 0x357   :  { %5604 = vmatpush3.bf16.msra.mxu0 %v5822_v2 }
 0x358   :  { %5605 = vmatprep.subr.bf16.mxu0 %v5825_v48 }
 0x359   :  { %5626 = vmatpush3.bf16.msra.mxu1 %v5824_v35 }
 0x35a   :  { %5627 = vmatprep.subr.bf16.mxu1 %v5827_v16 }
 0x35b   :  { %5606 = vmatpush3.bf16.msra.mxu0 %v5826_v52 }
 0x35c   :  { %5607 = vmatprep.subr.bf16.mxu0 %v5829_v18 }
 0x35d   :  { %5628 = vmatpush3.bf16.msra.mxu1 %v5828_v55 }
 0x35e   :  { %5629 = vmatprep.subr.bf16.mxu1 %v5831_v46 }
 0x35f   :  { %5608 = vmatpush3.bf16.msra.mxu0 %v5830_v45 }
 0x360   :  { %5609 = vmatprep.subr.bf16.mxu0 %v5833_v60 }
 0x361   :  { %5630 = vmatpush3.bf16.msra.mxu1 %v5832_v49 }
 0x362   :  { %5631 = vmatprep.subr.bf16.mxu1 %v5835_v59 }
 0x363   :  { %5610 = vmatpush3.bf16.msra.mxu0 %v5834_v7 }
 0x364   :  { %5611 = vmatprep.subr.bf16.mxu0 %v5837_v62 }
 0x365   :  { %5632 = vmatpush3.bf16.msra.mxu1 %v5836_v26 }
 0x366   :  { %5633 = vmatprep.subr.bf16.mxu1 %v5839_v24 }
 0x367   :  { %5612 = vmatpush3.bf16.msra.mxu0 %v5838_v25 }
 0x369   :  { %5634 = vmatpush3.bf16.msra.mxu1 %v5840_v10 }
 0x36a   :  { %5322 = vmatmul.mubr.bf16.vlgmr.msra.gmra.mrb[44].mxu0 %v4686_v41 }
 0x36c   :  { %5362 = vmatmul.mubr.bf16.vlgmr.msra.gmra.mrb[44].mxu1 %v4688_v15 }
 0x41d   :  { %v5569_v50 = vpop.f32.mrb[40].mxu0 }
 0x41e   :  { %v5570_v19 = vpop.f32.mrb[41].mxu0 }
 0x41f   :  { %v5571_v27 = vadd.f32 %v5570_v19, %v5569_v50  ;;  %v5572_v20 = vpop.f32.mrb[42].mxu0  ;;  %v5591_v38 = vpop.f32.mrb[40].mxu1 }
 0x420   :  { %v5573_v22 = vpop.f32.mrb[43].mxu0  ;;  %v5592_v34 = vpop.f32.mrb[41].mxu1 }
 0x421   :  { %v5244_v42 = vadd.f32 %v5571_v27, %v5488_v56  ;;  %v5593_v32 = vadd.f32 %v5592_v34, %v5591_v38  ;;  %v5594_v6 = vpop.f32.mrb[42].mxu1 }
 0x422   :  { %v5595_v23 = vpop.f32.mrb[43].mxu1 }
 0x423   :  { %v5284_v47 = vadd.f32 %v5593_v32, %v5244_v42 }
 0x43d   :  { %v5613_v4 = vpop.f32.mrb[44].mxu0 }
 0x43e   :  { %v5614_v33 = vpop.f32.mrb[45].mxu0 }
 0x43f   :  { %v5615_v43 = vadd.f32 %v5614_v33, %v5613_v4  ;;  %v5616_v9 = vpop.f32.mrb[46].mxu0  ;;  %v5635_v51 = vpop.f32.mrb[44].mxu1 }
 0x440   :  { %v5617_v13 = vpop.f32.mrb[47].mxu0  ;;  %v5636_v28 = vpop.f32.mrb[45].mxu1 }
 0x441   :  { %v5324_v37 = vadd.f32 %v5615_v43, %v5284_v47  ;;  %v5637_v21 = vadd.f32 %v5636_v28, %v5635_v51  ;;  %v5638_v0 = vpop.f32.mrb[46].mxu1 }
 0x442   :  { %v5639_v40 = vpop.f32.mrb[47].mxu1 }
 0x443   :  { %v5364_v54 = vadd.f32 %v5637_v21, %v5324_v37 }
 0x445   :  { %5369 = vmax.xlane.f32.xlu0 %v5364_v54 }
 0x4d2   :  { %v5370_v29 = vpop.xlane.xlu0 %5369 }
 0x4d3   :  { %v5371_v12 = vsub.f32 %v5364_v54, %v5370_v29 }
 0x4d5   :  { %v5372_v31 = vmul.f32 1.442695, %v5371_v12 }
 0x4d7   :  { %5873 = vpow2.f32 %v5372_v31 }
 0x4e1   :  { %v5874_v3 = vpop.eup %5873 }
 0x4e2   :  { %5374 = vadd.xlane.f32.xlu0 %v5874_v3 }
 0x56f   :  { %v5375_v57 = vpop.xlane.xlu0 %5374 }
 0x570   :  { %5875 = vlog2.f32 %v5375_v57 }
 0x57a   :  { %v5876_v14 = vpop.eup %5875 }
 0x57b   :  { %v5377_v1 = vmul.f32 0.6931472, %v5876_v14 }
 0x57d   :  { %v5378_v39 = vsub.f32 %v5371_v12, %v5377_v1 }
 0x57f   :  { %5379 = vst [vmem:[%s7652_s5] sm:$0xff] %v5378_v39 }

</bundles_post_ra>
